<compile_context>
chip_gen: v7x
topology: tpu7x:2x2x1
jax: 0.10.0
libtpu: 0.0.40
codegen_flags: <defaults>
</compile_context>

<pallas_src>
import numpy as np
import jax
import jax.numpy as jnp
from jax import lax
from jax.experimental import pallas as pl
from jax.experimental.pallas import tpu as pltpu

_MXU_DTYPE = jnp.bfloat16


# ----------------------------------------------------------------------------
# One-time weight re-layouts (hoisted out of the per-forward path)
# ----------------------------------------------------------------------------
def _conv_mat_s1(W):
    """OIHW (Cout, Cin, 3, 3) -> (Cout, 9*Cin); tap-major (kh, kw), ci fastest."""
    Cout, Cin, KH, KW = W.shape
    return jnp.transpose(W, (0, 2, 3, 1)).reshape(Cout, KH * KW * Cin)


def _conv_mat_s2(W):
    """3x3 stride-2 conv (OIHW) -> equivalent 2x2-tap matrix over the 2x2
    space-to-depth channels.  Columns: tap (du,dv) major, then phase (a,b),
    then ci -- matching the in-kernel xs channel ordering."""
    Cout, Cin, KH, KW = W.shape
    Wnp = np.asarray(W)
    M = np.zeros((Cout, 2, 2, 2, 2, Cin), dtype=Wnp.dtype)  # (co, du, dv, a, b, ci)
    for du in range(2):
        for dv in range(2):
            for a in range(2):
                for b in range(2):
                    kh, kw = 2 * du + a, 2 * dv + b
                    if kh < KH and kw < KW:
                        M[:, du, dv, a, b, :] = Wnp[:, :, kh, kw]
    return M.reshape(Cout, 4 * 4 * Cin)


def _convT_mat(Wt):
    """ConvTranspose2d(k=4, s=2, p=1) weights (Cin, Cout, 4, 4) -> a single
    (4*Cout, 9*Cin) matrix computing all 4 sub-pixel output phases as a 9-tap
    conv.  Row = (a*2 + b)*Cout + co, column = tap*Cin + ci."""
    Cin, Cout, K, _ = Wt.shape
    Wnp = np.asarray(Wt)
    kh_of = ({-1: 3, 0: 1}, {0: 2, 1: 0})          # phase a -> {dh: kernel row}
    M = np.zeros((2, 2, Cout, 9, Cin), dtype=Wnp.dtype)
    for a in range(2):
        for b in range(2):
            for dh, kh in kh_of[a].items():
                for dw, kw in kh_of[b].items():
                    t = (dh + 1) * 3 + (dw + 1)
                    M[a, b, :, t, :] = Wnp[:, :, kh, kw].T
    return M.reshape(4 * Cout, 9 * Cin)


def _head_phase_mat(W00):
    """conv0[0] (3x3 stride-2, OIHW) -> per-tap matrices computing all 4
    output-parity phases directly from the 4x space-to-depth input.
      shape (4 taps(du,dv), 4*c1 rows((a,b),co), 16*C0 cols((r,s),ci))
    Phase block (a,b) of the result holds the y1 rows/cols needed by the
    padded s2d layout that conv0[1] consumes (p = 1-a, q = 1-b)."""
    W = np.asarray(W00)
    c1, C0, KH, KW = W.shape
    M = np.zeros((2, 2, 2, 2, c1, 4, 4, C0), dtype=W.dtype)  # (du,dv,a,b,co,r,s,ci)
    for a in range(2):
        p = 1 - a
        for b in range(2):
            q = 1 - b
            for kh in range(KH):
                du, r = divmod(kh + 2 * p, 4)
                for kw in range(KW):
                    dv, s = divmod(kw + 2 * q, 4)
                    M[du, dv, a, b, :, r, s, :] = W[:, :, kh, kw]
    return M.reshape(4, 4 * c1, 16 * C0)


def prepare_params(params, mxu_dtype=_MXU_DTYPE):
    """Hoist all weight re-layouts (and the bf16 MXU-operand cast) out of the
    per-frame forward path."""
    (W00, b00, a00), (W01, b01, a01) = params["conv0"]
    c1, C0 = int(W00.shape[0]), int(W00.shape[1])
    c2 = int(W01.shape[0])
    Wt, bt = params["conv1"]
    nflow = int(Wt.shape[1])
    n_cb = len(params["convblock"])

    w_s = np.asarray(_conv_mat_s2(W01)).reshape(c2, 4, 4 * c1).transpose(1, 0, 2)
    w_cb = np.stack([
        np.asarray(_conv_mat_s1(W)).reshape(c2, 9, c2).transpose(1, 0, 2)
        for (W, _, _) in params["convblock"]])                     # (n_cb, 9, c2, c2)
    w_t = np.asarray(_convT_mat(Wt)).reshape(4 * nflow, 9, c2).transpose(1, 0, 2)

    return {
        "dims": dict(C0=C0, c1=c1, c2=c2, n_cb=n_cb, nflow=nflow),
        "mxu_dtype": mxu_dtype,
        # conv0[0] (head), 4 taps over the 4x-s2d input, all 4 phases at once
        "w_head": jnp.asarray(_head_phase_mat(W00), mxu_dtype),
        "b_head": jnp.asarray(np.tile(np.asarray(b00), 4).reshape(4 * c1, 1), jnp.float32),
        "a_head": jnp.asarray(np.tile(np.asarray(a00), 4).reshape(4 * c1, 1), jnp.float32),
        # conv0[1], 4 taps over the 2x-s2d (phase-packed) head output
        "w_s": jnp.asarray(w_s, mxu_dtype),
        "b_s": jnp.asarray(np.asarray(b01).reshape(c2, 1), jnp.float32),
        "a_s": jnp.asarray(np.asarray(a01).reshape(c2, 1), jnp.float32),
        # 6x convblock, 9 taps each
        "w_cb": jnp.asarray(w_cb.reshape(n_cb * 9, c2, c2), mxu_dtype),
        "b_cb": jnp.asarray(np.stack([np.asarray(b).reshape(c2, 1)
                                      for (_, b, _) in params["convblock"]]), jnp.float32),
        "a_cb": jnp.asarray(np.stack([np.asarray(a).reshape(c2, 1)
                                      for (_, _, a) in params["convblock"]]), jnp.float32),
        # ConvTranspose2d as its 4 sub-pixel phases, 9 taps
        "w_t": jnp.asarray(w_t, mxu_dtype),
        "b_t": jnp.asarray(np.tile(np.asarray(bt), 4).reshape(4 * nflow, 1), jnp.float32),
    }


# ----------------------------------------------------------------------------
# Plain-JAX prologue: 4x space-to-depth of the (tiny, in_planes-channel) input
# ----------------------------------------------------------------------------
def _make_x4(x, Hq, Wq):
    """(N, C0, H, W) -> (N, 16*C0, (Hq+2)*Wp) with channel (r*4+s)*C0+ci and
    plane [u, v] = xpad[4u+r, 4v+s] (xpad = 1-px zero pad of x, extended with
    extra zeros that are never read by valid outputs)."""
    N, C0, H, W = x.shape
    Wp = Wq + 2
    xp = jnp.pad(x, ((0, 0), (0, 0),
                     (1, 4 * (Hq + 2) - H - 1),
                     (1, 4 * Wp - W - 1)))
    x4 = xp.reshape(N, C0, Hq + 2, 4, Wp, 4)
    x4 = jnp.transpose(x4, (0, 3, 5, 1, 2, 4))       # (N, r, s, C0, Hq+2, Wp)
    return x4.reshape(N, 16 * C0, (Hq + 2) * Wp)


# ----------------------------------------------------------------------------
# The fused kernel: conv0[0] + conv0[1] + 6x convblock + ConvTranspose2d
# ----------------------------------------------------------------------------
def _make_fused_kernel(C0, c1, c2, cT, Hq, Wq, n_cb):
    Wp = Wq + 2                 # padded row pitch
    L = Hq * Wp                 # span computed / written per layer
    q0 = 2 * Wp                 # flat offset of the first interior row
    d4 = [du * Wp + dv for du in (0, 1) for dv in (0, 1)]
    d9 = [dh * Wp + dw for dh in (-1, 0, 1) for dw in (-1, 0, 1)]
    # destination flat offset inside the xs scratch for head phase block a*2+b
    xs_off = [1 * Wp + 2,   # (a,b)=(0,0): +1 row, +2 cols
              1 * Wp + 1,   # (0,1)
              0 * Wp + 2,   # (1,0)
              0 * Wp + 1]   # (1,1)

    def _acc_taps(get_w, src_ref, base, offs, rows):
        """Per-tap MXU accumulation (bf16 operands, f32 accumulator)."""
        acc = None
        for t, d in enumerate(offs):
            part = jnp.dot(get_w(t), src_ref[:, base + d:base + d + L],
                           preferred_element_type=jnp.float32)
            acc = part if acc is None else acc + part
        return acc

    def kernel(x4_ref, hm_ref, bm_ref, wh_ref, bh_ref, ah_ref,
               ws_ref, bs_ref, as_ref, wcb_ref, bcb_ref, acb_ref,
               wt_ref, bt_ref, o_ref, xs_sc, a_sc, b_sc):
        headmask = hm_ref[...]                       # (1, L), hoisted loads
        bodymask = bm_ref[...]                       # (1, L)

        # Zero only the halo strips; interiors are overwritten every layer and
        # pad columns are re-zeroed by the mask.  (Not gated on program_id==0:
        # scratches are per-core when the parallel axis is sharded.)
        xs_sc[:, 0:2 * Wp] = jnp.zeros((4 * c1, 2 * Wp), xs_sc.dtype)
        xs_sc[:, Hq * Wp:(Hq + 2) * Wp] = jnp.zeros((4 * c1, 2 * Wp), xs_sc.dtype)
        a_sc[:, 0:q0] = jnp.zeros((c2, q0), a_sc.dtype)
        a_sc[:, q0 + L:(Hq + 4) * Wp] = jnp.zeros((c2, 2 * Wp), a_sc.dtype)
        b_sc[:, 0:q0] = jnp.zeros((c2, q0), b_sc.dtype)
        b_sc[:, q0 + L:(Hq + 4) * Wp] = jnp.zeros((c2, 2 * Wp), b_sc.dtype)

        # ---- conv0[0]: stride-2 3x3 conv + PReLU computed directly as its 4
        #      output-parity phases (4-tap per-tap accumulation over the
        #      4x-s2d input), written straight into conv0[1]'s layout.
        x4v = x4_ref[0]                              # (16*C0, (Hq+2)*Wp) bf16
        acc = None
        for t, d in enumerate(d4):
            part = jnp.dot(wh_ref[t], x4v[:, d:d + L],
                           preferred_element_type=jnp.float32)
            acc = part if acc is None else acc + part
        y = acc + bh_ref[...]
        y = jnp.where(y >= 0.0, y, ah_ref[...] * y)      # PReLU (f32)
        yh = (y * headmask).astype(xs_sc.dtype)
        for blk in range(4):
            off = xs_off[blk]
            xs_sc[blk * c1:(blk + 1) * c1, off:off + L] = yh[blk * c1:(blk + 1) * c1, :]

        # ---- conv0[1]: stride-2 conv as 4-tap accumulation over the phase-
        #      packed xs scratch, + bias + PReLU -> scratch A (bf16)
        acc = _acc_taps(lambda t: ws_ref[t], xs_sc, 0, d4, c2)
        y = acc + bs_ref[...]
        y = jnp.where(y >= 0.0, y, as_ref[...] * y)
        a_sc[:, q0:q0 + L] = (y * bodymask).astype(a_sc.dtype)

        # ---- convblock: 6 x (3x3 conv as 9-tap accumulation + PReLU),
        #      ping-pong between the two VMEM scratches (no HBM round trips)
        src, dst = a_sc, b_sc
        for l in range(n_cb):
            acc = _acc_taps(lambda t, l=l: wcb_ref[l * 9 + t], src, q0, d9, c2)
            y = acc + bcb_ref[l]
            y = jnp.where(y >= 0.0, y, acb_ref[l] * y)
            dst[:, q0:q0 + L] = (y * bodymask).astype(dst.dtype)
            src, dst = dst, src

        # ---- conv1 = ConvTranspose2d(2c, 4, 4, 2, 1) as its 4 sub-pixel
        #      phases (phase-masked weights), 9-tap accumulation.  The
        #      interleave to full resolution happens outside the kernel.
        acc = _acc_taps(lambda t: wt_ref[t], src, q0, d9, cT)
        o_ref[0] = (acc + bt_ref[...]).astype(o_ref.dtype)

    return kernel


# ----------------------------------------------------------------------------
# IFBlock forward
# ----------------------------------------------------------------------------
def ifblock_forward(prep, x_nchw, scale=1):
    dims = prep["dims"]
    C0, c1, c2 = dims["C0"], dims["c1"], dims["c2"]
    n_cb, nflow = dims["n_cb"], dims["nflow"]
    mxu_dtype = prep["mxu_dtype"]

    if scale != 1:
        # F.interpolate(bilinear, align_corners=False) pre-resize (plain JAX).
        N, C, H, W = x_nchw.shape
        x_nchw = jax.image.resize(
            x_nchw, (N, C, int(round(H / scale)), int(round(W / scale))), "bilinear")

    N, C, H, W = x_nchw.shape
    assert C == C0 and H % 4 == 0 and W % 4 == 0, (C, H, W)
    Hq, Wq = H // 4, W // 4
    Wp = Wq + 2
    L = Hq * Wp
    S4 = (Hq + 2) * Wp
    cT = 4 * nflow

    x4 = _make_x4(x_nchw, Hq, Wq).astype(mxu_dtype)
    bodymask = jnp.zeros((Hq, Wp), jnp.float32).at[:, 1:Wq + 1].set(1.0).reshape(1, L)
    headmask = jnp.zeros((Hq, Wp), jnp.float32).at[:, 0:Wq].set(1.0).reshape(1, L)

    operands = [x4, headmask, bodymask,
                prep["w_head"], prep["b_head"], prep["a_head"],
                prep["w_s"], prep["b_s"], prep["a_s"],
                prep["w_cb"], prep["b_cb"], prep["a_cb"],
                prep["w_t"], prep["b_t"]]

    in_specs = [
        pl.BlockSpec((1, 16 * C0, S4), lambda n: (n, 0, 0)),
        pl.BlockSpec((1, L), lambda n: (0, 0)),
        pl.BlockSpec((1, L), lambda n: (0, 0)),
        pl.BlockSpec((4, 4 * c1, 16 * C0), lambda n: (0, 0, 0)),
        pl.BlockSpec((4 * c1, 1), lambda n: (0, 0)),
        pl.BlockSpec((4 * c1, 1), lambda n: (0, 0)),
        pl.BlockSpec((4, c2, 4 * c1), lambda n: (0, 0, 0)),
        pl.BlockSpec((c2, 1), lambda n: (0, 0)),
        pl.BlockSpec((c2, 1), lambda n: (0, 0)),
        pl.BlockSpec((n_cb * 9, c2, c2), lambda n: (0, 0, 0)),
        pl.BlockSpec((n_cb, c2, 1), lambda n: (0, 0, 0)),
        pl.BlockSpec((n_cb, c2, 1), lambda n: (0, 0, 0)),
        pl.BlockSpec((9, cT, c2), lambda n: (0, 0, 0)),
        pl.BlockSpec((cT, 1), lambda n: (0, 0)),
    ]
    scratch_shapes = [
        pltpu.VMEM((4 * c1, S4), mxu_dtype),               # phase-packed head out
        pltpu.VMEM((c2, (Hq + 4) * Wp), mxu_dtype),        # ping
        pltpu.VMEM((c2, (Hq + 4) * Wp), mxu_dtype),        # pong
    ]

    # Explicit VMEM budget (review): operands + output double-buffered, plus
    # scratches and f32 accumulator headroom.
    itemsize = np.dtype(mxu_dtype).itemsize
    raw = 2 * sum(int(a.size) * a.dtype.itemsize for a in operands)
    raw += 2 * N * cT * L * 4
    raw += (4 * c1 * S4 + 2 * c2 * (Hq + 4) * Wp) * itemsize
    raw += 4 * (4 * c1 + 2 * c2 + cT) * L            # f32 accumulators
    vmem_limit = int(min(max(raw + (4 << 20), 32 << 20), 100 << 20))

    kernel = _make_fused_kernel(C0, c1, c2, cT, Hq, Wq, n_cb)
    out = pl.pallas_call(
        kernel,
        out_shape=jax.ShapeDtypeStruct((N, cT, L), x_nchw.dtype),
        grid_spec=pltpu.PrefetchScalarGridSpec(
            num_scalar_prefetch=0, grid=(N,),
            in_specs=in_specs,
            out_specs=pl.BlockSpec((1, cT, L), lambda n: (n, 0, 0)),
            scratch_shapes=scratch_shapes),
        compiler_params=pltpu.CompilerParams(
            dimension_semantics=("parallel",),
            vmem_limit_bytes=vmem_limit),
    )(*operands)

    # (N, 16, Hq*Wp) -> (N, a, b, co, Hq, Wp) -> drop pad columns -> interleave
    out = out.reshape(N, 2, 2, nflow, Hq, Wp)[:, :, :, :, :, 1:Wq + 1]
    flow = jnp.transpose(out, (0, 3, 4, 1, 5, 2)).reshape(N, nflow, 2 * Hq, 2 * Wq)

    if scale != 1:
        flow = jax.image.resize(
            flow, (N, nflow, int(round(2 * Hq * scale)), int(round(2 * Wq * scale))),
            "bilinear")
    return flow


# ----------------------------------------------------------------------------
# Pure-JAX reference (mirrors PyTorch semantics exactly, NCHW / OIHW, f32)
# ----------------------------------------------------------------------------
def ifblock_reference(params, x_nchw):
    def conv_prelu(x, W, b, a, stride):
        y = lax.conv_general_dilated(x, W, (stride, stride), [(1, 1), (1, 1)],
                                     dimension_numbers=('NCHW', 'OIHW', 'NCHW'))
        y = y + b.reshape(1, -1, 1, 1)
        return jnp.where(y >= 0, y, a.reshape(1, -1, 1, 1) * y)

    x = x_nchw
    for (W, b, a) in params["conv0"]:
        x = conv_prelu(x, W, b, a, 2)
    for (W, b, a) in params["convblock"]:
        x = conv_prelu(x, W, b, a, 1)
    Wt, bt = params["conv1"]
    w_flip = jnp.transpose(Wt[:, :, ::-1, ::-1], (1, 0, 2, 3))
    pe = 4 - 1 - 1
    y = lax.conv_general_dilated(x, w_flip, (1, 1), [(pe, pe), (pe, pe)],
                                 lhs_dilation=(2, 2),
                                 dimension_numbers=('NCHW', 'OIHW', 'NCHW'))
    return y + bt.reshape(1, -1, 1, 1)


def init_params(key, in_planes, c):
    keys = iter(jax.random.split(key, 32))

    def conv_prelu_params(cin, cout):
        W = 0.1 * jax.random.normal(next(keys), (cout, cin, 3, 3), jnp.float32)
        b = 0.05 * jax.random.normal(next(keys), (cout,), jnp.float32)
        a = 0.25 + 0.01 * jax.random.normal(next(keys), (cout,), jnp.float32)
        return (W, b, a)

    params = {
        "conv0": [conv_prelu_params(in_planes, c), conv_prelu_params(c, 2 * c)],
        "convblock": [conv_prelu_params(2 * c, 2 * c) for _ in range(6)],
    }
    Wt = 0.1 * jax.random.normal(next(keys), (2 * c, 4, 4, 4), jnp.float32)
    bt = 0.05 * jax.random.normal(next(keys), (4,), jnp.float32)
    params["conv1"] = (Wt, bt)
    return params


if __name__ == "__main__":
    key = jax.random.PRNGKey(0)
    kp, kx = jax.random.split(key)

    in_planes, c = 4, 16
    N, H, W = 2, 16, 16

    params = init_params(kp, in_planes, c)
    prep = prepare_params(params)                 # one-time weight re-layout + bf16 cast
    x = jax.random.normal(kx, (N, in_planes, H, W), jnp.float32)

    fwd = jax.jit(lambda inp: ifblock_forward(prep, inp, scale=1))
    out = jax.block_until_ready(fwd(x))
    ref = jax.block_until_ready(ifblock_reference(params, x))

    assert out.shape == (N, 4, H // 2, W // 2), out.shape
    denom = max(1.0, float(jnp.max(jnp.abs(ref))))
    err = float(jnp.max(jnp.abs(out - ref))) / denom
    # Tolerance reflects bf16 MXU operands (f32 accumulation) through 9 fused
    # conv layers vs the pure-f32 reference; structural bugs produce O(1) errors.
    if err > 5e-2:
        raise AssertionError(f"Pallas IFBlock mismatch vs reference, rel err={err}")

    print("KERNEL_OK")
</pallas_src>

<mosaic_0001>
module attributes {stable_mosaic.version = 11 : i64} {
  func.func @kernel(%arg0: i32, %arg1: memref<1x64x36xbf16, #tpu.memory_space<vmem>>, %arg2: memref<1x24xf32, #tpu.memory_space<vmem>>, %arg3: memref<1x24xf32, #tpu.memory_space<vmem>>, %arg4: memref<4x64x64xbf16, #tpu.memory_space<vmem>>, %arg5: memref<64x1xf32, #tpu.memory_space<vmem>>, %arg6: memref<64x1xf32, #tpu.memory_space<vmem>>, %arg7: memref<4x32x64xbf16, #tpu.memory_space<vmem>>, %arg8: memref<32x1xf32, #tpu.memory_space<vmem>>, %arg9: memref<32x1xf32, #tpu.memory_space<vmem>>, %arg10: memref<54x32x32xbf16, #tpu.memory_space<vmem>>, %arg11: memref<6x32x1xf32, #tpu.memory_space<vmem>>, %arg12: memref<6x32x1xf32, #tpu.memory_space<vmem>>, %arg13: memref<9x16x32xbf16, #tpu.memory_space<vmem>>, %arg14: memref<16x1xf32, #tpu.memory_space<vmem>>, %arg15: memref<1x16x24xf32, #tpu.memory_space<vmem>>, %arg16: memref<64x36xbf16, #tpu.memory_space<vmem>>, %arg17: memref<32x48xbf16, #tpu.memory_space<vmem>>, %arg18: memref<32x48xbf16, #tpu.memory_space<vmem>>) attributes {dimension_semantics = [#tpu.dimension_semantics<parallel>], iteration_bounds = array<i64: 2>, scalar_prefetch = 0 : i64, scratch_operands = 3 : i64, tpu.core_type = #tpu.core_type<tc>, window_params = [{transform_indices = @transform_0, window_bounds = array<i64: 1, 64, 36>}, {pipeline_mode = #tpu.pipeline_mode<synchronous>, transform_indices = @transform_1, window_bounds = array<i64: 1, 24>}, {pipeline_mode = #tpu.pipeline_mode<synchronous>, transform_indices = @transform_2, window_bounds = array<i64: 1, 24>}, {pipeline_mode = #tpu.pipeline_mode<synchronous>, transform_indices = @transform_3, window_bounds = array<i64: 4, 64, 64>}, {pipeline_mode = #tpu.pipeline_mode<synchronous>, transform_indices = @transform_4, window_bounds = array<i64: 64, 1>}, {pipeline_mode = #tpu.pipeline_mode<synchronous>, transform_indices = @transform_5, window_bounds = array<i64: 64, 1>}, {pipeline_mode = #tpu.pipeline_mode<synchronous>, transform_indices = @transform_6, window_bounds = array<i64: 4, 32, 64>}, {pipeline_mode = #tpu.pipeline_mode<synchronous>, transform_indices = @transform_7, window_bounds = array<i64: 32, 1>}, {pipeline_mode = #tpu.pipeline_mode<synchronous>, transform_indices = @transform_8, window_bounds = array<i64: 32, 1>}, {pipeline_mode = #tpu.pipeline_mode<synchronous>, transform_indices = @transform_9, window_bounds = array<i64: 54, 32, 32>}, {pipeline_mode = #tpu.pipeline_mode<synchronous>, transform_indices = @transform_10, window_bounds = array<i64: 6, 32, 1>}, {pipeline_mode = #tpu.pipeline_mode<synchronous>, transform_indices = @transform_11, window_bounds = array<i64: 6, 32, 1>}, {pipeline_mode = #tpu.pipeline_mode<synchronous>, transform_indices = @transform_12, window_bounds = array<i64: 9, 16, 32>}, {pipeline_mode = #tpu.pipeline_mode<synchronous>, transform_indices = @transform_13, window_bounds = array<i64: 16, 1>}, {transform_indices = @transform_14, window_bounds = array<i64: 1, 16, 24>}]} {
    %c0 = arith.constant 0 : index
    %c0_0 = arith.constant 0 : index
    %0 = vector.load %arg2[%c0, %c0_0] : memref<1x24xf32, #tpu.memory_space<vmem>>, vector<1x24xf32>
    %c0_1 = arith.constant 0 : index
    %c0_2 = arith.constant 0 : index
    %1 = vector.load %arg3[%c0_1, %c0_2] : memref<1x24xf32, #tpu.memory_space<vmem>>, vector<1x24xf32>
    %cst = arith.constant 0.000000e+00 : bf16
    %2 = vector.broadcast %cst : bf16 to vector<64x12xbf16>
    %c0_3 = arith.constant 0 : index
    %c0_4 = arith.constant 0 : index
    %3 = vector.load %arg16[%c0_3, %c0_4] : memref<64x36xbf16, #tpu.memory_space<vmem>>, vector<64x12xbf16>
    tpu.vector_store %arg16[%c0_3, %c0_4], %2 {strides = array<i32>} : memref<64x36xbf16, #tpu.memory_space<vmem>>, vector<64x12xbf16>,
    %cst_5 = arith.constant 0.000000e+00 : bf16
    %4 = vector.broadcast %cst_5 : bf16 to vector<64x12xbf16>
    %c0_6 = arith.constant 0 : index
    %c24 = arith.constant 24 : index
    %5 = vector.load %arg16[%c0_6, %c24] : memref<64x36xbf16, #tpu.memory_space<vmem>>, vector<64x12xbf16>
    tpu.vector_store %arg16[%c0_6, %c24], %4 {strides = array<i32>} : memref<64x36xbf16, #tpu.memory_space<vmem>>, vector<64x12xbf16>,
    %cst_7 = arith.constant 0.000000e+00 : bf16
    %6 = vector.broadcast %cst_7 : bf16 to vector<32x12xbf16>
    %c0_8 = arith.constant 0 : index
    %c0_9 = arith.constant 0 : index
    %7 = vector.load %arg17[%c0_8, %c0_9] : memref<32x48xbf16, #tpu.memory_space<vmem>>, vector<32x12xbf16>
    tpu.vector_store %arg17[%c0_8, %c0_9], %6 {strides = array<i32>} : memref<32x48xbf16, #tpu.memory_space<vmem>>, vector<32x12xbf16>,
    %cst_10 = arith.constant 0.000000e+00 : bf16
    %8 = vector.broadcast %cst_10 : bf16 to vector<32x12xbf16>
    %c0_11 = arith.constant 0 : index
    %c36 = arith.constant 36 : index
    %9 = vector.load %arg17[%c0_11, %c36] : memref<32x48xbf16, #tpu.memory_space<vmem>>, vector<32x12xbf16>
    tpu.vector_store %arg17[%c0_11, %c36], %8 {strides = array<i32>} : memref<32x48xbf16, #tpu.memory_space<vmem>>, vector<32x12xbf16>,
    %cst_12 = arith.constant 0.000000e+00 : bf16
    %10 = vector.broadcast %cst_12 : bf16 to vector<32x12xbf16>
    %c0_13 = arith.constant 0 : index
    %c0_14 = arith.constant 0 : index
    %11 = vector.load %arg18[%c0_13, %c0_14] : memref<32x48xbf16, #tpu.memory_space<vmem>>, vector<32x12xbf16>
    tpu.vector_store %arg18[%c0_13, %c0_14], %10 {strides = array<i32>} : memref<32x48xbf16, #tpu.memory_space<vmem>>, vector<32x12xbf16>,
    %cst_15 = arith.constant 0.000000e+00 : bf16
    %12 = vector.broadcast %cst_15 : bf16 to vector<32x12xbf16>
    %c0_16 = arith.constant 0 : index
    %c36_17 = arith.constant 36 : index
    %13 = vector.load %arg18[%c0_16, %c36_17] : memref<32x48xbf16, #tpu.memory_space<vmem>>, vector<32x12xbf16>
    tpu.vector_store %arg18[%c0_16, %c36_17], %12 {strides = array<i32>} : memref<32x48xbf16, #tpu.memory_space<vmem>>, vector<32x12xbf16>,
    %c0_18 = arith.constant 0 : index
    %c0_19 = arith.constant 0 : index
    %c0_20 = arith.constant 0 : index
    %14 = vector.load %arg1[%c0_18, %c0_19, %c0_20] : memref<1x64x36xbf16, #tpu.memory_space<vmem>>, vector<1x64x36xbf16>
    %15 = vector.shape_cast %14 : vector<1x64x36xbf16> to vector<64x36xbf16>
    %c0_21 = arith.constant 0 : index
    %c0_22 = arith.constant 0 : index
    %c0_23 = arith.constant 0 : index
    %16 = vector.load %arg4[%c0_21, %c0_22, %c0_23] : memref<4x64x64xbf16, #tpu.memory_space<vmem>>, vector<1x64x64xbf16>
    %17 = vector.shape_cast %16 : vector<1x64x64xbf16> to vector<64x64xbf16>
    %18 = vector.extract_strided_slice %15 {offsets = [0, 0], sizes = [64, 24], strides = [1, 1]} : vector<64x36xbf16> to vector<64x24xbf16>
    %cst_24 = arith.constant dense<0.000000e+00> : vector<64x24xf32>
    %19 = tpu.matmul %17, %18, %cst_24 {dimension_numbers = #tpu.dot_dimension_numbers<[1], [0], [0], [1], [0, 0, 1, 1], [], []>} : vector<64x64xbf16>, vector<64x24xbf16>, vector<64x24xf32> -> vector<64x24xf32>
    %c1 = arith.constant 1 : index
    %c0_25 = arith.constant 0 : index
    %c0_26 = arith.constant 0 : index
    %20 = vector.load %arg4[%c1, %c0_25, %c0_26] : memref<4x64x64xbf16, #tpu.memory_space<vmem>>, vector<1x64x64xbf16>
    %21 = vector.shape_cast %20 : vector<1x64x64xbf16> to vector<64x64xbf16>
    %22 = vector.extract_strided_slice %15 {offsets = [0, 1], sizes = [64, 24], strides = [1, 1]} : vector<64x36xbf16> to vector<64x24xbf16>
    %cst_27 = arith.constant dense<0.000000e+00> : vector<64x24xf32>
    %23 = tpu.matmul %21, %22, %cst_27 {dimension_numbers = #tpu.dot_dimension_numbers<[1], [0], [0], [1], [0, 0, 1, 1], [], []>} : vector<64x64xbf16>, vector<64x24xbf16>, vector<64x24xf32> -> vector<64x24xf32>
    %24 = arith.addf %19, %23 : vector<64x24xf32>
    %c2 = arith.constant 2 : index
    %c0_28 = arith.constant 0 : index
    %c0_29 = arith.constant 0 : index
    %25 = vector.load %arg4[%c2, %c0_28, %c0_29] : memref<4x64x64xbf16, #tpu.memory_space<vmem>>, vector<1x64x64xbf16>
    %26 = vector.shape_cast %25 : vector<1x64x64xbf16> to vector<64x64xbf16>
    %27 = vector.extract_strided_slice %15 {offsets = [0, 6], sizes = [64, 24], strides = [1, 1]} : vector<64x36xbf16> to vector<64x24xbf16>
    %cst_30 = arith.constant dense<0.000000e+00> : vector<64x24xf32>
    %28 = tpu.matmul %26, %27, %cst_30 {dimension_numbers = #tpu.dot_dimension_numbers<[1], [0], [0], [1], [0, 0, 1, 1], [], []>} : vector<64x64xbf16>, vector<64x24xbf16>, vector<64x24xf32> -> vector<64x24xf32>
    %29 = arith.addf %24, %28 : vector<64x24xf32>
    %c3 = arith.constant 3 : index
    %c0_31 = arith.constant 0 : index
    %c0_32 = arith.constant 0 : index
    %30 = vector.load %arg4[%c3, %c0_31, %c0_32] : memref<4x64x64xbf16, #tpu.memory_space<vmem>>, vector<1x64x64xbf16>
    %31 = vector.shape_cast %30 : vector<1x64x64xbf16> to vector<64x64xbf16>
    %32 = vector.extract_strided_slice %15 {offsets = [0, 7], sizes = [64, 24], strides = [1, 1]} : vector<64x36xbf16> to vector<64x24xbf16>
    %cst_33 = arith.constant dense<0.000000e+00> : vector<64x24xf32>
    %33 = tpu.matmul %31, %32, %cst_33 {dimension_numbers = #tpu.dot_dimension_numbers<[1], [0], [0], [1], [0, 0, 1, 1], [], []>} : vector<64x64xbf16>, vector<64x24xbf16>, vector<64x24xf32> -> vector<64x24xf32>
    %34 = arith.addf %29, %33 : vector<64x24xf32>
    %c0_34 = arith.constant 0 : index
    %c0_35 = arith.constant 0 : index
    %35 = vector.load %arg5[%c0_34, %c0_35] : memref<64x1xf32, #tpu.memory_space<vmem>>, vector<64x1xf32>
    %36 = vector.broadcast %35 : vector<64x1xf32> to vector<64x24xf32>
    %37 = arith.addf %34, %36 : vector<64x24xf32>
    %cst_36 = arith.constant 0.000000e+00 : f32
    %38 = vector.broadcast %cst_36 : f32 to vector<64x24xf32>
    %39 = arith.cmpf oge, %37, %38 : vector<64x24xf32>
    %c0_37 = arith.constant 0 : index
    %c0_38 = arith.constant 0 : index
    %40 = vector.load %arg6[%c0_37, %c0_38] : memref<64x1xf32, #tpu.memory_space<vmem>>, vector<64x1xf32>
    %41 = vector.broadcast %40 : vector<64x1xf32> to vector<64x24xf32>
    %42 = arith.mulf %41, %37 : vector<64x24xf32>
    %43 = arith.select %39, %37, %42 : vector<64x24xi1>, vector<64x24xf32>
    %44 = vector.broadcast %0 : vector<1x24xf32> to vector<64x24xf32>
    %45 = arith.mulf %43, %44 : vector<64x24xf32>
    %46 = arith.truncf %45 : vector<64x24xf32> to vector<64x24xbf16>
    %47 = vector.extract_strided_slice %46 {offsets = [0, 0], sizes = [16, 24], strides = [1, 1]} : vector<64x24xbf16> to vector<16x24xbf16>
    %c0_39 = arith.constant 0 : index
    %c8 = arith.constant 8 : index
    %48 = vector.load %arg16[%c0_39, %c8] : memref<64x36xbf16, #tpu.memory_space<vmem>>, vector<16x24xbf16>
    tpu.vector_store %arg16[%c0_39, %c8], %47 {strides = array<i32>} : memref<64x36xbf16, #tpu.memory_space<vmem>>, vector<16x24xbf16>,
    %49 = vector.extract_strided_slice %46 {offsets = [16, 0], sizes = [16, 24], strides = [1, 1]} : vector<64x24xbf16> to vector<16x24xbf16>
    %c16 = arith.constant 16 : index
    %c7 = arith.constant 7 : index
    %50 = vector.load %arg16[%c16, %c7] : memref<64x36xbf16, #tpu.memory_space<vmem>>, vector<16x24xbf16>
    tpu.vector_store %arg16[%c16, %c7], %49 {strides = array<i32>} : memref<64x36xbf16, #tpu.memory_space<vmem>>, vector<16x24xbf16>,
    %51 = vector.extract_strided_slice %46 {offsets = [32, 0], sizes = [16, 24], strides = [1, 1]} : vector<64x24xbf16> to vector<16x24xbf16>
    %c32 = arith.constant 32 : index
    %c2_40 = arith.constant 2 : index
    %52 = vector.load %arg16[%c32, %c2_40] : memref<64x36xbf16, #tpu.memory_space<vmem>>, vector<16x24xbf16>
    tpu.vector_store %arg16[%c32, %c2_40], %51 {strides = array<i32>} : memref<64x36xbf16, #tpu.memory_space<vmem>>, vector<16x24xbf16>,
    %53 = vector.extract_strided_slice %46 {offsets = [48, 0], sizes = [16, 24], strides = [1, 1]} : vector<64x24xbf16> to vector<16x24xbf16>
    %c48 = arith.constant 48 : index
    %c1_41 = arith.constant 1 : index
    %54 = vector.load %arg16[%c48, %c1_41] : memref<64x36xbf16, #tpu.memory_space<vmem>>, vector<16x24xbf16>
    tpu.vector_store %arg16[%c48, %c1_41], %53 {strides = array<i32>} : memref<64x36xbf16, #tpu.memory_space<vmem>>, vector<16x24xbf16>,
    %c0_42 = arith.constant 0 : index
    %c0_43 = arith.constant 0 : index
    %c0_44 = arith.constant 0 : index
    %55 = vector.load %arg7[%c0_42, %c0_43, %c0_44] : memref<4x32x64xbf16, #tpu.memory_space<vmem>>, vector<1x32x64xbf16>
    %56 = vector.shape_cast %55 : vector<1x32x64xbf16> to vector<32x64xbf16>
    %c0_45 = arith.constant 0 : index
    %c0_46 = arith.constant 0 : index
    %57 = vector.load %arg16[%c0_45, %c0_46] : memref<64x36xbf16, #tpu.memory_space<vmem>>, vector<64x24xbf16>
    %cst_47 = arith.constant dense<0.000000e+00> : vector<32x24xf32>
    %58 = tpu.matmul %56, %57, %cst_47 {dimension_numbers = #tpu.dot_dimension_numbers<[1], [0], [0], [1], [0, 0, 1, 1], [], []>} : vector<32x64xbf16>, vector<64x24xbf16>, vector<32x24xf32> -> vector<32x24xf32>
    %c1_48 = arith.constant 1 : index
    %c0_49 = arith.constant 0 : index
    %c0_50 = arith.constant 0 : index
    %59 = vector.load %arg7[%c1_48, %c0_49, %c0_50] : memref<4x32x64xbf16, #tpu.memory_space<vmem>>, vector<1x32x64xbf16>
    %60 = vector.shape_cast %59 : vector<1x32x64xbf16> to vector<32x64xbf16>
    %c0_51 = arith.constant 0 : index
    %c1_52 = arith.constant 1 : index
    %61 = vector.load %arg16[%c0_51, %c1_52] : memref<64x36xbf16, #tpu.memory_space<vmem>>, vector<64x24xbf16>
    %cst_53 = arith.constant dense<0.000000e+00> : vector<32x24xf32>
    %62 = tpu.matmul %60, %61, %cst_53 {dimension_numbers = #tpu.dot_dimension_numbers<[1], [0], [0], [1], [0, 0, 1, 1], [], []>} : vector<32x64xbf16>, vector<64x24xbf16>, vector<32x24xf32> -> vector<32x24xf32>
    %63 = arith.addf %58, %62 : vector<32x24xf32>
    %c2_54 = arith.constant 2 : index
    %c0_55 = arith.constant 0 : index
    %c0_56 = arith.constant 0 : index
    %64 = vector.load %arg7[%c2_54, %c0_55, %c0_56] : memref<4x32x64xbf16, #tpu.memory_space<vmem>>, vector<1x32x64xbf16>
    %65 = vector.shape_cast %64 : vector<1x32x64xbf16> to vector<32x64xbf16>
    %c0_57 = arith.constant 0 : index
    %c6 = arith.constant 6 : index
    %66 = vector.load %arg16[%c0_57, %c6] : memref<64x36xbf16, #tpu.memory_space<vmem>>, vector<64x24xbf16>
    %cst_58 = arith.constant dense<0.000000e+00> : vector<32x24xf32>
    %67 = tpu.matmul %65, %66, %cst_58 {dimension_numbers = #tpu.dot_dimension_numbers<[1], [0], [0], [1], [0, 0, 1, 1], [], []>} : vector<32x64xbf16>, vector<64x24xbf16>, vector<32x24xf32> -> vector<32x24xf32>
    %68 = arith.addf %63, %67 : vector<32x24xf32>
    %c3_59 = arith.constant 3 : index
    %c0_60 = arith.constant 0 : index
    %c0_61 = arith.constant 0 : index
    %69 = vector.load %arg7[%c3_59, %c0_60, %c0_61] : memref<4x32x64xbf16, #tpu.memory_space<vmem>>, vector<1x32x64xbf16>
    %70 = vector.shape_cast %69 : vector<1x32x64xbf16> to vector<32x64xbf16>
    %c0_62 = arith.constant 0 : index
    %c7_63 = arith.constant 7 : index
    %71 = vector.load %arg16[%c0_62, %c7_63] : memref<64x36xbf16, #tpu.memory_space<vmem>>, vector<64x24xbf16>
    %cst_64 = arith.constant dense<0.000000e+00> : vector<32x24xf32>
    %72 = tpu.matmul %70, %71, %cst_64 {dimension_numbers = #tpu.dot_dimension_numbers<[1], [0], [0], [1], [0, 0, 1, 1], [], []>} : vector<32x64xbf16>, vector<64x24xbf16>, vector<32x24xf32> -> vector<32x24xf32>
    %73 = arith.addf %68, %72 : vector<32x24xf32>
    %c0_65 = arith.constant 0 : index
    %c0_66 = arith.constant 0 : index
    %74 = vector.load %arg8[%c0_65, %c0_66] : memref<32x1xf32, #tpu.memory_space<vmem>>, vector<32x1xf32>
    %75 = vector.broadcast %74 : vector<32x1xf32> to vector<32x24xf32>
    %76 = arith.addf %73, %75 : vector<32x24xf32>
    %cst_67 = arith.constant 0.000000e+00 : f32
    %77 = vector.broadcast %cst_67 : f32 to vector<32x24xf32>
    %78 = arith.cmpf oge, %76, %77 : vector<32x24xf32>
    %c0_68 = arith.constant 0 : index
    %c0_69 = arith.constant 0 : index
    %79 = vector.load %arg9[%c0_68, %c0_69] : memref<32x1xf32, #tpu.memory_space<vmem>>, vector<32x1xf32>
    %80 = vector.broadcast %79 : vector<32x1xf32> to vector<32x24xf32>
    %81 = arith.mulf %80, %76 : vector<32x24xf32>
    %82 = arith.select %78, %76, %81 : vector<32x24xi1>, vector<32x24xf32>
    %83 = vector.broadcast %1 : vector<1x24xf32> to vector<32x24xf32>
    %84 = arith.mulf %82, %83 : vector<32x24xf32>
    %85 = arith.truncf %84 : vector<32x24xf32> to vector<32x24xbf16>
    %c0_70 = arith.constant 0 : index
    %c12 = arith.constant 12 : index
    %86 = vector.load %arg17[%c0_70, %c12] : memref<32x48xbf16, #tpu.memory_space<vmem>>, vector<32x24xbf16>
    tpu.vector_store %arg17[%c0_70, %c12], %85 {strides = array<i32>} : memref<32x48xbf16, #tpu.memory_space<vmem>>, vector<32x24xbf16>,
    %c0_71 = arith.constant 0 : index
    %c0_72 = arith.constant 0 : index
    %c0_73 = arith.constant 0 : index
    %87 = vector.load %arg10[%c0_71, %c0_72, %c0_73] : memref<54x32x32xbf16, #tpu.memory_space<vmem>>, vector<1x32x32xbf16>
    %88 = vector.shape_cast %87 : vector<1x32x32xbf16> to vector<32x32xbf16>
    %c0_74 = arith.constant 0 : index
    %c5 = arith.constant 5 : index
    %89 = vector.load %arg17[%c0_74, %c5] : memref<32x48xbf16, #tpu.memory_space<vmem>>, vector<32x24xbf16>
    %cst_75 = arith.constant dense<0.000000e+00> : vector<32x24xf32>
    %90 = tpu.matmul %88, %89, %cst_75 {dimension_numbers = #tpu.dot_dimension_numbers<[1], [0], [0], [1], [0, 0, 1, 1], [], []>} : vector<32x32xbf16>, vector<32x24xbf16>, vector<32x24xf32> -> vector<32x24xf32>
    %c1_76 = arith.constant 1 : index
    %c0_77 = arith.constant 0 : index
    %c0_78 = arith.constant 0 : index
    %91 = vector.load %arg10[%c1_76, %c0_77, %c0_78] : memref<54x32x32xbf16, #tpu.memory_space<vmem>>, vector<1x32x32xbf16>
    %92 = vector.shape_cast %91 : vector<1x32x32xbf16> to vector<32x32xbf16>
    %c0_79 = arith.constant 0 : index
    %c6_80 = arith.constant 6 : index
    %93 = vector.load %arg17[%c0_79, %c6_80] : memref<32x48xbf16, #tpu.memory_space<vmem>>, vector<32x24xbf16>
    %cst_81 = arith.constant dense<0.000000e+00> : vector<32x24xf32>
    %94 = tpu.matmul %92, %93, %cst_81 {dimension_numbers = #tpu.dot_dimension_numbers<[1], [0], [0], [1], [0, 0, 1, 1], [], []>} : vector<32x32xbf16>, vector<32x24xbf16>, vector<32x24xf32> -> vector<32x24xf32>
    %95 = arith.addf %90, %94 : vector<32x24xf32>
    %c2_82 = arith.constant 2 : index
    %c0_83 = arith.constant 0 : index
    %c0_84 = arith.constant 0 : index
    %96 = vector.load %arg10[%c2_82, %c0_83, %c0_84] : memref<54x32x32xbf16, #tpu.memory_space<vmem>>, vector<1x32x32xbf16>
    %97 = vector.shape_cast %96 : vector<1x32x32xbf16> to vector<32x32xbf16>
    %c0_85 = arith.constant 0 : index
    %c7_86 = arith.constant 7 : index
    %98 = vector.load %arg17[%c0_85, %c7_86] : memref<32x48xbf16, #tpu.memory_space<vmem>>, vector<32x24xbf16>
    %cst_87 = arith.constant dense<0.000000e+00> : vector<32x24xf32>
    %99 = tpu.matmul %97, %98, %cst_87 {dimension_numbers = #tpu.dot_dimension_numbers<[1], [0], [0], [1], [0, 0, 1, 1], [], []>} : vector<32x32xbf16>, vector<32x24xbf16>, vector<32x24xf32> -> vector<32x24xf32>
    %100 = arith.addf %95, %99 : vector<32x24xf32>
    %c3_88 = arith.constant 3 : index
    %c0_89 = arith.constant 0 : index
    %c0_90 = arith.constant 0 : index
    %101 = vector.load %arg10[%c3_88, %c0_89, %c0_90] : memref<54x32x32xbf16, #tpu.memory_space<vmem>>, vector<1x32x32xbf16>
    %102 = vector.shape_cast %101 : vector<1x32x32xbf16> to vector<32x32xbf16>
    %c0_91 = arith.constant 0 : index
    %c11 = arith.constant 11 : index
    %103 = vector.load %arg17[%c0_91, %c11] : memref<32x48xbf16, #tpu.memory_space<vmem>>, vector<32x24xbf16>
    %cst_92 = arith.constant dense<0.000000e+00> : vector<32x24xf32>
    %104 = tpu.matmul %102, %103, %cst_92 {dimension_numbers = #tpu.dot_dimension_numbers<[1], [0], [0], [1], [0, 0, 1, 1], [], []>} : vector<32x32xbf16>, vector<32x24xbf16>, vector<32x24xf32> -> vector<32x24xf32>
    %105 = arith.addf %100, %104 : vector<32x24xf32>
    %c4 = arith.constant 4 : index
    %c0_93 = arith.constant 0 : index
    %c0_94 = arith.constant 0 : index
    %106 = vector.load %arg10[%c4, %c0_93, %c0_94] : memref<54x32x32xbf16, #tpu.memory_space<vmem>>, vector<1x32x32xbf16>
    %107 = vector.shape_cast %106 : vector<1x32x32xbf16> to vector<32x32xbf16>
    %c0_95 = arith.constant 0 : index
    %c12_96 = arith.constant 12 : index
    %108 = vector.load %arg17[%c0_95, %c12_96] : memref<32x48xbf16, #tpu.memory_space<vmem>>, vector<32x24xbf16>
    %cst_97 = arith.constant dense<0.000000e+00> : vector<32x24xf32>
    %109 = tpu.matmul %107, %108, %cst_97 {dimension_numbers = #tpu.dot_dimension_numbers<[1], [0], [0], [1], [0, 0, 1, 1], [], []>} : vector<32x32xbf16>, vector<32x24xbf16>, vector<32x24xf32> -> vector<32x24xf32>
    %110 = arith.addf %105, %109 : vector<32x24xf32>
    %c5_98 = arith.constant 5 : index
    %c0_99 = arith.constant 0 : index
    %c0_100 = arith.constant 0 : index
    %111 = vector.load %arg10[%c5_98, %c0_99, %c0_100] : memref<54x32x32xbf16, #tpu.memory_space<vmem>>, vector<1x32x32xbf16>
    %112 = vector.shape_cast %111 : vector<1x32x32xbf16> to vector<32x32xbf16>
    %c0_101 = arith.constant 0 : index
    %c13 = arith.constant 13 : index
    %113 = vector.load %arg17[%c0_101, %c13] : memref<32x48xbf16, #tpu.memory_space<vmem>>, vector<32x24xbf16>
    %cst_102 = arith.constant dense<0.000000e+00> : vector<32x24xf32>
    %114 = tpu.matmul %112, %113, %cst_102 {dimension_numbers = #tpu.dot_dimension_numbers<[1], [0], [0], [1], [0, 0, 1, 1], [], []>} : vector<32x32xbf16>, vector<32x24xbf16>, vector<32x24xf32> -> vector<32x24xf32>
    %115 = arith.addf %110, %114 : vector<32x24xf32>
    %c6_103 = arith.constant 6 : index
    %c0_104 = arith.constant 0 : index
    %c0_105 = arith.constant 0 : index
    %116 = vector.load %arg10[%c6_103, %c0_104, %c0_105] : memref<54x32x32xbf16, #tpu.memory_space<vmem>>, vector<1x32x32xbf16>
    %117 = vector.shape_cast %116 : vector<1x32x32xbf16> to vector<32x32xbf16>
    %c0_106 = arith.constant 0 : index
    %c17 = arith.constant 17 : index
    %118 = vector.load %arg17[%c0_106, %c17] : memref<32x48xbf16, #tpu.memory_space<vmem>>, vector<32x24xbf16>
    %cst_107 = arith.constant dense<0.000000e+00> : vector<32x24xf32>
    %119 = tpu.matmul %117, %118, %cst_107 {dimension_numbers = #tpu.dot_dimension_numbers<[1], [0], [0], [1], [0, 0, 1, 1], [], []>} : vector<32x32xbf16>, vector<32x24xbf16>, vector<32x24xf32> -> vector<32x24xf32>
    %120 = arith.addf %115, %119 : vector<32x24xf32>
    %c7_108 = arith.constant 7 : index
    %c0_109 = arith.constant 0 : index
    %c0_110 = arith.constant 0 : index
    %121 = vector.load %arg10[%c7_108, %c0_109, %c0_110] : memref<54x32x32xbf16, #tpu.memory_space<vmem>>, vector<1x32x32xbf16>
    %122 = vector.shape_cast %121 : vector<1x32x32xbf16> to vector<32x32xbf16>
    %c0_111 = arith.constant 0 : index
    %c18 = arith.constant 18 : index
    %123 = vector.load %arg17[%c0_111, %c18] : memref<32x48xbf16, #tpu.memory_space<vmem>>, vector<32x24xbf16>
    %cst_112 = arith.constant dense<0.000000e+00> : vector<32x24xf32>
    %124 = tpu.matmul %122, %123, %cst_112 {dimension_numbers = #tpu.dot_dimension_numbers<[1], [0], [0], [1], [0, 0, 1, 1], [], []>} : vector<32x32xbf16>, vector<32x24xbf16>, vector<32x24xf32> -> vector<32x24xf32>
    %125 = arith.addf %120, %124 : vector<32x24xf32>
    %c8_113 = arith.constant 8 : index
    %c0_114 = arith.constant 0 : index
    %c0_115 = arith.constant 0 : index
    %126 = vector.load %arg10[%c8_113, %c0_114, %c0_115] : memref<54x32x32xbf16, #tpu.memory_space<vmem>>, vector<1x32x32xbf16>
    %127 = vector.shape_cast %126 : vector<1x32x32xbf16> to vector<32x32xbf16>
    %c0_116 = arith.constant 0 : index
    %c19 = arith.constant 19 : index
    %128 = vector.load %arg17[%c0_116, %c19] : memref<32x48xbf16, #tpu.memory_space<vmem>>, vector<32x24xbf16>
    %cst_117 = arith.constant dense<0.000000e+00> : vector<32x24xf32>
    %129 = tpu.matmul %127, %128, %cst_117 {dimension_numbers = #tpu.dot_dimension_numbers<[1], [0], [0], [1], [0, 0, 1, 1], [], []>} : vector<32x32xbf16>, vector<32x24xbf16>, vector<32x24xf32> -> vector<32x24xf32>
    %130 = arith.addf %125, %129 : vector<32x24xf32>
    %c0_118 = arith.constant 0 : index
    %c0_119 = arith.constant 0 : index
    %c0_120 = arith.constant 0 : index
    %131 = vector.load %arg11[%c0_118, %c0_119, %c0_120] : memref<6x32x1xf32, #tpu.memory_space<vmem>>, vector<1x32x1xf32>
    %132 = vector.shape_cast %131 : vector<1x32x1xf32> to vector<32x1xf32>
    %133 = vector.broadcast %132 : vector<32x1xf32> to vector<32x24xf32>
    %134 = arith.addf %130, %133 : vector<32x24xf32>
    %cst_121 = arith.constant 0.000000e+00 : f32
    %135 = vector.broadcast %cst_121 : f32 to vector<32x24xf32>
    %136 = arith.cmpf oge, %134, %135 : vector<32x24xf32>
    %c0_122 = arith.constant 0 : index
    %c0_123 = arith.constant 0 : index
    %c0_124 = arith.constant 0 : index
    %137 = vector.load %arg12[%c0_122, %c0_123, %c0_124] : memref<6x32x1xf32, #tpu.memory_space<vmem>>, vector<1x32x1xf32>
    %138 = vector.shape_cast %137 : vector<1x32x1xf32> to vector<32x1xf32>
    %139 = vector.broadcast %138 : vector<32x1xf32> to vector<32x24xf32>
    %140 = arith.mulf %139, %134 : vector<32x24xf32>
    %141 = arith.select %136, %134, %140 : vector<32x24xi1>, vector<32x24xf32>
    %142 = vector.broadcast %1 : vector<1x24xf32> to vector<32x24xf32>
    %143 = arith.mulf %141, %142 : vector<32x24xf32>
    %144 = arith.truncf %143 : vector<32x24xf32> to vector<32x24xbf16>
    %c0_125 = arith.constant 0 : index
    %c12_126 = arith.constant 12 : index
    %145 = vector.load %arg18[%c0_125, %c12_126] : memref<32x48xbf16, #tpu.memory_space<vmem>>, vector<32x24xbf16>
    tpu.vector_store %arg18[%c0_125, %c12_126], %144 {strides = array<i32>} : memref<32x48xbf16, #tpu.memory_space<vmem>>, vector<32x24xbf16>,
    %c9 = arith.constant 9 : index
    %c0_127 = arith.constant 0 : index
    %c0_128 = arith.constant 0 : index
    %146 = vector.load %arg10[%c9, %c0_127, %c0_128] : memref<54x32x32xbf16, #tpu.memory_space<vmem>>, vector<1x32x32xbf16>
    %147 = vector.shape_cast %146 : vector<1x32x32xbf16> to vector<32x32xbf16>
    %c0_129 = arith.constant 0 : index
    %c5_130 = arith.constant 5 : index
    %148 = vector.load %arg18[%c0_129, %c5_130] : memref<32x48xbf16, #tpu.memory_space<vmem>>, vector<32x24xbf16>
    %cst_131 = arith.constant dense<0.000000e+00> : vector<32x24xf32>
    %149 = tpu.matmul %147, %148, %cst_131 {dimension_numbers = #tpu.dot_dimension_numbers<[1], [0], [0], [1], [0, 0, 1, 1], [], []>} : vector<32x32xbf16>, vector<32x24xbf16>, vector<32x24xf32> -> vector<32x24xf32>
    %c10 = arith.constant 10 : index
    %c0_132 = arith.constant 0 : index
    %c0_133 = arith.constant 0 : index
    %150 = vector.load %arg10[%c10, %c0_132, %c0_133] : memref<54x32x32xbf16, #tpu.memory_space<vmem>>, vector<1x32x32xbf16>
    %151 = vector.shape_cast %150 : vector<1x32x32xbf16> to vector<32x32xbf16>
    %c0_134 = arith.constant 0 : index
    %c6_135 = arith.constant 6 : index
    %152 = vector.load %arg18[%c0_134, %c6_135] : memref<32x48xbf16, #tpu.memory_space<vmem>>, vector<32x24xbf16>
    %cst_136 = arith.constant dense<0.000000e+00> : vector<32x24xf32>
    %153 = tpu.matmul %151, %152, %cst_136 {dimension_numbers = #tpu.dot_dimension_numbers<[1], [0], [0], [1], [0, 0, 1, 1], [], []>} : vector<32x32xbf16>, vector<32x24xbf16>, vector<32x24xf32> -> vector<32x24xf32>
    %154 = arith.addf %149, %153 : vector<32x24xf32>
    %c11_137 = arith.constant 11 : index
    %c0_138 = arith.constant 0 : index
    %c0_139 = arith.constant 0 : index
    %155 = vector.load %arg10[%c11_137, %c0_138, %c0_139] : memref<54x32x32xbf16, #tpu.memory_space<vmem>>, vector<1x32x32xbf16>
    %156 = vector.shape_cast %155 : vector<1x32x32xbf16> to vector<32x32xbf16>
    %c0_140 = arith.constant 0 : index
    %c7_141 = arith.constant 7 : index
    %157 = vector.load %arg18[%c0_140, %c7_141] : memref<32x48xbf16, #tpu.memory_space<vmem>>, vector<32x24xbf16>
    %cst_142 = arith.constant dense<0.000000e+00> : vector<32x24xf32>
    %158 = tpu.matmul %156, %157, %cst_142 {dimension_numbers = #tpu.dot_dimension_numbers<[1], [0], [0], [1], [0, 0, 1, 1], [], []>} : vector<32x32xbf16>, vector<32x24xbf16>, vector<32x24xf32> -> vector<32x24xf32>
    %159 = arith.addf %154, %158 : vector<32x24xf32>
    %c12_143 = arith.constant 12 : index
    %c0_144 = arith.constant 0 : index
    %c0_145 = arith.constant 0 : index
    %160 = vector.load %arg10[%c12_143, %c0_144, %c0_145] : memref<54x32x32xbf16, #tpu.memory_space<vmem>>, vector<1x32x32xbf16>
    %161 = vector.shape_cast %160 : vector<1x32x32xbf16> to vector<32x32xbf16>
    %c0_146 = arith.constant 0 : index
    %c11_147 = arith.constant 11 : index
    %162 = vector.load %arg18[%c0_146, %c11_147] : memref<32x48xbf16, #tpu.memory_space<vmem>>, vector<32x24xbf16>
    %cst_148 = arith.constant dense<0.000000e+00> : vector<32x24xf32>
    %163 = tpu.matmul %161, %162, %cst_148 {dimension_numbers = #tpu.dot_dimension_numbers<[1], [0], [0], [1], [0, 0, 1, 1], [], []>} : vector<32x32xbf16>, vector<32x24xbf16>, vector<32x24xf32> -> vector<32x24xf32>
    %164 = arith.addf %159, %163 : vector<32x24xf32>
    %c13_149 = arith.constant 13 : index
    %c0_150 = arith.constant 0 : index
    %c0_151 = arith.constant 0 : index
    %165 = vector.load %arg10[%c13_149, %c0_150, %c0_151] : memref<54x32x32xbf16, #tpu.memory_space<vmem>>, vector<1x32x32xbf16>
    %166 = vector.shape_cast %165 : vector<1x32x32xbf16> to vector<32x32xbf16>
    %c0_152 = arith.constant 0 : index
    %c12_153 = arith.constant 12 : index
    %167 = vector.load %arg18[%c0_152, %c12_153] : memref<32x48xbf16, #tpu.memory_space<vmem>>, vector<32x24xbf16>
    %cst_154 = arith.constant dense<0.000000e+00> : vector<32x24xf32>
    %168 = tpu.matmul %166, %167, %cst_154 {dimension_numbers = #tpu.dot_dimension_numbers<[1], [0], [0], [1], [0, 0, 1, 1], [], []>} : vector<32x32xbf16>, vector<32x24xbf16>, vector<32x24xf32> -> vector<32x24xf32>
    %169 = arith.addf %164, %168 : vector<32x24xf32>
    %c14 = arith.constant 14 : index
    %c0_155 = arith.constant 0 : index
    %c0_156 = arith.constant 0 : index
    %170 = vector.load %arg10[%c14, %c0_155, %c0_156] : memref<54x32x32xbf16, #tpu.memory_space<vmem>>, vector<1x32x32xbf16>
    %171 = vector.shape_cast %170 : vector<1x32x32xbf16> to vector<32x32xbf16>
    %c0_157 = arith.constant 0 : index
    %c13_158 = arith.constant 13 : index
    %172 = vector.load %arg18[%c0_157, %c13_158] : memref<32x48xbf16, #tpu.memory_space<vmem>>, vector<32x24xbf16>
    %cst_159 = arith.constant dense<0.000000e+00> : vector<32x24xf32>
    %173 = tpu.matmul %171, %172, %cst_159 {dimension_numbers = #tpu.dot_dimension_numbers<[1], [0], [0], [1], [0, 0, 1, 1], [], []>} : vector<32x32xbf16>, vector<32x24xbf16>, vector<32x24xf32> -> vector<32x24xf32>
    %174 = arith.addf %169, %173 : vector<32x24xf32>
    %c15 = arith.constant 15 : index
    %c0_160 = arith.constant 0 : index
    %c0_161 = arith.constant 0 : index
    %175 = vector.load %arg10[%c15, %c0_160, %c0_161] : memref<54x32x32xbf16, #tpu.memory_space<vmem>>, vector<1x32x32xbf16>
    %176 = vector.shape_cast %175 : vector<1x32x32xbf16> to vector<32x32xbf16>
    %c0_162 = arith.constant 0 : index
    %c17_163 = arith.constant 17 : index
    %177 = vector.load %arg18[%c0_162, %c17_163] : memref<32x48xbf16, #tpu.memory_space<vmem>>, vector<32x24xbf16>
    %cst_164 = arith.constant dense<0.000000e+00> : vector<32x24xf32>
    %178 = tpu.matmul %176, %177, %cst_164 {dimension_numbers = #tpu.dot_dimension_numbers<[1], [0], [0], [1], [0, 0, 1, 1], [], []>} : vector<32x32xbf16>, vector<32x24xbf16>, vector<32x24xf32> -> vector<32x24xf32>
    %179 = arith.addf %174, %178 : vector<32x24xf32>
    %c16_165 = arith.constant 16 : index
    %c0_166 = arith.constant 0 : index
    %c0_167 = arith.constant 0 : index
    %180 = vector.load %arg10[%c16_165, %c0_166, %c0_167] : memref<54x32x32xbf16, #tpu.memory_space<vmem>>, vector<1x32x32xbf16>
    %181 = vector.shape_cast %180 : vector<1x32x32xbf16> to vector<32x32xbf16>
    %c0_168 = arith.constant 0 : index
    %c18_169 = arith.constant 18 : index
    %182 = vector.load %arg18[%c0_168, %c18_169] : memref<32x48xbf16, #tpu.memory_space<vmem>>, vector<32x24xbf16>
    %cst_170 = arith.constant dense<0.000000e+00> : vector<32x24xf32>
    %183 = tpu.matmul %181, %182, %cst_170 {dimension_numbers = #tpu.dot_dimension_numbers<[1], [0], [0], [1], [0, 0, 1, 1], [], []>} : vector<32x32xbf16>, vector<32x24xbf16>, vector<32x24xf32> -> vector<32x24xf32>
    %184 = arith.addf %179, %183 : vector<32x24xf32>
    %c17_171 = arith.constant 17 : index
    %c0_172 = arith.constant 0 : index
    %c0_173 = arith.constant 0 : index
    %185 = vector.load %arg10[%c17_171, %c0_172, %c0_173] : memref<54x32x32xbf16, #tpu.memory_space<vmem>>, vector<1x32x32xbf16>
    %186 = vector.shape_cast %185 : vector<1x32x32xbf16> to vector<32x32xbf16>
    %c0_174 = arith.constant 0 : index
    %c19_175 = arith.constant 19 : index
    %187 = vector.load %arg18[%c0_174, %c19_175] : memref<32x48xbf16, #tpu.memory_space<vmem>>, vector<32x24xbf16>
    %cst_176 = arith.constant dense<0.000000e+00> : vector<32x24xf32>
    %188 = tpu.matmul %186, %187, %cst_176 {dimension_numbers = #tpu.dot_dimension_numbers<[1], [0], [0], [1], [0, 0, 1, 1], [], []>} : vector<32x32xbf16>, vector<32x24xbf16>, vector<32x24xf32> -> vector<32x24xf32>
    %189 = arith.addf %184, %188 : vector<32x24xf32>
    %c1_177 = arith.constant 1 : index
    %c0_178 = arith.constant 0 : index
    %c0_179 = arith.constant 0 : index
    %190 = vector.load %arg11[%c1_177, %c0_178, %c0_179] : memref<6x32x1xf32, #tpu.memory_space<vmem>>, vector<1x32x1xf32>
    %191 = vector.shape_cast %190 : vector<1x32x1xf32> to vector<32x1xf32>
    %192 = vector.broadcast %191 : vector<32x1xf32> to vector<32x24xf32>
    %193 = arith.addf %189, %192 : vector<32x24xf32>
    %cst_180 = arith.constant 0.000000e+00 : f32
    %194 = vector.broadcast %cst_180 : f32 to vector<32x24xf32>
    %195 = arith.cmpf oge, %193, %194 : vector<32x24xf32>
    %c1_181 = arith.constant 1 : index
    %c0_182 = arith.constant 0 : index
    %c0_183 = arith.constant 0 : index
    %196 = vector.load %arg12[%c1_181, %c0_182, %c0_183] : memref<6x32x1xf32, #tpu.memory_space<vmem>>, vector<1x32x1xf32>
    %197 = vector.shape_cast %196 : vector<1x32x1xf32> to vector<32x1xf32>
    %198 = vector.broadcast %197 : vector<32x1xf32> to vector<32x24xf32>
    %199 = arith.mulf %198, %193 : vector<32x24xf32>
    %200 = arith.select %195, %193, %199 : vector<32x24xi1>, vector<32x24xf32>
    %201 = vector.broadcast %1 : vector<1x24xf32> to vector<32x24xf32>
    %202 = arith.mulf %200, %201 : vector<32x24xf32>
    %203 = arith.truncf %202 : vector<32x24xf32> to vector<32x24xbf16>
    %c0_184 = arith.constant 0 : index
    %c12_185 = arith.constant 12 : index
    %204 = vector.load %arg17[%c0_184, %c12_185] : memref<32x48xbf16, #tpu.memory_space<vmem>>, vector<32x24xbf16>
    tpu.vector_store %arg17[%c0_184, %c12_185], %203 {strides = array<i32>} : memref<32x48xbf16, #tpu.memory_space<vmem>>, vector<32x24xbf16>,
    %c18_186 = arith.constant 18 : index
    %c0_187 = arith.constant 0 : index
    %c0_188 = arith.constant 0 : index
    %205 = vector.load %arg10[%c18_186, %c0_187, %c0_188] : memref<54x32x32xbf16, #tpu.memory_space<vmem>>, vector<1x32x32xbf16>
    %206 = vector.shape_cast %205 : vector<1x32x32xbf16> to vector<32x32xbf16>
    %c0_189 = arith.constant 0 : index
    %c5_190 = arith.constant 5 : index
    %207 = vector.load %arg17[%c0_189, %c5_190] : memref<32x48xbf16, #tpu.memory_space<vmem>>, vector<32x24xbf16>
    %cst_191 = arith.constant dense<0.000000e+00> : vector<32x24xf32>
    %208 = tpu.matmul %206, %207, %cst_191 {dimension_numbers = #tpu.dot_dimension_numbers<[1], [0], [0], [1], [0, 0, 1, 1], [], []>} : vector<32x32xbf16>, vector<32x24xbf16>, vector<32x24xf32> -> vector<32x24xf32>
    %c19_192 = arith.constant 19 : index
    %c0_193 = arith.constant 0 : index
    %c0_194 = arith.constant 0 : index
    %209 = vector.load %arg10[%c19_192, %c0_193, %c0_194] : memref<54x32x32xbf16, #tpu.memory_space<vmem>>, vector<1x32x32xbf16>
    %210 = vector.shape_cast %209 : vector<1x32x32xbf16> to vector<32x32xbf16>
    %c0_195 = arith.constant 0 : index
    %c6_196 = arith.constant 6 : index
    %211 = vector.load %arg17[%c0_195, %c6_196] : memref<32x48xbf16, #tpu.memory_space<vmem>>, vector<32x24xbf16>
    %cst_197 = arith.constant dense<0.000000e+00> : vector<32x24xf32>
    %212 = tpu.matmul %210, %211, %cst_197 {dimension_numbers = #tpu.dot_dimension_numbers<[1], [0], [0], [1], [0, 0, 1, 1], [], []>} : vector<32x32xbf16>, vector<32x24xbf16>, vector<32x24xf32> -> vector<32x24xf32>
    %213 = arith.addf %208, %212 : vector<32x24xf32>
    %c20 = arith.constant 20 : index
    %c0_198 = arith.constant 0 : index
    %c0_199 = arith.constant 0 : index
    %214 = vector.load %arg10[%c20, %c0_198, %c0_199] : memref<54x32x32xbf16, #tpu.memory_space<vmem>>, vector<1x32x32xbf16>
    %215 = vector.shape_cast %214 : vector<1x32x32xbf16> to vector<32x32xbf16>
    %c0_200 = arith.constant 0 : index
    %c7_201 = arith.constant 7 : index
    %216 = vector.load %arg17[%c0_200, %c7_201] : memref<32x48xbf16, #tpu.memory_space<vmem>>, vector<32x24xbf16>
    %cst_202 = arith.constant dense<0.000000e+00> : vector<32x24xf32>
    %217 = tpu.matmul %215, %216, %cst_202 {dimension_numbers = #tpu.dot_dimension_numbers<[1], [0], [0], [1], [0, 0, 1, 1], [], []>} : vector<32x32xbf16>, vector<32x24xbf16>, vector<32x24xf32> -> vector<32x24xf32>
    %218 = arith.addf %213, %217 : vector<32x24xf32>
    %c21 = arith.constant 21 : index
    %c0_203 = arith.constant 0 : index
    %c0_204 = arith.constant 0 : index
    %219 = vector.load %arg10[%c21, %c0_203, %c0_204] : memref<54x32x32xbf16, #tpu.memory_space<vmem>>, vector<1x32x32xbf16>
    %220 = vector.shape_cast %219 : vector<1x32x32xbf16> to vector<32x32xbf16>
    %c0_205 = arith.constant 0 : index
    %c11_206 = arith.constant 11 : index
    %221 = vector.load %arg17[%c0_205, %c11_206] : memref<32x48xbf16, #tpu.memory_space<vmem>>, vector<32x24xbf16>
    %cst_207 = arith.constant dense<0.000000e+00> : vector<32x24xf32>
    %222 = tpu.matmul %220, %221, %cst_207 {dimension_numbers = #tpu.dot_dimension_numbers<[1], [0], [0], [1], [0, 0, 1, 1], [], []>} : vector<32x32xbf16>, vector<32x24xbf16>, vector<32x24xf32> -> vector<32x24xf32>
    %223 = arith.addf %218, %222 : vector<32x24xf32>
    %c22 = arith.constant 22 : index
    %c0_208 = arith.constant 0 : index
    %c0_209 = arith.constant 0 : index
    %224 = vector.load %arg10[%c22, %c0_208, %c0_209] : memref<54x32x32xbf16, #tpu.memory_space<vmem>>, vector<1x32x32xbf16>
    %225 = vector.shape_cast %224 : vector<1x32x32xbf16> to vector<32x32xbf16>
    %c0_210 = arith.constant 0 : index
    %c12_211 = arith.constant 12 : index
    %226 = vector.load %arg17[%c0_210, %c12_211] : memref<32x48xbf16, #tpu.memory_space<vmem>>, vector<32x24xbf16>
    %cst_212 = arith.constant dense<0.000000e+00> : vector<32x24xf32>
    %227 = tpu.matmul %225, %226, %cst_212 {dimension_numbers = #tpu.dot_dimension_numbers<[1], [0], [0], [1], [0, 0, 1, 1], [], []>} : vector<32x32xbf16>, vector<32x24xbf16>, vector<32x24xf32> -> vector<32x24xf32>
    %228 = arith.addf %223, %227 : vector<32x24xf32>
    %c23 = arith.constant 23 : index
    %c0_213 = arith.constant 0 : index
    %c0_214 = arith.constant 0 : index
    %229 = vector.load %arg10[%c23, %c0_213, %c0_214] : memref<54x32x32xbf16, #tpu.memory_space<vmem>>, vector<1x32x32xbf16>
    %230 = vector.shape_cast %229 : vector<1x32x32xbf16> to vector<32x32xbf16>
    %c0_215 = arith.constant 0 : index
    %c13_216 = arith.constant 13 : index
    %231 = vector.load %arg17[%c0_215, %c13_216] : memref<32x48xbf16, #tpu.memory_space<vmem>>, vector<32x24xbf16>
    %cst_217 = arith.constant dense<0.000000e+00> : vector<32x24xf32>
    %232 = tpu.matmul %230, %231, %cst_217 {dimension_numbers = #tpu.dot_dimension_numbers<[1], [0], [0], [1], [0, 0, 1, 1], [], []>} : vector<32x32xbf16>, vector<32x24xbf16>, vector<32x24xf32> -> vector<32x24xf32>
    %233 = arith.addf %228, %232 : vector<32x24xf32>
    %c24_218 = arith.constant 24 : index
    %c0_219 = arith.constant 0 : index
    %c0_220 = arith.constant 0 : index
    %234 = vector.load %arg10[%c24_218, %c0_219, %c0_220] : memref<54x32x32xbf16, #tpu.memory_space<vmem>>, vector<1x32x32xbf16>
    %235 = vector.shape_cast %234 : vector<1x32x32xbf16> to vector<32x32xbf16>
    %c0_221 = arith.constant 0 : index
    %c17_222 = arith.constant 17 : index
    %236 = vector.load %arg17[%c0_221, %c17_222] : memref<32x48xbf16, #tpu.memory_space<vmem>>, vector<32x24xbf16>
    %cst_223 = arith.constant dense<0.000000e+00> : vector<32x24xf32>
    %237 = tpu.matmul %235, %236, %cst_223 {dimension_numbers = #tpu.dot_dimension_numbers<[1], [0], [0], [1], [0, 0, 1, 1], [], []>} : vector<32x32xbf16>, vector<32x24xbf16>, vector<32x24xf32> -> vector<32x24xf32>
    %238 = arith.addf %233, %237 : vector<32x24xf32>
    %c25 = arith.constant 25 : index
    %c0_224 = arith.constant 0 : index
    %c0_225 = arith.constant 0 : index
    %239 = vector.load %arg10[%c25, %c0_224, %c0_225] : memref<54x32x32xbf16, #tpu.memory_space<vmem>>, vector<1x32x32xbf16>
    %240 = vector.shape_cast %239 : vector<1x32x32xbf16> to vector<32x32xbf16>
    %c0_226 = arith.constant 0 : index
    %c18_227 = arith.constant 18 : index
    %241 = vector.load %arg17[%c0_226, %c18_227] : memref<32x48xbf16, #tpu.memory_space<vmem>>, vector<32x24xbf16>
    %cst_228 = arith.constant dense<0.000000e+00> : vector<32x24xf32>
    %242 = tpu.matmul %240, %241, %cst_228 {dimension_numbers = #tpu.dot_dimension_numbers<[1], [0], [0], [1], [0, 0, 1, 1], [], []>} : vector<32x32xbf16>, vector<32x24xbf16>, vector<32x24xf32> -> vector<32x24xf32>
    %243 = arith.addf %238, %242 : vector<32x24xf32>
    %c26 = arith.constant 26 : index
    %c0_229 = arith.constant 0 : index
    %c0_230 = arith.constant 0 : index
    %244 = vector.load %arg10[%c26, %c0_229, %c0_230] : memref<54x32x32xbf16, #tpu.memory_space<vmem>>, vector<1x32x32xbf16>
    %245 = vector.shape_cast %244 : vector<1x32x32xbf16> to vector<32x32xbf16>
    %c0_231 = arith.constant 0 : index
    %c19_232 = arith.constant 19 : index
    %246 = vector.load %arg17[%c0_231, %c19_232] : memref<32x48xbf16, #tpu.memory_space<vmem>>, vector<32x24xbf16>
    %cst_233 = arith.constant dense<0.000000e+00> : vector<32x24xf32>
    %247 = tpu.matmul %245, %246, %cst_233 {dimension_numbers = #tpu.dot_dimension_numbers<[1], [0], [0], [1], [0, 0, 1, 1], [], []>} : vector<32x32xbf16>, vector<32x24xbf16>, vector<32x24xf32> -> vector<32x24xf32>
    %248 = arith.addf %243, %247 : vector<32x24xf32>
    %c2_234 = arith.constant 2 : index
    %c0_235 = arith.constant 0 : index
    %c0_236 = arith.constant 0 : index
    %249 = vector.load %arg11[%c2_234, %c0_235, %c0_236] : memref<6x32x1xf32, #tpu.memory_space<vmem>>, vector<1x32x1xf32>
    %250 = vector.shape_cast %249 : vector<1x32x1xf32> to vector<32x1xf32>
    %251 = vector.broadcast %250 : vector<32x1xf32> to vector<32x24xf32>
    %252 = arith.addf %248, %251 : vector<32x24xf32>
    %cst_237 = arith.constant 0.000000e+00 : f32
    %253 = vector.broadcast %cst_237 : f32 to vector<32x24xf32>
    %254 = arith.cmpf oge, %252, %253 : vector<32x24xf32>
    %c2_238 = arith.constant 2 : index
    %c0_239 = arith.constant 0 : index
    %c0_240 = arith.constant 0 : index
    %255 = vector.load %arg12[%c2_238, %c0_239, %c0_240] : memref<6x32x1xf32, #tpu.memory_space<vmem>>, vector<1x32x1xf32>
    %256 = vector.shape_cast %255 : vector<1x32x1xf32> to vector<32x1xf32>
    %257 = vector.broadcast %256 : vector<32x1xf32> to vector<32x24xf32>
    %258 = arith.mulf %257, %252 : vector<32x24xf32>
    %259 = arith.select %254, %252, %258 : vector<32x24xi1>, vector<32x24xf32>
    %260 = vector.broadcast %1 : vector<1x24xf32> to vector<32x24xf32>
    %261 = arith.mulf %259, %260 : vector<32x24xf32>
    %262 = arith.truncf %261 : vector<32x24xf32> to vector<32x24xbf16>
    %c0_241 = arith.constant 0 : index
    %c12_242 = arith.constant 12 : index
    %263 = vector.load %arg18[%c0_241, %c12_242] : memref<32x48xbf16, #tpu.memory_space<vmem>>, vector<32x24xbf16>
    tpu.vector_store %arg18[%c0_241, %c12_242], %262 {strides = array<i32>} : memref<32x48xbf16, #tpu.memory_space<vmem>>, vector<32x24xbf16>,
    %c27 = arith.constant 27 : index
    %c0_243 = arith.constant 0 : index
    %c0_244 = arith.constant 0 : index
    %264 = vector.load %arg10[%c27, %c0_243, %c0_244] : memref<54x32x32xbf16, #tpu.memory_space<vmem>>, vector<1x32x32xbf16>
    %265 = vector.shape_cast %264 : vector<1x32x32xbf16> to vector<32x32xbf16>
    %c0_245 = arith.constant 0 : index
    %c5_246 = arith.constant 5 : index
    %266 = vector.load %arg18[%c0_245, %c5_246] : memref<32x48xbf16, #tpu.memory_space<vmem>>, vector<32x24xbf16>
    %cst_247 = arith.constant dense<0.000000e+00> : vector<32x24xf32>
    %267 = tpu.matmul %265, %266, %cst_247 {dimension_numbers = #tpu.dot_dimension_numbers<[1], [0], [0], [1], [0, 0, 1, 1], [], []>} : vector<32x32xbf16>, vector<32x24xbf16>, vector<32x24xf32> -> vector<32x24xf32>
    %c28 = arith.constant 28 : index
    %c0_248 = arith.constant 0 : index
    %c0_249 = arith.constant 0 : index
    %268 = vector.load %arg10[%c28, %c0_248, %c0_249] : memref<54x32x32xbf16, #tpu.memory_space<vmem>>, vector<1x32x32xbf16>
    %269 = vector.shape_cast %268 : vector<1x32x32xbf16> to vector<32x32xbf16>
    %c0_250 = arith.constant 0 : index
    %c6_251 = arith.constant 6 : index
    %270 = vector.load %arg18[%c0_250, %c6_251] : memref<32x48xbf16, #tpu.memory_space<vmem>>, vector<32x24xbf16>
    %cst_252 = arith.constant dense<0.000000e+00> : vector<32x24xf32>
    %271 = tpu.matmul %269, %270, %cst_252 {dimension_numbers = #tpu.dot_dimension_numbers<[1], [0], [0], [1], [0, 0, 1, 1], [], []>} : vector<32x32xbf16>, vector<32x24xbf16>, vector<32x24xf32> -> vector<32x24xf32>
    %272 = arith.addf %267, %271 : vector<32x24xf32>
    %c29 = arith.constant 29 : index
    %c0_253 = arith.constant 0 : index
    %c0_254 = arith.constant 0 : index
    %273 = vector.load %arg10[%c29, %c0_253, %c0_254] : memref<54x32x32xbf16, #tpu.memory_space<vmem>>, vector<1x32x32xbf16>
    %274 = vector.shape_cast %273 : vector<1x32x32xbf16> to vector<32x32xbf16>
    %c0_255 = arith.constant 0 : index
    %c7_256 = arith.constant 7 : index
    %275 = vector.load %arg18[%c0_255, %c7_256] : memref<32x48xbf16, #tpu.memory_space<vmem>>, vector<32x24xbf16>
    %cst_257 = arith.constant dense<0.000000e+00> : vector<32x24xf32>
    %276 = tpu.matmul %274, %275, %cst_257 {dimension_numbers = #tpu.dot_dimension_numbers<[1], [0], [0], [1], [0, 0, 1, 1], [], []>} : vector<32x32xbf16>, vector<32x24xbf16>, vector<32x24xf32> -> vector<32x24xf32>
    %277 = arith.addf %272, %276 : vector<32x24xf32>
    %c30 = arith.constant 30 : index
    %c0_258 = arith.constant 0 : index
    %c0_259 = arith.constant 0 : index
    %278 = vector.load %arg10[%c30, %c0_258, %c0_259] : memref<54x32x32xbf16, #tpu.memory_space<vmem>>, vector<1x32x32xbf16>
    %279 = vector.shape_cast %278 : vector<1x32x32xbf16> to vector<32x32xbf16>
    %c0_260 = arith.constant 0 : index
    %c11_261 = arith.constant 11 : index
    %280 = vector.load %arg18[%c0_260, %c11_261] : memref<32x48xbf16, #tpu.memory_space<vmem>>, vector<32x24xbf16>
    %cst_262 = arith.constant dense<0.000000e+00> : vector<32x24xf32>
    %281 = tpu.matmul %279, %280, %cst_262 {dimension_numbers = #tpu.dot_dimension_numbers<[1], [0], [0], [1], [0, 0, 1, 1], [], []>} : vector<32x32xbf16>, vector<32x24xbf16>, vector<32x24xf32> -> vector<32x24xf32>
    %282 = arith.addf %277, %281 : vector<32x24xf32>
    %c31 = arith.constant 31 : index
    %c0_263 = arith.constant 0 : index
    %c0_264 = arith.constant 0 : index
    %283 = vector.load %arg10[%c31, %c0_263, %c0_264] : memref<54x32x32xbf16, #tpu.memory_space<vmem>>, vector<1x32x32xbf16>
    %284 = vector.shape_cast %283 : vector<1x32x32xbf16> to vector<32x32xbf16>
    %c0_265 = arith.constant 0 : index
    %c12_266 = arith.constant 12 : index
    %285 = vector.load %arg18[%c0_265, %c12_266] : memref<32x48xbf16, #tpu.memory_space<vmem>>, vector<32x24xbf16>
    %cst_267 = arith.constant dense<0.000000e+00> : vector<32x24xf32>
    %286 = tpu.matmul %284, %285, %cst_267 {dimension_numbers = #tpu.dot_dimension_numbers<[1], [0], [0], [1], [0, 0, 1, 1], [], []>} : vector<32x32xbf16>, vector<32x24xbf16>, vector<32x24xf32> -> vector<32x24xf32>
    %287 = arith.addf %282, %286 : vector<32x24xf32>
    %c32_268 = arith.constant 32 : index
    %c0_269 = arith.constant 0 : index
    %c0_270 = arith.constant 0 : index
    %288 = vector.load %arg10[%c32_268, %c0_269, %c0_270] : memref<54x32x32xbf16, #tpu.memory_space<vmem>>, vector<1x32x32xbf16>
    %289 = vector.shape_cast %288 : vector<1x32x32xbf16> to vector<32x32xbf16>
    %c0_271 = arith.constant 0 : index
    %c13_272 = arith.constant 13 : index
    %290 = vector.load %arg18[%c0_271, %c13_272] : memref<32x48xbf16, #tpu.memory_space<vmem>>, vector<32x24xbf16>
    %cst_273 = arith.constant dense<0.000000e+00> : vector<32x24xf32>
    %291 = tpu.matmul %289, %290, %cst_273 {dimension_numbers = #tpu.dot_dimension_numbers<[1], [0], [0], [1], [0, 0, 1, 1], [], []>} : vector<32x32xbf16>, vector<32x24xbf16>, vector<32x24xf32> -> vector<32x24xf32>
    %292 = arith.addf %287, %291 : vector<32x24xf32>
    %c33 = arith.constant 33 : index
    %c0_274 = arith.constant 0 : index
    %c0_275 = arith.constant 0 : index
    %293 = vector.load %arg10[%c33, %c0_274, %c0_275] : memref<54x32x32xbf16, #tpu.memory_space<vmem>>, vector<1x32x32xbf16>
    %294 = vector.shape_cast %293 : vector<1x32x32xbf16> to vector<32x32xbf16>
    %c0_276 = arith.constant 0 : index
    %c17_277 = arith.constant 17 : index
    %295 = vector.load %arg18[%c0_276, %c17_277] : memref<32x48xbf16, #tpu.memory_space<vmem>>, vector<32x24xbf16>
    %cst_278 = arith.constant dense<0.000000e+00> : vector<32x24xf32>
    %296 = tpu.matmul %294, %295, %cst_278 {dimension_numbers = #tpu.dot_dimension_numbers<[1], [0], [0], [1], [0, 0, 1, 1], [], []>} : vector<32x32xbf16>, vector<32x24xbf16>, vector<32x24xf32> -> vector<32x24xf32>
    %297 = arith.addf %292, %296 : vector<32x24xf32>
    %c34 = arith.constant 34 : index
    %c0_279 = arith.constant 0 : index
    %c0_280 = arith.constant 0 : index
    %298 = vector.load %arg10[%c34, %c0_279, %c0_280] : memref<54x32x32xbf16, #tpu.memory_space<vmem>>, vector<1x32x32xbf16>
    %299 = vector.shape_cast %298 : vector<1x32x32xbf16> to vector<32x32xbf16>
    %c0_281 = arith.constant 0 : index
    %c18_282 = arith.constant 18 : index
    %300 = vector.load %arg18[%c0_281, %c18_282] : memref<32x48xbf16, #tpu.memory_space<vmem>>, vector<32x24xbf16>
    %cst_283 = arith.constant dense<0.000000e+00> : vector<32x24xf32>
    %301 = tpu.matmul %299, %300, %cst_283 {dimension_numbers = #tpu.dot_dimension_numbers<[1], [0], [0], [1], [0, 0, 1, 1], [], []>} : vector<32x32xbf16>, vector<32x24xbf16>, vector<32x24xf32> -> vector<32x24xf32>
    %302 = arith.addf %297, %301 : vector<32x24xf32>
    %c35 = arith.constant 35 : index
    %c0_284 = arith.constant 0 : index
    %c0_285 = arith.constant 0 : index
    %303 = vector.load %arg10[%c35, %c0_284, %c0_285] : memref<54x32x32xbf16, #tpu.memory_space<vmem>>, vector<1x32x32xbf16>
    %304 = vector.shape_cast %303 : vector<1x32x32xbf16> to vector<32x32xbf16>
    %c0_286 = arith.constant 0 : index
    %c19_287 = arith.constant 19 : index
    %305 = vector.load %arg18[%c0_286, %c19_287] : memref<32x48xbf16, #tpu.memory_space<vmem>>, vector<32x24xbf16>
    %cst_288 = arith.constant dense<0.000000e+00> : vector<32x24xf32>
    %306 = tpu.matmul %304, %305, %cst_288 {dimension_numbers = #tpu.dot_dimension_numbers<[1], [0], [0], [1], [0, 0, 1, 1], [], []>} : vector<32x32xbf16>, vector<32x24xbf16>, vector<32x24xf32> -> vector<32x24xf32>
    %307 = arith.addf %302, %306 : vector<32x24xf32>
    %c3_289 = arith.constant 3 : index
    %c0_290 = arith.constant 0 : index
    %c0_291 = arith.constant 0 : index
    %308 = vector.load %arg11[%c3_289, %c0_290, %c0_291] : memref<6x32x1xf32, #tpu.memory_space<vmem>>, vector<1x32x1xf32>
    %309 = vector.shape_cast %308 : vector<1x32x1xf32> to vector<32x1xf32>
    %310 = vector.broadcast %309 : vector<32x1xf32> to vector<32x24xf32>
    %311 = arith.addf %307, %310 : vector<32x24xf32>
    %cst_292 = arith.constant 0.000000e+00 : f32
    %312 = vector.broadcast %cst_292 : f32 to vector<32x24xf32>
    %313 = arith.cmpf oge, %311, %312 : vector<32x24xf32>
    %c3_293 = arith.constant 3 : index
    %c0_294 = arith.constant 0 : index
    %c0_295 = arith.constant 0 : index
    %314 = vector.load %arg12[%c3_293, %c0_294, %c0_295] : memref<6x32x1xf32, #tpu.memory_space<vmem>>, vector<1x32x1xf32>
    %315 = vector.shape_cast %314 : vector<1x32x1xf32> to vector<32x1xf32>
    %316 = vector.broadcast %315 : vector<32x1xf32> to vector<32x24xf32>
    %317 = arith.mulf %316, %311 : vector<32x24xf32>
    %318 = arith.select %313, %311, %317 : vector<32x24xi1>, vector<32x24xf32>
    %319 = vector.broadcast %1 : vector<1x24xf32> to vector<32x24xf32>
    %320 = arith.mulf %318, %319 : vector<32x24xf32>
    %321 = arith.truncf %320 : vector<32x24xf32> to vector<32x24xbf16>
    %c0_296 = arith.constant 0 : index
    %c12_297 = arith.constant 12 : index
    %322 = vector.load %arg17[%c0_296, %c12_297] : memref<32x48xbf16, #tpu.memory_space<vmem>>, vector<32x24xbf16>
    tpu.vector_store %arg17[%c0_296, %c12_297], %321 {strides = array<i32>} : memref<32x48xbf16, #tpu.memory_space<vmem>>, vector<32x24xbf16>,
    %c36_298 = arith.constant 36 : index
    %c0_299 = arith.constant 0 : index
    %c0_300 = arith.constant 0 : index
    %323 = vector.load %arg10[%c36_298, %c0_299, %c0_300] : memref<54x32x32xbf16, #tpu.memory_space<vmem>>, vector<1x32x32xbf16>
    %324 = vector.shape_cast %323 : vector<1x32x32xbf16> to vector<32x32xbf16>
    %c0_301 = arith.constant 0 : index
    %c5_302 = arith.constant 5 : index
    %325 = vector.load %arg17[%c0_301, %c5_302] : memref<32x48xbf16, #tpu.memory_space<vmem>>, vector<32x24xbf16>
    %cst_303 = arith.constant dense<0.000000e+00> : vector<32x24xf32>
    %326 = tpu.matmul %324, %325, %cst_303 {dimension_numbers = #tpu.dot_dimension_numbers<[1], [0], [0], [1], [0, 0, 1, 1], [], []>} : vector<32x32xbf16>, vector<32x24xbf16>, vector<32x24xf32> -> vector<32x24xf32>
    %c37 = arith.constant 37 : index
    %c0_304 = arith.constant 0 : index
    %c0_305 = arith.constant 0 : index
    %327 = vector.load %arg10[%c37, %c0_304, %c0_305] : memref<54x32x32xbf16, #tpu.memory_space<vmem>>, vector<1x32x32xbf16>
    %328 = vector.shape_cast %327 : vector<1x32x32xbf16> to vector<32x32xbf16>
    %c0_306 = arith.constant 0 : index
    %c6_307 = arith.constant 6 : index
    %329 = vector.load %arg17[%c0_306, %c6_307] : memref<32x48xbf16, #tpu.memory_space<vmem>>, vector<32x24xbf16>
    %cst_308 = arith.constant dense<0.000000e+00> : vector<32x24xf32>
    %330 = tpu.matmul %328, %329, %cst_308 {dimension_numbers = #tpu.dot_dimension_numbers<[1], [0], [0], [1], [0, 0, 1, 1], [], []>} : vector<32x32xbf16>, vector<32x24xbf16>, vector<32x24xf32> -> vector<32x24xf32>
    %331 = arith.addf %326, %330 : vector<32x24xf32>
    %c38 = arith.constant 38 : index
    %c0_309 = arith.constant 0 : index
    %c0_310 = arith.constant 0 : index
    %332 = vector.load %arg10[%c38, %c0_309, %c0_310] : memref<54x32x32xbf16, #tpu.memory_space<vmem>>, vector<1x32x32xbf16>
    %333 = vector.shape_cast %332 : vector<1x32x32xbf16> to vector<32x32xbf16>
    %c0_311 = arith.constant 0 : index
    %c7_312 = arith.constant 7 : index
    %334 = vector.load %arg17[%c0_311, %c7_312] : memref<32x48xbf16, #tpu.memory_space<vmem>>, vector<32x24xbf16>
    %cst_313 = arith.constant dense<0.000000e+00> : vector<32x24xf32>
    %335 = tpu.matmul %333, %334, %cst_313 {dimension_numbers = #tpu.dot_dimension_numbers<[1], [0], [0], [1], [0, 0, 1, 1], [], []>} : vector<32x32xbf16>, vector<32x24xbf16>, vector<32x24xf32> -> vector<32x24xf32>
    %336 = arith.addf %331, %335 : vector<32x24xf32>
    %c39 = arith.constant 39 : index
    %c0_314 = arith.constant 0 : index
    %c0_315 = arith.constant 0 : index
    %337 = vector.load %arg10[%c39, %c0_314, %c0_315] : memref<54x32x32xbf16, #tpu.memory_space<vmem>>, vector<1x32x32xbf16>
    %338 = vector.shape_cast %337 : vector<1x32x32xbf16> to vector<32x32xbf16>
    %c0_316 = arith.constant 0 : index
    %c11_317 = arith.constant 11 : index
    %339 = vector.load %arg17[%c0_316, %c11_317] : memref<32x48xbf16, #tpu.memory_space<vmem>>, vector<32x24xbf16>
    %cst_318 = arith.constant dense<0.000000e+00> : vector<32x24xf32>
    %340 = tpu.matmul %338, %339, %cst_318 {dimension_numbers = #tpu.dot_dimension_numbers<[1], [0], [0], [1], [0, 0, 1, 1], [], []>} : vector<32x32xbf16>, vector<32x24xbf16>, vector<32x24xf32> -> vector<32x24xf32>
    %341 = arith.addf %336, %340 : vector<32x24xf32>
    %c40 = arith.constant 40 : index
    %c0_319 = arith.constant 0 : index
    %c0_320 = arith.constant 0 : index
    %342 = vector.load %arg10[%c40, %c0_319, %c0_320] : memref<54x32x32xbf16, #tpu.memory_space<vmem>>, vector<1x32x32xbf16>
    %343 = vector.shape_cast %342 : vector<1x32x32xbf16> to vector<32x32xbf16>
    %c0_321 = arith.constant 0 : index
    %c12_322 = arith.constant 12 : index
    %344 = vector.load %arg17[%c0_321, %c12_322] : memref<32x48xbf16, #tpu.memory_space<vmem>>, vector<32x24xbf16>
    %cst_323 = arith.constant dense<0.000000e+00> : vector<32x24xf32>
    %345 = tpu.matmul %343, %344, %cst_323 {dimension_numbers = #tpu.dot_dimension_numbers<[1], [0], [0], [1], [0, 0, 1, 1], [], []>} : vector<32x32xbf16>, vector<32x24xbf16>, vector<32x24xf32> -> vector<32x24xf32>
    %346 = arith.addf %341, %345 : vector<32x24xf32>
    %c41 = arith.constant 41 : index
    %c0_324 = arith.constant 0 : index
    %c0_325 = arith.constant 0 : index
    %347 = vector.load %arg10[%c41, %c0_324, %c0_325] : memref<54x32x32xbf16, #tpu.memory_space<vmem>>, vector<1x32x32xbf16>
    %348 = vector.shape_cast %347 : vector<1x32x32xbf16> to vector<32x32xbf16>
    %c0_326 = arith.constant 0 : index
    %c13_327 = arith.constant 13 : index
    %349 = vector.load %arg17[%c0_326, %c13_327] : memref<32x48xbf16, #tpu.memory_space<vmem>>, vector<32x24xbf16>
    %cst_328 = arith.constant dense<0.000000e+00> : vector<32x24xf32>
    %350 = tpu.matmul %348, %349, %cst_328 {dimension_numbers = #tpu.dot_dimension_numbers<[1], [0], [0], [1], [0, 0, 1, 1], [], []>} : vector<32x32xbf16>, vector<32x24xbf16>, vector<32x24xf32> -> vector<32x24xf32>
    %351 = arith.addf %346, %350 : vector<32x24xf32>
    %c42 = arith.constant 42 : index
    %c0_329 = arith.constant 0 : index
    %c0_330 = arith.constant 0 : index
    %352 = vector.load %arg10[%c42, %c0_329, %c0_330] : memref<54x32x32xbf16, #tpu.memory_space<vmem>>, vector<1x32x32xbf16>
    %353 = vector.shape_cast %352 : vector<1x32x32xbf16> to vector<32x32xbf16>
    %c0_331 = arith.constant 0 : index
    %c17_332 = arith.constant 17 : index
    %354 = vector.load %arg17[%c0_331, %c17_332] : memref<32x48xbf16, #tpu.memory_space<vmem>>, vector<32x24xbf16>
    %cst_333 = arith.constant dense<0.000000e+00> : vector<32x24xf32>
    %355 = tpu.matmul %353, %354, %cst_333 {dimension_numbers = #tpu.dot_dimension_numbers<[1], [0], [0], [1], [0, 0, 1, 1], [], []>} : vector<32x32xbf16>, vector<32x24xbf16>, vector<32x24xf32> -> vector<32x24xf32>
    %356 = arith.addf %351, %355 : vector<32x24xf32>
    %c43 = arith.constant 43 : index
    %c0_334 = arith.constant 0 : index
    %c0_335 = arith.constant 0 : index
    %357 = vector.load %arg10[%c43, %c0_334, %c0_335] : memref<54x32x32xbf16, #tpu.memory_space<vmem>>, vector<1x32x32xbf16>
    %358 = vector.shape_cast %357 : vector<1x32x32xbf16> to vector<32x32xbf16>
    %c0_336 = arith.constant 0 : index
    %c18_337 = arith.constant 18 : index
    %359 = vector.load %arg17[%c0_336, %c18_337] : memref<32x48xbf16, #tpu.memory_space<vmem>>, vector<32x24xbf16>
    %cst_338 = arith.constant dense<0.000000e+00> : vector<32x24xf32>
    %360 = tpu.matmul %358, %359, %cst_338 {dimension_numbers = #tpu.dot_dimension_numbers<[1], [0], [0], [1], [0, 0, 1, 1], [], []>} : vector<32x32xbf16>, vector<32x24xbf16>, vector<32x24xf32> -> vector<32x24xf32>
    %361 = arith.addf %356, %360 : vector<32x24xf32>
    %c44 = arith.constant 44 : index
    %c0_339 = arith.constant 0 : index
    %c0_340 = arith.constant 0 : index
    %362 = vector.load %arg10[%c44, %c0_339, %c0_340] : memref<54x32x32xbf16, #tpu.memory_space<vmem>>, vector<1x32x32xbf16>
    %363 = vector.shape_cast %362 : vector<1x32x32xbf16> to vector<32x32xbf16>
    %c0_341 = arith.constant 0 : index
    %c19_342 = arith.constant 19 : index
    %364 = vector.load %arg17[%c0_341, %c19_342] : memref<32x48xbf16, #tpu.memory_space<vmem>>, vector<32x24xbf16>
    %cst_343 = arith.constant dense<0.000000e+00> : vector<32x24xf32>
    %365 = tpu.matmul %363, %364, %cst_343 {dimension_numbers = #tpu.dot_dimension_numbers<[1], [0], [0], [1], [0, 0, 1, 1], [], []>} : vector<32x32xbf16>, vector<32x24xbf16>, vector<32x24xf32> -> vector<32x24xf32>
    %366 = arith.addf %361, %365 : vector<32x24xf32>
    %c4_344 = arith.constant 4 : index
    %c0_345 = arith.constant 0 : index
    %c0_346 = arith.constant 0 : index
    %367 = vector.load %arg11[%c4_344, %c0_345, %c0_346] : memref<6x32x1xf32, #tpu.memory_space<vmem>>, vector<1x32x1xf32>
    %368 = vector.shape_cast %367 : vector<1x32x1xf32> to vector<32x1xf32>
    %369 = vector.broadcast %368 : vector<32x1xf32> to vector<32x24xf32>
    %370 = arith.addf %366, %369 : vector<32x24xf32>
    %cst_347 = arith.constant 0.000000e+00 : f32
    %371 = vector.broadcast %cst_347 : f32 to vector<32x24xf32>
    %372 = arith.cmpf oge, %370, %371 : vector<32x24xf32>
    %c4_348 = arith.constant 4 : index
    %c0_349 = arith.constant 0 : index
    %c0_350 = arith.constant 0 : index
    %373 = vector.load %arg12[%c4_348, %c0_349, %c0_350] : memref<6x32x1xf32, #tpu.memory_space<vmem>>, vector<1x32x1xf32>
    %374 = vector.shape_cast %373 : vector<1x32x1xf32> to vector<32x1xf32>
    %375 = vector.broadcast %374 : vector<32x1xf32> to vector<32x24xf32>
    %376 = arith.mulf %375, %370 : vector<32x24xf32>
    %377 = arith.select %372, %370, %376 : vector<32x24xi1>, vector<32x24xf32>
    %378 = vector.broadcast %1 : vector<1x24xf32> to vector<32x24xf32>
    %379 = arith.mulf %377, %378 : vector<32x24xf32>
    %380 = arith.truncf %379 : vector<32x24xf32> to vector<32x24xbf16>
    %c0_351 = arith.constant 0 : index
    %c12_352 = arith.constant 12 : index
    %381 = vector.load %arg18[%c0_351, %c12_352] : memref<32x48xbf16, #tpu.memory_space<vmem>>, vector<32x24xbf16>
    tpu.vector_store %arg18[%c0_351, %c12_352], %380 {strides = array<i32>} : memref<32x48xbf16, #tpu.memory_space<vmem>>, vector<32x24xbf16>,
    %c45 = arith.constant 45 : index
    %c0_353 = arith.constant 0 : index
    %c0_354 = arith.constant 0 : index
    %382 = vector.load %arg10[%c45, %c0_353, %c0_354] : memref<54x32x32xbf16, #tpu.memory_space<vmem>>, vector<1x32x32xbf16>
    %383 = vector.shape_cast %382 : vector<1x32x32xbf16> to vector<32x32xbf16>
    %c0_355 = arith.constant 0 : index
    %c5_356 = arith.constant 5 : index
    %384 = vector.load %arg18[%c0_355, %c5_356] : memref<32x48xbf16, #tpu.memory_space<vmem>>, vector<32x24xbf16>
    %cst_357 = arith.constant dense<0.000000e+00> : vector<32x24xf32>
    %385 = tpu.matmul %383, %384, %cst_357 {dimension_numbers = #tpu.dot_dimension_numbers<[1], [0], [0], [1], [0, 0, 1, 1], [], []>} : vector<32x32xbf16>, vector<32x24xbf16>, vector<32x24xf32> -> vector<32x24xf32>
    %c46 = arith.constant 46 : index
    %c0_358 = arith.constant 0 : index
    %c0_359 = arith.constant 0 : index
    %386 = vector.load %arg10[%c46, %c0_358, %c0_359] : memref<54x32x32xbf16, #tpu.memory_space<vmem>>, vector<1x32x32xbf16>
    %387 = vector.shape_cast %386 : vector<1x32x32xbf16> to vector<32x32xbf16>
    %c0_360 = arith.constant 0 : index
    %c6_361 = arith.constant 6 : index
    %388 = vector.load %arg18[%c0_360, %c6_361] : memref<32x48xbf16, #tpu.memory_space<vmem>>, vector<32x24xbf16>
    %cst_362 = arith.constant dense<0.000000e+00> : vector<32x24xf32>
    %389 = tpu.matmul %387, %388, %cst_362 {dimension_numbers = #tpu.dot_dimension_numbers<[1], [0], [0], [1], [0, 0, 1, 1], [], []>} : vector<32x32xbf16>, vector<32x24xbf16>, vector<32x24xf32> -> vector<32x24xf32>
    %390 = arith.addf %385, %389 : vector<32x24xf32>
    %c47 = arith.constant 47 : index
    %c0_363 = arith.constant 0 : index
    %c0_364 = arith.constant 0 : index
    %391 = vector.load %arg10[%c47, %c0_363, %c0_364] : memref<54x32x32xbf16, #tpu.memory_space<vmem>>, vector<1x32x32xbf16>
    %392 = vector.shape_cast %391 : vector<1x32x32xbf16> to vector<32x32xbf16>
    %c0_365 = arith.constant 0 : index
    %c7_366 = arith.constant 7 : index
    %393 = vector.load %arg18[%c0_365, %c7_366] : memref<32x48xbf16, #tpu.memory_space<vmem>>, vector<32x24xbf16>
    %cst_367 = arith.constant dense<0.000000e+00> : vector<32x24xf32>
    %394 = tpu.matmul %392, %393, %cst_367 {dimension_numbers = #tpu.dot_dimension_numbers<[1], [0], [0], [1], [0, 0, 1, 1], [], []>} : vector<32x32xbf16>, vector<32x24xbf16>, vector<32x24xf32> -> vector<32x24xf32>
    %395 = arith.addf %390, %394 : vector<32x24xf32>
    %c48_368 = arith.constant 48 : index
    %c0_369 = arith.constant 0 : index
    %c0_370 = arith.constant 0 : index
    %396 = vector.load %arg10[%c48_368, %c0_369, %c0_370] : memref<54x32x32xbf16, #tpu.memory_space<vmem>>, vector<1x32x32xbf16>
    %397 = vector.shape_cast %396 : vector<1x32x32xbf16> to vector<32x32xbf16>
    %c0_371 = arith.constant 0 : index
    %c11_372 = arith.constant 11 : index
    %398 = vector.load %arg18[%c0_371, %c11_372] : memref<32x48xbf16, #tpu.memory_space<vmem>>, vector<32x24xbf16>
    %cst_373 = arith.constant dense<0.000000e+00> : vector<32x24xf32>
    %399 = tpu.matmul %397, %398, %cst_373 {dimension_numbers = #tpu.dot_dimension_numbers<[1], [0], [0], [1], [0, 0, 1, 1], [], []>} : vector<32x32xbf16>, vector<32x24xbf16>, vector<32x24xf32> -> vector<32x24xf32>
    %400 = arith.addf %395, %399 : vector<32x24xf32>
    %c49 = arith.constant 49 : index
    %c0_374 = arith.constant 0 : index
    %c0_375 = arith.constant 0 : index
    %401 = vector.load %arg10[%c49, %c0_374, %c0_375] : memref<54x32x32xbf16, #tpu.memory_space<vmem>>, vector<1x32x32xbf16>
    %402 = vector.shape_cast %401 : vector<1x32x32xbf16> to vector<32x32xbf16>
    %c0_376 = arith.constant 0 : index
    %c12_377 = arith.constant 12 : index
    %403 = vector.load %arg18[%c0_376, %c12_377] : memref<32x48xbf16, #tpu.memory_space<vmem>>, vector<32x24xbf16>
    %cst_378 = arith.constant dense<0.000000e+00> : vector<32x24xf32>
    %404 = tpu.matmul %402, %403, %cst_378 {dimension_numbers = #tpu.dot_dimension_numbers<[1], [0], [0], [1], [0, 0, 1, 1], [], []>} : vector<32x32xbf16>, vector<32x24xbf16>, vector<32x24xf32> -> vector<32x24xf32>
    %405 = arith.addf %400, %404 : vector<32x24xf32>
    %c50 = arith.constant 50 : index
    %c0_379 = arith.constant 0 : index
    %c0_380 = arith.constant 0 : index
    %406 = vector.load %arg10[%c50, %c0_379, %c0_380] : memref<54x32x32xbf16, #tpu.memory_space<vmem>>, vector<1x32x32xbf16>
    %407 = vector.shape_cast %406 : vector<1x32x32xbf16> to vector<32x32xbf16>
    %c0_381 = arith.constant 0 : index
    %c13_382 = arith.constant 13 : index
    %408 = vector.load %arg18[%c0_381, %c13_382] : memref<32x48xbf16, #tpu.memory_space<vmem>>, vector<32x24xbf16>
    %cst_383 = arith.constant dense<0.000000e+00> : vector<32x24xf32>
    %409 = tpu.matmul %407, %408, %cst_383 {dimension_numbers = #tpu.dot_dimension_numbers<[1], [0], [0], [1], [0, 0, 1, 1], [], []>} : vector<32x32xbf16>, vector<32x24xbf16>, vector<32x24xf32> -> vector<32x24xf32>
    %410 = arith.addf %405, %409 : vector<32x24xf32>
    %c51 = arith.constant 51 : index
    %c0_384 = arith.constant 0 : index
    %c0_385 = arith.constant 0 : index
    %411 = vector.load %arg10[%c51, %c0_384, %c0_385] : memref<54x32x32xbf16, #tpu.memory_space<vmem>>, vector<1x32x32xbf16>
    %412 = vector.shape_cast %411 : vector<1x32x32xbf16> to vector<32x32xbf16>
    %c0_386 = arith.constant 0 : index
    %c17_387 = arith.constant 17 : index
    %413 = vector.load %arg18[%c0_386, %c17_387] : memref<32x48xbf16, #tpu.memory_space<vmem>>, vector<32x24xbf16>
    %cst_388 = arith.constant dense<0.000000e+00> : vector<32x24xf32>
    %414 = tpu.matmul %412, %413, %cst_388 {dimension_numbers = #tpu.dot_dimension_numbers<[1], [0], [0], [1], [0, 0, 1, 1], [], []>} : vector<32x32xbf16>, vector<32x24xbf16>, vector<32x24xf32> -> vector<32x24xf32>
    %415 = arith.addf %410, %414 : vector<32x24xf32>
    %c52 = arith.constant 52 : index
    %c0_389 = arith.constant 0 : index
    %c0_390 = arith.constant 0 : index
    %416 = vector.load %arg10[%c52, %c0_389, %c0_390] : memref<54x32x32xbf16, #tpu.memory_space<vmem>>, vector<1x32x32xbf16>
    %417 = vector.shape_cast %416 : vector<1x32x32xbf16> to vector<32x32xbf16>
    %c0_391 = arith.constant 0 : index
    %c18_392 = arith.constant 18 : index
    %418 = vector.load %arg18[%c0_391, %c18_392] : memref<32x48xbf16, #tpu.memory_space<vmem>>, vector<32x24xbf16>
    %cst_393 = arith.constant dense<0.000000e+00> : vector<32x24xf32>
    %419 = tpu.matmul %417, %418, %cst_393 {dimension_numbers = #tpu.dot_dimension_numbers<[1], [0], [0], [1], [0, 0, 1, 1], [], []>} : vector<32x32xbf16>, vector<32x24xbf16>, vector<32x24xf32> -> vector<32x24xf32>
    %420 = arith.addf %415, %419 : vector<32x24xf32>
    %c53 = arith.constant 53 : index
    %c0_394 = arith.constant 0 : index
    %c0_395 = arith.constant 0 : index
    %421 = vector.load %arg10[%c53, %c0_394, %c0_395] : memref<54x32x32xbf16, #tpu.memory_space<vmem>>, vector<1x32x32xbf16>
    %422 = vector.shape_cast %421 : vector<1x32x32xbf16> to vector<32x32xbf16>
    %c0_396 = arith.constant 0 : index
    %c19_397 = arith.constant 19 : index
    %423 = vector.load %arg18[%c0_396, %c19_397] : memref<32x48xbf16, #tpu.memory_space<vmem>>, vector<32x24xbf16>
    %cst_398 = arith.constant dense<0.000000e+00> : vector<32x24xf32>
    %424 = tpu.matmul %422, %423, %cst_398 {dimension_numbers = #tpu.dot_dimension_numbers<[1], [0], [0], [1], [0, 0, 1, 1], [], []>} : vector<32x32xbf16>, vector<32x24xbf16>, vector<32x24xf32> -> vector<32x24xf32>
    %425 = arith.addf %420, %424 : vector<32x24xf32>
    %c5_399 = arith.constant 5 : index
    %c0_400 = arith.constant 0 : index
    %c0_401 = arith.constant 0 : index
    %426 = vector.load %arg11[%c5_399, %c0_400, %c0_401] : memref<6x32x1xf32, #tpu.memory_space<vmem>>, vector<1x32x1xf32>
    %427 = vector.shape_cast %426 : vector<1x32x1xf32> to vector<32x1xf32>
    %428 = vector.broadcast %427 : vector<32x1xf32> to vector<32x24xf32>
    %429 = arith.addf %425, %428 : vector<32x24xf32>
    %cst_402 = arith.constant 0.000000e+00 : f32
    %430 = vector.broadcast %cst_402 : f32 to vector<32x24xf32>
    %431 = arith.cmpf oge, %429, %430 : vector<32x24xf32>
    %c5_403 = arith.constant 5 : index
    %c0_404 = arith.constant 0 : index
    %c0_405 = arith.constant 0 : index
    %432 = vector.load %arg12[%c5_403, %c0_404, %c0_405] : memref<6x32x1xf32, #tpu.memory_space<vmem>>, vector<1x32x1xf32>
    %433 = vector.shape_cast %432 : vector<1x32x1xf32> to vector<32x1xf32>
    %434 = vector.broadcast %433 : vector<32x1xf32> to vector<32x24xf32>
    %435 = arith.mulf %434, %429 : vector<32x24xf32>
    %436 = arith.select %431, %429, %435 : vector<32x24xi1>, vector<32x24xf32>
    %437 = vector.broadcast %1 : vector<1x24xf32> to vector<32x24xf32>
    %438 = arith.mulf %436, %437 : vector<32x24xf32>
    %439 = arith.truncf %438 : vector<32x24xf32> to vector<32x24xbf16>
    %c0_406 = arith.constant 0 : index
    %c12_407 = arith.constant 12 : index
    %440 = vector.load %arg17[%c0_406, %c12_407] : memref<32x48xbf16, #tpu.memory_space<vmem>>, vector<32x24xbf16>
    tpu.vector_store %arg17[%c0_406, %c12_407], %439 {strides = array<i32>} : memref<32x48xbf16, #tpu.memory_space<vmem>>, vector<32x24xbf16>,
    %c0_408 = arith.constant 0 : index
    %c0_409 = arith.constant 0 : index
    %c0_410 = arith.constant 0 : index
    %441 = vector.load %arg13[%c0_408, %c0_409, %c0_410] : memref<9x16x32xbf16, #tpu.memory_space<vmem>>, vector<1x16x32xbf16>
    %442 = vector.shape_cast %441 : vector<1x16x32xbf16> to vector<16x32xbf16>
    %c0_411 = arith.constant 0 : index
    %c5_412 = arith.constant 5 : index
    %443 = vector.load %arg17[%c0_411, %c5_412] : memref<32x48xbf16, #tpu.memory_space<vmem>>, vector<32x24xbf16>
    %cst_413 = arith.constant dense<0.000000e+00> : vector<16x24xf32>
    %444 = tpu.matmul %442, %443, %cst_413 {dimension_numbers = #tpu.dot_dimension_numbers<[1], [0], [0], [1], [0, 0, 1, 1], [], []>} : vector<16x32xbf16>, vector<32x24xbf16>, vector<16x24xf32> -> vector<16x24xf32>
    %c1_414 = arith.constant 1 : index
    %c0_415 = arith.constant 0 : index
    %c0_416 = arith.constant 0 : index
    %445 = vector.load %arg13[%c1_414, %c0_415, %c0_416] : memref<9x16x32xbf16, #tpu.memory_space<vmem>>, vector<1x16x32xbf16>
    %446 = vector.shape_cast %445 : vector<1x16x32xbf16> to vector<16x32xbf16>
    %c0_417 = arith.constant 0 : index
    %c6_418 = arith.constant 6 : index
    %447 = vector.load %arg17[%c0_417, %c6_418] : memref<32x48xbf16, #tpu.memory_space<vmem>>, vector<32x24xbf16>
    %cst_419 = arith.constant dense<0.000000e+00> : vector<16x24xf32>
    %448 = tpu.matmul %446, %447, %cst_419 {dimension_numbers = #tpu.dot_dimension_numbers<[1], [0], [0], [1], [0, 0, 1, 1], [], []>} : vector<16x32xbf16>, vector<32x24xbf16>, vector<16x24xf32> -> vector<16x24xf32>
    %449 = arith.addf %444, %448 : vector<16x24xf32>
    %c2_420 = arith.constant 2 : index
    %c0_421 = arith.constant 0 : index
    %c0_422 = arith.constant 0 : index
    %450 = vector.load %arg13[%c2_420, %c0_421, %c0_422] : memref<9x16x32xbf16, #tpu.memory_space<vmem>>, vector<1x16x32xbf16>
    %451 = vector.shape_cast %450 : vector<1x16x32xbf16> to vector<16x32xbf16>
    %c0_423 = arith.constant 0 : index
    %c7_424 = arith.constant 7 : index
    %452 = vector.load %arg17[%c0_423, %c7_424] : memref<32x48xbf16, #tpu.memory_space<vmem>>, vector<32x24xbf16>
    %cst_425 = arith.constant dense<0.000000e+00> : vector<16x24xf32>
    %453 = tpu.matmul %451, %452, %cst_425 {dimension_numbers = #tpu.dot_dimension_numbers<[1], [0], [0], [1], [0, 0, 1, 1], [], []>} : vector<16x32xbf16>, vector<32x24xbf16>, vector<16x24xf32> -> vector<16x24xf32>
    %454 = arith.addf %449, %453 : vector<16x24xf32>
    %c3_426 = arith.constant 3 : index
    %c0_427 = arith.constant 0 : index
    %c0_428 = arith.constant 0 : index
    %455 = vector.load %arg13[%c3_426, %c0_427, %c0_428] : memref<9x16x32xbf16, #tpu.memory_space<vmem>>, vector<1x16x32xbf16>
    %456 = vector.shape_cast %455 : vector<1x16x32xbf16> to vector<16x32xbf16>
    %c0_429 = arith.constant 0 : index
    %c11_430 = arith.constant 11 : index
    %457 = vector.load %arg17[%c0_429, %c11_430] : memref<32x48xbf16, #tpu.memory_space<vmem>>, vector<32x24xbf16>
    %cst_431 = arith.constant dense<0.000000e+00> : vector<16x24xf32>
    %458 = tpu.matmul %456, %457, %cst_431 {dimension_numbers = #tpu.dot_dimension_numbers<[1], [0], [0], [1], [0, 0, 1, 1], [], []>} : vector<16x32xbf16>, vector<32x24xbf16>, vector<16x24xf32> -> vector<16x24xf32>
    %459 = arith.addf %454, %458 : vector<16x24xf32>
    %c4_432 = arith.constant 4 : index
    %c0_433 = arith.constant 0 : index
    %c0_434 = arith.constant 0 : index
    %460 = vector.load %arg13[%c4_432, %c0_433, %c0_434] : memref<9x16x32xbf16, #tpu.memory_space<vmem>>, vector<1x16x32xbf16>
    %461 = vector.shape_cast %460 : vector<1x16x32xbf16> to vector<16x32xbf16>
    %c0_435 = arith.constant 0 : index
    %c12_436 = arith.constant 12 : index
    %462 = vector.load %arg17[%c0_435, %c12_436] : memref<32x48xbf16, #tpu.memory_space<vmem>>, vector<32x24xbf16>
    %cst_437 = arith.constant dense<0.000000e+00> : vector<16x24xf32>
    %463 = tpu.matmul %461, %462, %cst_437 {dimension_numbers = #tpu.dot_dimension_numbers<[1], [0], [0], [1], [0, 0, 1, 1], [], []>} : vector<16x32xbf16>, vector<32x24xbf16>, vector<16x24xf32> -> vector<16x24xf32>
    %464 = arith.addf %459, %463 : vector<16x24xf32>
    %c5_438 = arith.constant 5 : index
    %c0_439 = arith.constant 0 : index
    %c0_440 = arith.constant 0 : index
    %465 = vector.load %arg13[%c5_438, %c0_439, %c0_440] : memref<9x16x32xbf16, #tpu.memory_space<vmem>>, vector<1x16x32xbf16>
    %466 = vector.shape_cast %465 : vector<1x16x32xbf16> to vector<16x32xbf16>
    %c0_441 = arith.constant 0 : index
    %c13_442 = arith.constant 13 : index
    %467 = vector.load %arg17[%c0_441, %c13_442] : memref<32x48xbf16, #tpu.memory_space<vmem>>, vector<32x24xbf16>
    %cst_443 = arith.constant dense<0.000000e+00> : vector<16x24xf32>
    %468 = tpu.matmul %466, %467, %cst_443 {dimension_numbers = #tpu.dot_dimension_numbers<[1], [0], [0], [1], [0, 0, 1, 1], [], []>} : vector<16x32xbf16>, vector<32x24xbf16>, vector<16x24xf32> -> vector<16x24xf32>
    %469 = arith.addf %464, %468 : vector<16x24xf32>
    %c6_444 = arith.constant 6 : index
    %c0_445 = arith.constant 0 : index
    %c0_446 = arith.constant 0 : index
    %470 = vector.load %arg13[%c6_444, %c0_445, %c0_446] : memref<9x16x32xbf16, #tpu.memory_space<vmem>>, vector<1x16x32xbf16>
    %471 = vector.shape_cast %470 : vector<1x16x32xbf16> to vector<16x32xbf16>
    %c0_447 = arith.constant 0 : index
    %c17_448 = arith.constant 17 : index
    %472 = vector.load %arg17[%c0_447, %c17_448] : memref<32x48xbf16, #tpu.memory_space<vmem>>, vector<32x24xbf16>
    %cst_449 = arith.constant dense<0.000000e+00> : vector<16x24xf32>
    %473 = tpu.matmul %471, %472, %cst_449 {dimension_numbers = #tpu.dot_dimension_numbers<[1], [0], [0], [1], [0, 0, 1, 1], [], []>} : vector<16x32xbf16>, vector<32x24xbf16>, vector<16x24xf32> -> vector<16x24xf32>
    %474 = arith.addf %469, %473 : vector<16x24xf32>
    %c7_450 = arith.constant 7 : index
    %c0_451 = arith.constant 0 : index
    %c0_452 = arith.constant 0 : index
    %475 = vector.load %arg13[%c7_450, %c0_451, %c0_452] : memref<9x16x32xbf16, #tpu.memory_space<vmem>>, vector<1x16x32xbf16>
    %476 = vector.shape_cast %475 : vector<1x16x32xbf16> to vector<16x32xbf16>
    %c0_453 = arith.constant 0 : index
    %c18_454 = arith.constant 18 : index
    %477 = vector.load %arg17[%c0_453, %c18_454] : memref<32x48xbf16, #tpu.memory_space<vmem>>, vector<32x24xbf16>
    %cst_455 = arith.constant dense<0.000000e+00> : vector<16x24xf32>
    %478 = tpu.matmul %476, %477, %cst_455 {dimension_numbers = #tpu.dot_dimension_numbers<[1], [0], [0], [1], [0, 0, 1, 1], [], []>} : vector<16x32xbf16>, vector<32x24xbf16>, vector<16x24xf32> -> vector<16x24xf32>
    %479 = arith.addf %474, %478 : vector<16x24xf32>
    %c8_456 = arith.constant 8 : index
    %c0_457 = arith.constant 0 : index
    %c0_458 = arith.constant 0 : index
    %480 = vector.load %arg13[%c8_456, %c0_457, %c0_458] : memref<9x16x32xbf16, #tpu.memory_space<vmem>>, vector<1x16x32xbf16>
    %481 = vector.shape_cast %480 : vector<1x16x32xbf16> to vector<16x32xbf16>
    %c0_459 = arith.constant 0 : index
    %c19_460 = arith.constant 19 : index
    %482 = vector.load %arg17[%c0_459, %c19_460] : memref<32x48xbf16, #tpu.memory_space<vmem>>, vector<32x24xbf16>
    %cst_461 = arith.constant dense<0.000000e+00> : vector<16x24xf32>
    %483 = tpu.matmul %481, %482, %cst_461 {dimension_numbers = #tpu.dot_dimension_numbers<[1], [0], [0], [1], [0, 0, 1, 1], [], []>} : vector<16x32xbf16>, vector<32x24xbf16>, vector<16x24xf32> -> vector<16x24xf32>
    %484 = arith.addf %479, %483 : vector<16x24xf32>
    %c0_462 = arith.constant 0 : index
    %c0_463 = arith.constant 0 : index
    %485 = vector.load %arg14[%c0_462, %c0_463] : memref<16x1xf32, #tpu.memory_space<vmem>>, vector<16x1xf32>
    %486 = vector.broadcast %485 : vector<16x1xf32> to vector<16x24xf32>
    %487 = arith.addf %484, %486 : vector<16x24xf32>
    %c0_464 = arith.constant 0 : index
    %c0_465 = arith.constant 0 : index
    %c0_466 = arith.constant 0 : index
    %488 = vector.load %arg15[%c0_464, %c0_465, %c0_466] : memref<1x16x24xf32, #tpu.memory_space<vmem>>, vector<1x16x24xf32>
    %489 = vector.shape_cast %488 : vector<1x16x24xf32> to vector<16x24xf32>
    %490 = vector.shape_cast %487 : vector<16x24xf32> to vector<1x16x24xf32>
    tpu.vector_store %arg15[%c0_464, %c0_465, %c0_466], %490 {strides = array<i32>} : memref<1x16x24xf32, #tpu.memory_space<vmem>>, vector<1x16x24xf32>,
    return
  }
  func.func @transform_0(%arg0: i32) -> (i32, i32, i32) {
    %c0_i32 = arith.constant 0 : i32
    %c0_i32_0 = arith.constant 0 : i32
    %c0_i32_1 = arith.constant 0 : i32
    return %arg0, %c0_i32, %c0_i32_0 : i32, i32, i32
  }
  func.func @transform_1(%arg0: i32) -> (i32, i32) {
    %c0_i32 = arith.constant 0 : i32
    %c0_i32_0 = arith.constant 0 : i32
    %c0_i32_1 = arith.constant 0 : i32
    return %c0_i32, %c0_i32_0 : i32, i32
  }
  func.func @transform_2(%arg0: i32) -> (i32, i32) {
    %c0_i32 = arith.constant 0 : i32
    %c0_i32_0 = arith.constant 0 : i32
    %c0_i32_1 = arith.constant 0 : i32
    return %c0_i32, %c0_i32_0 : i32, i32
  }
  func.func @transform_3(%arg0: i32) -> (i32, i32, i32) {
    %c0_i32 = arith.constant 0 : i32
    %c0_i32_0 = arith.constant 0 : i32
    %c0_i32_1 = arith.constant 0 : i32
    %c0_i32_2 = arith.constant 0 : i32
    return %c0_i32, %c0_i32_0, %c0_i32_1 : i32, i32, i32
  }
  func.func @transform_4(%arg0: i32) -> (i32, i32) {
    %c0_i32 = arith.constant 0 : i32
    %c0_i32_0 = arith.constant 0 : i32
    %c0_i32_1 = arith.constant 0 : i32
    return %c0_i32, %c0_i32_0 : i32, i32
  }
  func.func @transform_5(%arg0: i32) -> (i32, i32) {
    %c0_i32 = arith.constant 0 : i32
    %c0_i32_0 = arith.constant 0 : i32
    %c0_i32_1 = arith.constant 0 : i32
    return %c0_i32, %c0_i32_0 : i32, i32
  }
  func.func @transform_6(%arg0: i32) -> (i32, i32, i32) {
    %c0_i32 = arith.constant 0 : i32
    %c0_i32_0 = arith.constant 0 : i32
    %c0_i32_1 = arith.constant 0 : i32
    %c0_i32_2 = arith.constant 0 : i32
    return %c0_i32, %c0_i32_0, %c0_i32_1 : i32, i32, i32
  }
  func.func @transform_7(%arg0: i32) -> (i32, i32) {
    %c0_i32 = arith.constant 0 : i32
    %c0_i32_0 = arith.constant 0 : i32
    %c0_i32_1 = arith.constant 0 : i32
    return %c0_i32, %c0_i32_0 : i32, i32
  }
  func.func @transform_8(%arg0: i32) -> (i32, i32) {
    %c0_i32 = arith.constant 0 : i32
    %c0_i32_0 = arith.constant 0 : i32
    %c0_i32_1 = arith.constant 0 : i32
    return %c0_i32, %c0_i32_0 : i32, i32
  }
  func.func @transform_9(%arg0: i32) -> (i32, i32, i32) {
    %c0_i32 = arith.constant 0 : i32
    %c0_i32_0 = arith.constant 0 : i32
    %c0_i32_1 = arith.constant 0 : i32
    %c0_i32_2 = arith.constant 0 : i32
    return %c0_i32, %c0_i32_0, %c0_i32_1 : i32, i32, i32
  }
  func.func @transform_10(%arg0: i32) -> (i32, i32, i32) {
    %c0_i32 = arith.constant 0 : i32
    %c0_i32_0 = arith.constant 0 : i32
    %c0_i32_1 = arith.constant 0 : i32
    %c0_i32_2 = arith.constant 0 : i32
    return %c0_i32, %c0_i32_0, %c0_i32_1 : i32, i32, i32
  }
  func.func @transform_11(%arg0: i32) -> (i32, i32, i32) {
    %c0_i32 = arith.constant 0 : i32
    %c0_i32_0 = arith.constant 0 : i32
    %c0_i32_1 = arith.constant 0 : i32
    %c0_i32_2 = arith.constant 0 : i32
    return %c0_i32, %c0_i32_0, %c0_i32_1 : i32, i32, i32
  }
  func.func @transform_12(%arg0: i32) -> (i32, i32, i32) {
    %c0_i32 = arith.constant 0 : i32
    %c0_i32_0 = arith.constant 0 : i32
    %c0_i32_1 = arith.constant 0 : i32
    %c0_i32_2 = arith.constant 0 : i32
    return %c0_i32, %c0_i32_0, %c0_i32_1 : i32, i32, i32
  }
  func.func @transform_13(%arg0: i32) -> (i32, i32) {
    %c0_i32 = arith.constant 0 : i32
    %c0_i32_0 = arith.constant 0 : i32
    %c0_i32_1 = arith.constant 0 : i32
    return %c0_i32, %c0_i32_0 : i32, i32
  }
  func.func @transform_14(%arg0: i32) -> (i32, i32, i32) {
    %c0_i32 = arith.constant 0 : i32
    %c0_i32_0 = arith.constant 0 : i32
    %c0_i32_1 = arith.constant 0 : i32
    return %arg0, %c0_i32, %c0_i32_0 : i32, i32, i32
  }
}

</mosaic_0001>

<bundles_post_ra>
// kernel: _lambda_.1
= control target key start
LH: loop header
LB: loop body
LE: loop exit
PB: predicated region body
PF: predicated region fallthrough
CT: control target
= control target key end

     0   :  { %s9006_s29 = smov 0   ;;  %s10114_s0 = inlined_call_operand.vmem [shape: bf16[2,64,36], index: 0, kind: input, shape index: {}]   ;;  %s10115_s1 = inlined_call_operand.vmem [shape: f32[1,24], index: 1, kind: input, shape index: {}]   ;;  %s10116_s2 = inlined_call_operand.vmem [shape: f32[1,24], index: 2, kind: input, shape index: {}]   ;;  %s10117_s3 = inlined_call_operand.vmem [shape: bf16[4,64,64], index: 3, kind: input, shape index: {}]   ;;  %s10118_s4 = inlined_call_operand.vmem [shape: f32[64,1], index: 4, kind: input, shape index: {}]   ;;  %s10119_s5 = inlined_call_operand.vmem [shape: f32[64,1], index: 5, kind: input, shape index: {}]   ;;  %s10120_s6 = inlined_call_operand.vmem [shape: bf16[4,32,64], index: 6, kind: input, shape index: {}]   ;;  %s10121_s7 = inlined_call_operand.vmem [shape: f32[32,1], index: 7, kind: input, shape index: {}]   ;;  %s10122_s8 = inlined_call_operand.vmem [shape: f32[32,1], index: 8, kind: input, shape index: {}]   ;;  %s10123_s9 = inlined_call_operand.vmem [shape: bf16[54,32,32], index: 9, kind: input, shape index: {}]   ;;  %s10124_s10 = inlined_call_operand.vmem [shape: f32[6,32,1], index: 10, kind: input, shape index: {}]   ;;  %s10125_s11 = inlined_call_operand.vmem [shape: f32[6,32,1], index: 11, kind: input, shape index: {}]   ;;  %s10126_s12 = inlined_call_operand.vmem [shape: bf16[9,16,32], index: 12, kind: input, shape index: {}]   ;;  %s10127_s13 = inlined_call_operand.vmem [shape: f32[16,1], index: 13, kind: input, shape index: {}]   ;;  %s10128_s14 = inlined_call_operand.vmem [shape: f32[2,16,24], index: 14, kind: output, shape index: {}]  }
   0x1   :  { %10149 = sst [smem:[#allocation5_spill]] %s10114_s0 }
   0x2   :  { %10150 = sst [smem:[#allocation6_spill]] %s10115_s1 }
   0x3   :  { %10151 = sst [smem:[#allocation7_spill]] %s10117_s3 }
   0x4   :  { %10152 = sst [smem:[#allocation8_spill]] %s10118_s4 }
   0x5   :  { %10153 = sst [smem:[#allocation9_spill]] %s10119_s5 }
   0x6   :  { %10154 = sst [smem:[#allocation10_spill]] %s10120_s6 }
   0x7 LB: > { %s6983_s30 = sadd.s32 4294967295, %s8911_s29   ;;  %p6987_p0 = scmp.ge.s32.totalorder %s8911_s29, 1  ;;  %s8911_s29 = sphi %s9006_s29, %s24_s29  }
   0x8   : > { %p412_p1 = scmp.lt.s32.totalorder %s8911_s29, 3 }
   0xa   : > { %p413_p2 = pnand %p6987_p0, %p412_p1 }
   0xb   : > { %p458_p3 = scmp.lt.s32.totalorder (!%p413_p2), %s6983_s30, 1  ;;  %s10155_s0 = sld [smem:[#allocation5_spill]] (!%p413_p2)  ;;  %vm567_vm0 = vcmask (!%p413_p2), 523264   ;;  %v8916_v7 = vmov (!%p413_p2), 0   ;;  %vm471_vm1 = vcmask (!%p413_p2), 97280   ;;  %vm476_vm2 = vcmask (!%p413_p2), 294080  }
   0xc   : > { %416 = sbr.rel (%p413_p2) target bundleno = 4844 (0x12ec), region = 76  ;;  %s8913_s19 = smov (!%p413_p2), 127   ;;  %8758 = vset.pattern.permute.xlu1 (!%p413_p2), %v8916_v7  ;;  %8757 = vset.pattern.permute.xlu0 (!%p413_p2), %v8916_v7  ;;  %473 = vst.msk [vmem:[#allocation2 + $0x8] sm:$0xff] (!%p413_p2), %vm471_vm1, %v8916_v7  ;;  %472 = vst.msk [vmem:[#allocation2] sm:$0xff] (!%p413_p2), %vm471_vm1, %v8916_v7  ;;  %vm1154_vm11 = vcmask (!%p413_p2), 252984   ;;  %vm1148_vm12 = vcmask (!%p413_p2), 261184  }
   0xd   : > { %s10156_s3 = sld [smem:[#allocation7_spill]] (!%p413_p2)  ;;  %s10145_s22 = smov (!%p413_p2), 122   ;;  %474 = vst.msk [vmem:[#allocation2 + $0x10] sm:$0xff] (!%p413_p2), %vm471_vm1, %v8916_v7  ;;  %475 = vst.msk [vmem:[#allocation2 + $0x18] sm:$0xff] (!%p413_p2), %vm471_vm1, %v8916_v7  ;;  %vm1166_vm13 = vcmask (!%p413_p2), 203784   ;;  %vm1160_vm14 = vcmask (!%p413_p2), 211984  }
   0xe   : > { %s10141_s23 = smov (!%p413_p2), 121   ;;  %s10157_s4 = sld [smem:[#allocation8_spill]] (!%p413_p2)  ;;  %481 = vst.msk [vmem:[#allocation3] sm:$0xff] (!%p413_p2), %vm471_vm1, %v8916_v7  ;;  %482 = vst.msk [vmem:[#allocation3 + $0x8] sm:$0xff] (!%p413_p2), %vm471_vm1, %v8916_v7  ;;  %vm483_vm15 = vcmask (!%p413_p2), 392480  }
   0xf   : > { %s10158_s5 = sld [smem:[#allocation9_spill]] (!%p413_p2)  ;;  %486 = vst.msk [vmem:[#allocation4] sm:$0xff] (!%p413_p2), %vm471_vm1, %v8916_v7  ;;  %487 = vst.msk [vmem:[#allocation4 + $0x8] sm:$0xff] (!%p413_p2), %vm471_vm1, %v8916_v7  ;;  %s10159_s1 = sld [smem:[#allocation6_spill]] (!%p413_p2) }
  0x10   : > { %478 = vst.msk [vmem:[#allocation2 + $0x8] sm:$0xff] (!%p413_p2), %vm476_vm2, %v8916_v7  ;;  %477 = vst.msk [vmem:[#allocation2] sm:$0xff] (!%p413_p2), %vm476_vm2, %v8916_v7  ;;  %s8917_s20 = smov (!%p413_p2), 7   ;;  %s8918_s21 = smov (!%p413_p2), 8  }
  0x11   : > { %479 = vst.msk [vmem:[#allocation2 + $0x10] sm:$0xff] (!%p413_p2), %vm476_vm2, %v8916_v7  ;;  %480 = vst.msk [vmem:[#allocation2 + $0x18] sm:$0xff] (!%p413_p2), %vm476_vm2, %v8916_v7  ;;  %s8919_s24 = smov (!%p413_p2), 1   ;;  %s8920_s25 = smov (!%p413_p2), 2  }
  0x12   : > { %s10160_s6 = sld [smem:[#allocation10_spill]] (!%p413_p2)  ;;  %485 = vst.msk [vmem:[#allocation3 + $0x8] sm:$0xff] (!%p413_p2), %vm483_vm15, %v8916_v7  ;;  %484 = vst.msk [vmem:[#allocation3] sm:$0xff] (!%p413_p2), %vm483_vm15, %v8916_v7  ;;  %s10143_s27 = smov (!%p413_p2), 123  }
  0x13   : > { %s10172_s30 = smov (!%p458_p3, %s6983_s30), 1  ;;  %v8763_v4 = vld [vmem:[%s10156_s3 + $0x20] sm:$0xff]   ;;  %v8764_v26 = vld [vmem:[%s10156_s3 + $0x28] sm:$0xff]   ;;  %v8765_v27 = vld [vmem:[%s10156_s3 + $0x30] sm:$0xff]   ;;  %488 = vst.msk [vmem:[#allocation4] sm:$0xff] %vm483_vm15, %v8916_v7  ;;  %s10139_s28 = smov 117  }
  0x14   : > { %s7586_s15 = sshll.u32 %s10172_s30, 5  ;;  %7895 = vmatprep.mubr.msk.bf16.mxu0 %vm567_vm0, %v8763_v4  ;;  %v999_v5 = vld [vmem:[%s10157_s4 + $0x8] sm:$0xff]  ;;  %v998_v6 = vld [vmem:[%s10157_s4] sm:$0xff]  ;;  %v1000_v10 = vld [vmem:[%s10157_s4 + $0x10] sm:$0xff]  ;;  %489 = vst.msk [vmem:[#allocation4 + $0x8] sm:$0xff] %vm483_vm15, %v8916_v7  ;;  %s10129_s16 = smov 111  }
  0x15   : > { %s462_s18 = scalar_lea.vmem %s10155_s0, %s7586_s15  ;;  %v1062_v8 = vld [vmem:[%s10158_s5] sm:$0xff]  ;;  %v1063_v9 = vld [vmem:[%s10158_s5 + $0x8] sm:$0xff]  ;;  %v1001_v11 = vld [vmem:[%s10157_s4 + $0x18] sm:$0xff]  ;;  %s10135_s15 = smov 116  }
  0x16   : > { %v9020_v0 = vld [vmem:[%s462_s18] sm:$0xff]   ;;  %v9022_v1 = vld [vmem:[%s462_s18 + $0x8] sm:$0xff]   ;;  %v9026_v2 = vld [vmem:[%s462_s18 + $0x10] sm:$0xff]   ;;  %s10133_s17 = smov 110   ;;  %s10162_s26 = smov 116  }
  0x17   : > { %555 = vrot.lane.b32.xlu0 %v9020_v0, %s8913_s19  ;;  %559 = vrot.lane.b32.xlu1 %v9026_v2, %s8913_s19  ;;  %v9030_v3 = vld [vmem:[%s462_s18 + $0x18] sm:$0xff]   ;;  %v1064_v12 = vld [vmem:[%s10158_s5 + $0x10] sm:$0xff]  ;;  %s10137_s18 = smov 109  }
  0x18   : > { %v1065_v13 = vld [vmem:[%s10158_s5 + $0x18] sm:$0xff]  ;;  %v1002_v14 = vld [vmem:[%s10157_s4 + $0x20] sm:$0xff]  ;;  %v1003_v15 = vld [vmem:[%s10157_s4 + $0x28] sm:$0xff] }
  0x19   : > { %v1066_v16 = vld [vmem:[%s10158_s5 + $0x20] sm:$0xff]  ;;  %v1067_v17 = vld [vmem:[%s10158_s5 + $0x28] sm:$0xff]  ;;  %v1004_v18 = vld [vmem:[%s10157_s4 + $0x30] sm:$0xff] }
  0x1a   : > { %v1005_v19 = vld [vmem:[%s10157_s4 + $0x38] sm:$0xff]  ;;  %v1068_v20 = vld [vmem:[%s10158_s5 + $0x30] sm:$0xff]  ;;  %v8767_v29 = vld [vmem:[%s10156_s3] sm:$0xff]  }
  0x1b   : > { %557 = vrot.lane.b32.xlu0 %v9022_v1, %s8913_s19  ;;  %561 = vrot.lane.b32.xlu1 %v9030_v3, %s8913_s19  ;;  %v1069_v21 = vld [vmem:[%s10158_s5 + $0x38] sm:$0xff]  ;;  %v8768_v31 = vld [vmem:[%s10156_s3 + $0x8] sm:$0xff]  }
  0x1c   : > { %v8766_v28 = vld [vmem:[%s10156_s3 + $0x38] sm:$0xff]   ;;  %v8769_v32 = vld [vmem:[%s10156_s3 + $0x10] sm:$0xff]   ;;  %v8771_v36 = vld [vmem:[%s10156_s3 + $0x40] sm:$0xff]  }
  0x1d   : > { %v8770_v35 = vld [vmem:[%s10156_s3 + $0x18] sm:$0xff]   ;;  %v8772_v39 = vld [vmem:[%s10156_s3 + $0x48] sm:$0xff]   ;;  %v8773_v40 = vld [vmem:[%s10156_s3 + $0x50] sm:$0xff]  }
  0x1e   : > { %v8774_v43 = vld [vmem:[%s10156_s3 + $0x58] sm:$0xff]   ;;  %v8775_v44 = vld [vmem:[%s10156_s3 + $0x60] sm:$0xff]   ;;  %v8776_v46 = vld [vmem:[%s10156_s3 + $0x68] sm:$0xff]  }
  0x1f   : > { %775 = vrot.lane.b32.xlu0 %v9020_v0, %s10145_s22  ;;  %777 = vrot.lane.b32.xlu1 %v9022_v1, %s10145_s22  ;;  %v8777_v47 = vld [vmem:[%s10156_s3 + $0x70] sm:$0xff]   ;;  %v8778_v48 = vld [vmem:[%s10156_s3 + $0x78] sm:$0xff]  }
  0x23   : > { %779 = vrot.lane.b32.xlu0 %v9026_v2, %s10145_s22  ;;  %781 = vrot.lane.b32.xlu1 %v9030_v3, %s10145_s22 }
  0x27   : > { %901 = vrot.lane.b32.xlu0 %v9020_v0, %s10141_s23  ;;  %903 = vrot.lane.b32.xlu1 %v9022_v1, %s10141_s23 }
  0x2b   : > { %905 = vrot.lane.b32.xlu0 %v9026_v2, %s10141_s23  ;;  %907 = vrot.lane.b32.xlu1 %v9030_v3, %s10141_s23 }
  0x2f   : > { %1013 = vperm.xlu1 %8758, %v999_v5   ;;  %1008 = vperm.xlu0 %8757, %v998_v6  }
  0x33   : > { %1072 = vperm.xlu1 %8758, %v1062_v8   ;;  %1077 = vperm.xlu0 %8757, %v1063_v9  }
  0x37   : > { %1018 = vperm.xlu1 %8758, %v1000_v10   ;;  %1023 = vperm.xlu0 %8757, %v1001_v11   ;;  %v7052_v11 = vld [vmem:[%s10159_s1] ss:$0 sm:$0xff] }
  0x3b   : > { %1082 = vperm.xlu1 %8758, %v1064_v12   ;;  %1087 = vperm.xlu0 %8757, %v1065_v13  }
  0x3f   : > { %1028 = vperm.xlu1 %8758, %v1002_v14   ;;  %1033 = vperm.xlu0 %8757, %v1003_v15  }
  0x43   : > { %1092 = vperm.xlu1 %8758, %v1066_v16   ;;  %1097 = vperm.xlu0 %8757, %v1067_v17  }
  0x47   : > { %1038 = vperm.xlu1 %8758, %v1004_v18   ;;  %1043 = vperm.xlu0 %8757, %v1005_v19  }
  0x4b   : > { %1102 = vperm.xlu1 %8758, %v1068_v20   ;;  %1107 = vperm.xlu0 %8757, %v1069_v21  }
  0x89   : > { %v556_v22 = vpop.permute.xlu0 %555  ;;  %v560_v23 = vpop.permute.xlu1 %559 }
  0x8a   : > { %7887 = vmatprep.subr.bf16.mxu0 %v556_v22 }
  0x8b   : > { %7888 = vmatpush3.bf16.msra.mxu0 %v556_v22 }
  0x8d   : > { %v558_v24 = vpop.permute.xlu0 %557  ;;  %v562_v25 = vpop.permute.xlu1 %561 }
  0x8e   : > { %7889 = vmatprep.subr.bf16.mxu0 %v558_v24 }
  0x8f   : > { %7890 = vmatpush3.bf16.msra.mxu0 %v558_v24 }
  0x90   : > { %7891 = vmatprep.subr.bf16.mxu0 %v560_v23 }
  0x91   : > { %v776_v30 = vpop.permute.xlu0 %775  ;;  %v778_v33 = vpop.permute.xlu1 %777 }
  0x93   : > { %7892 = vmatpush3.bf16.msra.mxu0 %v560_v23 }
  0x94   : > { %7893 = vmatprep.subr.bf16.mxu0 %v562_v25 }
  0x95   : > { %v780_v34 = vpop.permute.xlu0 %779  ;;  %v782_v37 = vpop.permute.xlu1 %781 }
  0x97   : > { %7894 = vmatpush3.bf16.msra.mxu0 %v562_v25 }
  0x98   : > { %7903 = vmatprep.subr.bf16.mxu0 %v9020_v0 }
  0x99   : > { %v902_v38 = vpop.permute.xlu0 %901  ;;  %v904_v41 = vpop.permute.xlu1 %903 }
  0x9a   : > { %7896 = vmatmul.mubr.msk.bf16.vlgmr.msra.gmra.mrb[0].mxu0 %vm567_vm0, %v8764_v26 }
  0x9b   : > { %7904 = vmatpush3.bf16.msra.mxu0 %v9020_v0  ;;  %7899 = vmatprep.mubr.msk.bf16.mxu0 %vm567_vm0, %v8765_v27 }
  0x9c   : > { %7905 = vmatprep.subr.bf16.mxu0 %v9022_v1 }
  0x9d   : > { %v906_v42 = vpop.permute.xlu0 %905  ;;  %v908_v45 = vpop.permute.xlu1 %907 }
  0x9f   : > { %7906 = vmatpush3.bf16.msra.mxu0 %v9022_v1 }
  0xa0   : > { %7907 = vmatprep.subr.bf16.mxu0 %v9026_v2 }
  0xa2   : > { %7900 = vmatmul.mubr.msk.bf16.gmra.mrb[4].mxu0 %vm567_vm0, %v8766_v28 }
  0xa3   : > { %7908 = vmatpush3.bf16.msra.mxu0 %v9026_v2  ;;  %7911 = vmatprep.mubr.msk.bf16.mxu0 %vm567_vm0, %v8767_v29 }
  0xa4   : > { %7909 = vmatprep.subr.bf16.mxu0 %v9030_v3 }
  0xa7   : > { %7910 = vmatpush3.bf16.msra.mxu0 %v9030_v3 }
  0xa8   : > { %7919 = vmatprep.subr.bf16.mxu0 %v776_v30 }
  0xaa   : > { %7912 = vmatmul.mubr.msk.bf16.vlgmr.msra.gmra.mrb[0].mxu0 %vm567_vm0, %v8768_v31 }
  0xab   : > { %7920 = vmatpush3.bf16.msra.mxu0 %v776_v30  ;;  %7915 = vmatprep.mubr.msk.bf16.mxu0 %vm567_vm0, %v8769_v32 }
  0xac   : > { %7921 = vmatprep.subr.bf16.mxu0 %v778_v33 }
  0xae   : > { %v1014_v49 = vpop.permute.xlu1 %1013  ;;  %v1009_v50 = vpop.permute.xlu0 %1008 }
  0xaf   : > { %7922 = vmatpush3.bf16.msra.mxu0 %v778_v33 }
  0xb0   : > { %7923 = vmatprep.subr.bf16.mxu0 %v780_v34 }
  0xb2   : > { %7916 = vmatmul.mubr.msk.bf16.gmra.mrb[4].mxu0 %vm567_vm0, %v8770_v35  ;;  %v1073_v51 = vpop.permute.xlu1 %1072  ;;  %v1078_v52 = vpop.permute.xlu0 %1077 }
  0xb3   : > { %7924 = vmatpush3.bf16.msra.mxu0 %v780_v34  ;;  %7927 = vmatprep.mubr.msk.bf16.mxu0 %vm567_vm0, %v8771_v36 }
  0xb4   : > { %7925 = vmatprep.subr.bf16.mxu0 %v782_v37 }
  0xb6   : > { %v1019_v53 = vpop.permute.xlu1 %1018  ;;  %v1024_v54 = vpop.permute.xlu0 %1023 }
  0xb7   : > { %7926 = vmatpush3.bf16.msra.mxu0 %v782_v37 }
  0xb8   : > { %7935 = vmatprep.subr.bf16.mxu0 %v902_v38 }
  0xba   : > { %7928 = vmatmul.mubr.msk.bf16.vlgmr.msra.gmra.mrb[0].mxu0 %vm567_vm0, %v8772_v39  ;;  %v1083_v55 = vpop.permute.xlu1 %1082  ;;  %v1088_v56 = vpop.permute.xlu0 %1087 }
  0xbb   : > { %7936 = vmatpush3.bf16.msra.mxu0 %v902_v38  ;;  %7931 = vmatprep.mubr.msk.bf16.mxu0 %vm567_vm0, %v8773_v40 }
  0xbc   : > { %7937 = vmatprep.subr.bf16.mxu0 %v904_v41 }
  0xbe   : > { %v1029_v57 = vpop.permute.xlu1 %1028  ;;  %v1034_v58 = vpop.permute.xlu0 %1033 }
  0xbf   : > { %7938 = vmatpush3.bf16.msra.mxu0 %v904_v41 }
  0xc0   : > { %7939 = vmatprep.subr.bf16.mxu0 %v906_v42 }
  0xc2   : > { %7932 = vmatmul.mubr.msk.bf16.gmra.mrb[4].mxu0 %vm567_vm0, %v8774_v43  ;;  %v1093_v59 = vpop.permute.xlu1 %1092  ;;  %v1098_v60 = vpop.permute.xlu0 %1097 }
  0xc3   : > { %7940 = vmatpush3.bf16.msra.mxu0 %v906_v42  ;;  %7943 = vmatprep.mubr.msk.bf16.mxu0 %vm567_vm0, %v8775_v44 }
  0xc4   : > { %7941 = vmatprep.subr.bf16.mxu0 %v908_v45 }
  0xc6   : > { %v1039_v5 = vpop.permute.xlu1 %1038  ;;  %v1044_v12 = vpop.permute.xlu0 %1043 }
  0xc7   : > { %7942 = vmatpush3.bf16.msra.mxu0 %v908_v45 }
  0xca   : > { %7944 = vmatmul.mubr.msk.bf16.vlgmr.msra.gmra.mrb[0].mxu0 %vm567_vm0, %v8776_v46  ;;  %v1103_v24 = vpop.permute.xlu1 %1102  ;;  %v1108_v32 = vpop.permute.xlu0 %1107 }
  0xcb   : > { %7947 = vmatprep.mubr.msk.bf16.mxu0 %vm567_vm0, %v8777_v47 }
  0xd2   : > { %7948 = vmatmul.mubr.msk.bf16.gmra.mrb[4].mxu0 %vm567_vm0, %v8778_v48 }
 0x19d   : > { %v7945_v61 = vpop.f32.mrb[0].mxu0 }
 0x19e   : > { %v1048_v62 = vadd.f32 %v7945_v61, %v1019_v53  ;;  %v959_v63 = vpop.f32.mrb[1].mxu0  ;;  %v8779_v53 = vld [vmem:[%s10160_s6 + $0x10] sm:$0xff]  }
 0x19f   : > { %v1046_v0 = vadd.f32 %v1009_v50, %v959_v63  ;;  %v7946_v1 = vpop.f32.mrb[2].mxu0  ;;  %7959 = vmatprep.mubr.msk.bf16.mxu1 %vm567_vm0, %v8779_v53  ;;  %v1501_v61 = vld [vmem:[%s10121_s7 + $0x10] sm:$0xff] }
 0x1a0   : > { %vm1056_vm3 = vcmp.ge.f32.partialorder %v1048_v62, 0.0  ;;  %v1112_v2 = vmul.f32 %v1083_v55, %v1048_v62  ;;  %v1049_v3 = vadd.f32 %v7946_v1, %v1024_v54  ;;  %v962_v4 = vpop.f32.mrb[3].mxu0  ;;  %v1533_v63 = vld [vmem:[%s10122_s8 + $0x10] sm:$0xff] }
 0x1a1   : > { %vm1054_vm4 = vcmp.ge.f32.partialorder %v1046_v0, 0.0  ;;  %v1110_v6 = vmul.f32 %v1073_v51, %v1046_v0  ;;  %v1047_v8 = vadd.f32 %v1014_v49, %v962_v4  ;;  %v8780_v4 = vld [vmem:[%s10160_s6 + $0x18] sm:$0xff]  }
 0x1a2   : > { %v1120_v9 = vsel %vm1056_vm3, %v1048_v62, %v1112_v2  ;;  %vm1057_vm5 = vcmp.ge.f32.partialorder %v1049_v3, 0.0  ;;  %v1113_v10 = vmul.f32 %v1088_v56, %v1049_v3  ;;  %v1500_v56 = vld [vmem:[%s10121_s7 + $0x8] sm:$0xff]  ;;  %v1534_v62 = vld [vmem:[%s10122_s8 + $0x18] sm:$0xff] }
 0x1a3   : > { %v1118_v13 = vsel %vm1054_vm4, %v1046_v0, %v1110_v6  ;;  %vm1055_vm6 = vcmp.ge.f32.partialorder %v1047_v8, 0.0  ;;  %v1111_v14 = vmul.f32 %v1078_v52, %v1047_v8  ;;  %v1134_v18 = vmul.f32 %v7052_v11, %v1120_v9  ;;  %v8782_v6 = vld [vmem:[%s10160_s6 + $0x8] sm:$0xff]   ;;  %v8783_v9 = vld [vmem:[%s10160_s6 + $0x20] sm:$0xff]  }
 0x1a4   : > { %v1121_v15 = vsel %vm1057_vm5, %v1049_v3, %v1113_v10  ;;  %v1132_v22 = vmul.f32 %v7052_v11, %v1118_v13  ;;  %v8784_v13 = vld [vmem:[%s10160_s6 + $0x28] sm:$0xff]   ;;  %vm1583_vm4 = vcmask 293984   ;;  %vm1615_vm5 = vcmask 261120  }
 0x1a5   : > { %v1119_v16 = vsel %vm1055_vm6, %v1047_v8, %v1111_v14  ;;  %v7949_v17 = vpop.f32.mrb[4].mxu0  ;;  %v1135_v19 = vmul.f32 %v7052_v11, %v1121_v15  ;;  %v8785_v15 = vld [vmem:[%s10160_s6 + $0x30] sm:$0xff]  }
 0x1a6   : > { %v1052_v20 = vadd.f32 %v7949_v17, %v1039_v5  ;;  %v975_v21 = vpop.f32.mrb[5].mxu0  ;;  %v1133_v23 = vmul.f32 %v7052_v11, %v1119_v16  ;;  %v8781_v5 = vld [vmem:[%s10160_s6] sm:$0xff]  }
 0x1a7   : > { %v1050_v25 = vadd.f32 %v1029_v57, %v975_v21  ;;  %v7950_v26 = vpop.f32.mrb[6].mxu0  ;;  %v1141_v27 = vpack.c.bf16 %v1135_v19, %v1134_v18  ;;  %v1499_v57 = vld [vmem:[%s10121_s7] sm:$0xff]  ;;  %v8786_v19 = vld [vmem:[%s10160_s6 + $0x38] sm:$0xff]  }
 0x1a8   : > { %vm1060_vm7 = vcmp.ge.f32.partialorder %v1052_v20, 0.0  ;;  %v1116_v28 = vmul.f32 %v1103_v24, %v1052_v20  ;;  %v1053_v29 = vadd.f32 %v7950_v26, %v1044_v12  ;;  %v978_v30 = vpop.f32.mrb[7].mxu0  ;;  %v1140_v31 = vpack.c.bf16 %v1133_v23, %v1132_v22 }
 0x1a9   : > { %vm1058_vm8 = vcmp.ge.f32.partialorder %v1050_v25, 0.0  ;;  %v1114_v33 = vmul.f32 %v1093_v59, %v1050_v25  ;;  %v1051_v34 = vadd.f32 %v1034_v58, %v978_v30  ;;  %1151 = vrot.lane.b32.xlu0 %v1141_v27, %s8917_s20  ;;  %v1532_v58 = vld [vmem:[%s10122_s8 + $0x8] sm:$0xff]  ;;  %v1531_v59 = vld [vmem:[%s10122_s8] sm:$0xff] }
 0x1aa   : > { %v1124_v35 = vsel %vm1060_vm7, %v1052_v20, %v1116_v28  ;;  %vm1061_vm9 = vcmp.ge.f32.partialorder %v1053_v29, 0.0  ;;  %v1117_v36 = vmul.f32 %v1108_v32, %v1053_v29  ;;  %1145 = vrot.lane.b32.xlu1 %v1140_v31, %s8918_s21  ;;  %s10168_s21 = smov 122  }
 0x1ab   : > { %v1122_v37 = vsel %vm1058_vm8, %v1050_v25, %v1114_v33  ;;  %vm1059_vm10 = vcmp.ge.f32.partialorder %v1051_v34, 0.0  ;;  %v1115_v38 = vmul.f32 %v1098_v60, %v1051_v34  ;;  %v1138_v41 = vmul.f32 %v7052_v11, %v1124_v35  ;;  %v1502_v60 = vld [vmem:[%s10121_s7 + $0x18] sm:$0xff] }
 0x1ac   : > { %v1125_v39 = vsel %vm1061_vm9, %v1053_v29, %v1117_v36  ;;  %v1136_v43 = vmul.f32 %v7052_v11, %v1122_v37 }
 0x1ad   : > { %v1123_v40 = vsel %vm1059_vm10, %v1051_v34, %v1115_v38  ;;  %v1139_v42 = vmul.f32 %v7052_v11, %v1125_v39  ;;  %v9264_v39 = vld [vmem:[%s10116_s2] ss:$0 sm:$0xff] }
 0x1ae   : > { %v1137_v44 = vmul.f32 %v7052_v11, %v1123_v40 }
 0x1af   : > { %v1143_v45 = vpack.c.bf16 %v1139_v42, %v1138_v41 }
 0x1b0   : > { %v1142_v46 = vpack.c.bf16 %v1137_v44, %v1136_v43 }
 0x1b1   : > { %1163 = vrot.lane.b32.xlu0 %v1143_v45, %s8919_s24  ;;  %s10147_s24 = smov 12  }
 0x1b2   : > { %1157 = vrot.lane.b32.xlu1 %v1142_v46, %s8920_s25  ;;  %s10161_s25 = smov 117  }
 0x21b   : > { %v1152_v47 = vpop.permute.xlu0 %1151 }
 0x21c   : > { %1155 = vst.msk [vmem:[#allocation2 + $0x8] sm:$0xff] %vm1154_vm11, %v1152_v47  ;;  %v1146_v48 = vpop.permute.xlu1 %1145 }
 0x21d   : > { %1149 = vst.msk [vmem:[#allocation2] sm:$0xff] %vm1148_vm12, %v1146_v48 }
 0x223   : > { %v1164_v49 = vpop.permute.xlu0 %1163  ;;  %v1173_v50 = vld [vmem:[#allocation2 + $0x8] sm:$0xff] }
 0x224   : > { %1167 = vst.msk [vmem:[#allocation2 + $0x18] sm:$0xff] %vm1166_vm13, %v1164_v49  ;;  %v1158_v51 = vpop.permute.xlu1 %1157  ;;  %1197 = vrot.lane.b32.xlu0 %v1173_v50, %s8913_s19  ;;  %v1172_v52 = vld [vmem:[#allocation2] sm:$0xff] }
 0x225   : > { %1161 = vst.msk [vmem:[#allocation2 + $0x10] sm:$0xff] %vm1160_vm14, %v1158_v51  ;;  %1195 = vrot.lane.b32.xlu1 %v1172_v52, %s8913_s19 }
 0x22b   : > { %v1175_v54 = vld [vmem:[#allocation2 + $0x18] sm:$0xff] }
 0x22c   : > { %1201 = vrot.lane.b32.xlu0 %v1175_v54, %s8913_s19  ;;  %v1174_v55 = vld [vmem:[#allocation2 + $0x10] sm:$0xff] }
 0x22d   : > { %1199 = vrot.lane.b32.xlu1 %v1174_v55, %s8913_s19  ;;  %s10131_s19 = smov 115  }
 0x230   : > { %1344 = vrot.lane.b32.xlu0 %v1173_v50, %s10145_s22 }
 0x231   : > { %1342 = vrot.lane.b32.xlu1 %v1172_v52, %s10145_s22 }
 0x234   : > { %1348 = vrot.lane.b32.xlu0 %v1175_v54, %s10145_s22 }
 0x235   : > { %1346 = vrot.lane.b32.xlu1 %v1174_v55, %s10145_s22 }
 0x238   : > { %1430 = vrot.lane.b32.xlu0 %v1173_v50, %s10141_s23 }
 0x239   : > { %1428 = vrot.lane.b32.xlu1 %v1172_v52, %s10141_s23 }
 0x23c   : > { %1434 = vrot.lane.b32.xlu0 %v1175_v54, %s10141_s23 }
 0x23d   : > { %1432 = vrot.lane.b32.xlu1 %v1174_v55, %s10141_s23 }
 0x240   : > { %1510 = vperm.xlu0 %8757, %v1500_v56   ;;  %v2302_v56 = vld [vmem:[%s10124_s10] sm:$0xff] }
 0x241   : > { %1505 = vperm.xlu1 %8758, %v1499_v57   ;;  %v2335_v57 = vld [vmem:[%s10125_s11 + $0x8] sm:$0xff] }
 0x244   : > { %1542 = vperm.xlu0 %8757, %v1532_v58   ;;  %v2334_v58 = vld [vmem:[%s10125_s11] sm:$0xff] }
 0x245   : > { %1537 = vperm.xlu1 %8758, %v1531_v59   ;;  %v2305_v59 = vld [vmem:[%s10124_s10 + $0x18] sm:$0xff] }
 0x248   : > { %1520 = vperm.xlu0 %8757, %v1502_v60   ;;  %v2304_v60 = vld [vmem:[%s10124_s10 + $0x10] sm:$0xff] }
 0x249   : > { %1515 = vperm.xlu1 %8758, %v1501_v61   ;;  %v2337_v61 = vld [vmem:[%s10125_s11 + $0x18] sm:$0xff] }
 0x24c   : > { %1552 = vperm.xlu0 %8757, %v1534_v62   ;;  %v2336_v62 = vld [vmem:[%s10125_s11 + $0x10] sm:$0xff] }
 0x24d   : > { %1547 = vperm.xlu1 %8758, %v1533_v63  }
 0x296   : > { %v1198_v1 = vpop.permute.xlu0 %1197 }
 0x297   : > { %v1196_v0 = vpop.permute.xlu1 %1195 }
 0x298   : > { %7951 = vmatprep.subr.bf16.mxu1 %v1196_v0 }
 0x299   : > { %7952 = vmatpush3.bf16.msra.mxu1 %v1196_v0 }
 0x29a   : > { %7953 = vmatprep.subr.bf16.mxu1 %v1198_v1 }
 0x29d   : > { %7954 = vmatpush3.bf16.msra.mxu1 %v1198_v1  ;;  %v8788_v1 = vld [vmem:[%s10123_s9 + $0x18] sm:$0xff]  }
 0x29e   : > { %v1202_v3 = vpop.permute.xlu0 %1201 }
 0x29f   : > { %v1200_v2 = vpop.permute.xlu1 %1199 }
 0x2a0   : > { %7955 = vmatprep.subr.bf16.mxu1 %v1200_v2 }
 0x2a1   : > { %7956 = vmatpush3.bf16.msra.mxu1 %v1200_v2 }
 0x2a2   : > { %7957 = vmatprep.subr.bf16.mxu1 %v1202_v3  ;;  %v1345_v10 = vpop.permute.xlu0 %1344 }
 0x2a3   : > { %v1343_v8 = vpop.permute.xlu1 %1342 }
 0x2a5   : > { %7958 = vmatpush3.bf16.msra.mxu1 %v1202_v3  ;;  %v8789_v3 = vld [vmem:[%s10123_s9] sm:$0xff]  }
 0x2a6   : > { %7963 = vmatprep.subr.bf16.mxu1 %v1172_v52  ;;  %v1349_v12 = vpop.permute.xlu0 %1348 }
 0x2a7   : > { %v1347_v11 = vpop.permute.xlu1 %1346 }
 0x2a8   : > { %7960 = vmatmul.mubr.msk.bf16.vlgmr.msra.gmra.mrb[0].mxu1 %vm567_vm0, %v8780_v4 }
 0x2a9   : > { %7964 = vmatpush3.bf16.msra.mxu1 %v1172_v52  ;;  %7971 = vmatprep.mubr.msk.bf16.mxu1 %vm567_vm0, %v8781_v5  ;;  %v8787_v52 = vld [vmem:[%s10123_s9 + $0x10] sm:$0xff]  }
 0x2aa   : > { %7965 = vmatprep.subr.bf16.mxu1 %v1173_v50  ;;  %v1431_v16 = vpop.permute.xlu0 %1430 }
 0x2ab   : > { %v1429_v14 = vpop.permute.xlu1 %1428 }
 0x2ad   : > { %7966 = vmatpush3.bf16.msra.mxu1 %v1173_v50 }
 0x2ae   : > { %7967 = vmatprep.subr.bf16.mxu1 %v1174_v55  ;;  %v1435_v18 = vpop.permute.xlu0 %1434 }
 0x2af   : > { %v1433_v17 = vpop.permute.xlu1 %1432 }
 0x2b1   : > { %7968 = vmatpush3.bf16.msra.mxu1 %v1174_v55  ;;  %v2303_v55 = vld [vmem:[%s10124_s10 + $0x8] sm:$0xff] }
 0x2b2   : > { %7969 = vmatprep.subr.bf16.mxu1 %v1175_v54 }
 0x2b5   : > { %7970 = vmatpush3.bf16.msra.mxu1 %v1175_v54 }
 0x2b6   : > { %7975 = vmatprep.subr.bf16.mxu1 %v1343_v8 }
 0x2b8   : > { %7972 = vmatmul.mubr.msk.bf16.vlgmr.msra.gmra.mrb[0].mxu1 %vm567_vm0, %v8782_v6  ;;  %v8790_v6 = vld [vmem:[%s10123_s9 + $0x8] sm:$0xff]  }
 0x2b9   : > { %7976 = vmatpush3.bf16.msra.mxu1 %v1343_v8  ;;  %7983 = vmatprep.mubr.msk.bf16.mxu1 %vm567_vm0, %v8783_v9  ;;  %v8791_v8 = vld [vmem:[%s10123_s9 + $0x20] sm:$0xff]  }
 0x2ba   : > { %7977 = vmatprep.subr.bf16.mxu1 %v1345_v10 }
 0x2bd   : > { %7978 = vmatpush3.bf16.msra.mxu1 %v1345_v10 }
 0x2be   : > { %7979 = vmatprep.subr.bf16.mxu1 %v1347_v11 }
 0x2bf   : > { %v1511_v21 = vpop.permute.xlu0 %1510 }
 0x2c0   : > { %v1506_v20 = vpop.permute.xlu1 %1505 }
 0x2c1   : > { %7980 = vmatpush3.bf16.msra.mxu1 %v1347_v11  ;;  %v8792_v11 = vld [vmem:[%s10123_s9 + $0x28] sm:$0xff]  }
 0x2c2   : > { %7981 = vmatprep.subr.bf16.mxu1 %v1349_v12 }
 0x2c3   : > { %v1543_v23 = vpop.permute.xlu0 %1542 }
 0x2c4   : > { %v1538_v22 = vpop.permute.xlu1 %1537 }
 0x2c5   : > { %7982 = vmatpush3.bf16.msra.mxu1 %v1349_v12  ;;  %v8793_v12 = vld [vmem:[%s10123_s9 + $0x30] sm:$0xff]  }
 0x2c6   : > { %7987 = vmatprep.subr.bf16.mxu1 %v1429_v14 }
 0x2c7   : > { %v1521_v25 = vpop.permute.xlu0 %1520 }
 0x2c8   : > { %7984 = vmatmul.mubr.msk.bf16.vlgmr.msra.gmra.mrb[0].mxu1 %vm567_vm0, %v8784_v13  ;;  %v1516_v24 = vpop.permute.xlu1 %1515 }
 0x2c9   : > { %7988 = vmatpush3.bf16.msra.mxu1 %v1429_v14  ;;  %7995 = vmatprep.mubr.msk.bf16.mxu1 %vm567_vm0, %v8785_v15  ;;  %v8794_v15 = vld [vmem:[%s10123_s9 + $0x38] sm:$0xff]  }
 0x2ca   : > { %7989 = vmatprep.subr.bf16.mxu1 %v1431_v16 }
 0x2cb   : > { %v1553_v35 = vpop.permute.xlu0 %1552 }
 0x2cc   : > { %v1548_v29 = vpop.permute.xlu1 %1547 }
 0x2cd   : > { %7990 = vmatpush3.bf16.msra.mxu1 %v1431_v16  ;;  %v8795_v16 = vld [vmem:[%s10123_s9 + $0x40] sm:$0xff]  }
 0x2ce   : > { %7991 = vmatprep.subr.bf16.mxu1 %v1433_v17 }
 0x2d1   : > { %7992 = vmatpush3.bf16.msra.mxu1 %v1433_v17 }
 0x2d2   : > { %7993 = vmatprep.subr.bf16.mxu1 %v1435_v18 }
 0x2d5   : > { %7994 = vmatpush3.bf16.msra.mxu1 %v1435_v18 }
 0x2d8   : > { %7996 = vmatmul.mubr.msk.bf16.vlgmr.msra.gmra.mrb[0].mxu1 %vm567_vm0, %v8786_v19  ;;  %v8796_v19 = vld [vmem:[%s10123_s9 + $0x48] sm:$0xff]  }
 0x2d9   : > { %8003 = vmatprep.mubr.msk.bf16.mxu1 %vm1615_vm5, %v8787_v52 }
 0x3ab   : > { %v7997_v26 = vpop.f32.mrb[0].mxu1 }
 0x3ac   : > { %v1525_v27 = vadd.f32 %v7997_v26, %v1516_v24  ;;  %v1480_v28 = vpop.f32.mrb[1].mxu1  ;;  %v8799_v24 = vld [vmem:[%s10123_s9 + $0x60] sm:$0xff]  }
 0x3ad   : > { %v1523_v30 = vadd.f32 %v1506_v20, %v1480_v28  ;;  %v7998_v31 = vpop.f32.mrb[2].mxu1  ;;  %v8797_v20 = vld [vmem:[%s10123_s9 + $0x50] sm:$0xff]  }
 0x3ae   : > { %vm1529_vm0 = vcmp.ge.f32.partialorder %v1525_v27, 0.0  ;;  %v1557_v32 = vmul.f32 %v1548_v29, %v1525_v27  ;;  %v1526_v33 = vadd.f32 %v7998_v31, %v1521_v25  ;;  %v1483_v34 = vpop.f32.mrb[3].mxu1  ;;  %v8801_v28 = vld [vmem:[%s10123_s9 + $0x70] sm:$0xff]   ;;  %v8802_v31 = vld [vmem:[%s10123_s9 + $0x78] sm:$0xff]  }
 0x3af   : > { %vm1527_vm1 = vcmp.ge.f32.partialorder %v1523_v30, 0.0  ;;  %v1555_v36 = vmul.f32 %v1538_v22, %v1523_v30  ;;  %v1524_v7 = vadd.f32 %v1511_v21, %v1483_v34  ;;  %v8804_v34 = vld [vmem:[%s10123_s9 + $0x88] sm:$0xff]  }
 0x3b0   : > { %v1561_v37 = vsel %vm1529_vm0, %v1525_v27, %v1557_v32  ;;  %vm1530_vm2 = vcmp.ge.f32.partialorder %v1526_v33, 0.0  ;;  %v1558_v38 = vmul.f32 %v1553_v35, %v1526_v33  ;;  %v8800_v27 = vld [vmem:[%s10123_s9 + $0x68] sm:$0xff]   ;;  %v8803_v32 = vld [vmem:[%s10123_s9 + $0x80] sm:$0xff]  }
 0x3b1   : > { %v1559_v40 = vsel %vm1527_vm1, %v1523_v30, %v1555_v36  ;;  %vm1528_vm3 = vcmp.ge.f32.partialorder %v1524_v7, 0.0  ;;  %v1556_v41 = vmul.f32 %v1543_v23, %v1524_v7  ;;  %v1571_v44 = vmul.f32 %v9264_v39, %v1561_v37  ;;  %v8798_v23 = vld [vmem:[%s10123_s9 + $0x58] sm:$0xff]  }
 0x3b2   : > { %v1562_v42 = vsel %vm1530_vm2, %v1526_v33, %v1558_v38  ;;  %v1569_v46 = vmul.f32 %v9264_v39, %v1559_v40 }
 0x3b3   : > { %v1560_v43 = vsel %vm1528_vm3, %v1524_v7, %v1556_v41  ;;  %v1572_v45 = vmul.f32 %v9264_v39, %v1562_v42 }
 0x3b4   : > { %v1570_v47 = vmul.f32 %v9264_v39, %v1560_v43 }
 0x3b5   : > { %v1574_v48 = vpack.c.bf16 %v1572_v45, %v1571_v44 }
 0x3b6   : > { %v1573_v49 = vpack.c.bf16 %v1570_v47, %v1569_v46 }
 0x3b7   : > { %1579 = vrot.lane.b32.xlu0 %v1574_v48, %s10147_s24 }
 0x3b8   : > { %1577 = vrot.lane.b32.xlu1 %v1573_v49, %s10147_s24 }
 0x429   : > { %v1580_v50 = vpop.permute.xlu0 %1579 }
 0x42a   : > { %1585 = vst.msk [vmem:[#allocation3 + $0x8] sm:$0xff] %vm1583_vm4, %v1580_v50  ;;  %v1578_v51 = vpop.permute.xlu1 %1577 }
 0x42b   : > { %1584 = vst.msk [vmem:[#allocation3] sm:$0xff] %vm1583_vm4, %v1578_v51 }
 0x431   : > { %v1591_v53 = vld [vmem:[#allocation3 + $0x8] sm:$0xff] }
 0x432   : > { %1611 = vrot.lane.b32.xlu0 %v1591_v53, %s10145_s22  ;;  %v1590_v54 = vld [vmem:[#allocation3] sm:$0xff] }
 0x433   : > { %1609 = vrot.lane.b32.xlu1 %v1590_v54, %s10145_s22 }
 0x436   : > { %1683 = vrot.lane.b32.xlu0 %v1591_v53, %s10143_s27 }
 0x437   : > { %1681 = vrot.lane.b32.xlu1 %v1590_v54, %s10143_s27 }
 0x43a   : > { %1759 = vrot.lane.b32.xlu0 %v1591_v53, %s10141_s23 }
 0x43b   : > { %1757 = vrot.lane.b32.xlu1 %v1590_v54, %s10141_s23 }
 0x43e   : > { %1839 = vrot.lane.b32.xlu0 %v1591_v53, %s10139_s28 }
 0x43f   : > { %1837 = vrot.lane.b32.xlu1 %v1590_v54, %s10139_s28  ;;  %s10165_s28 = smov 110  }
 0x442   : > { %1919 = vrot.lane.b32.xlu0 %v1591_v53, %s10135_s15 }
 0x443   : > { %1917 = vrot.lane.b32.xlu1 %v1590_v54, %s10135_s15  ;;  %s10166_s15 = smov 109  }
 0x446   : > { %1999 = vrot.lane.b32.xlu0 %v1591_v53, %s10131_s19 }
 0x447   : > { %1997 = vrot.lane.b32.xlu1 %v1590_v54, %s10131_s19  ;;  %s10163_s19 = smov 115  }
 0x44a   : > { %2079 = vrot.lane.b32.xlu0 %v1591_v53, %s10129_s16 }
 0x44b   : > { %2077 = vrot.lane.b32.xlu1 %v1590_v54, %s10129_s16  ;;  %s10164_s16 = smov 111  }
 0x44e   : > { %2159 = vrot.lane.b32.xlu0 %v1591_v53, %s10133_s17 }
 0x44f   : > { %2157 = vrot.lane.b32.xlu1 %v1590_v54, %s10133_s17  ;;  %s10167_s17 = smov 12  }
 0x452   : > { %2239 = vrot.lane.b32.xlu0 %v1591_v53, %s10137_s18 }
 0x453   : > { %2237 = vrot.lane.b32.xlu1 %v1590_v54, %s10137_s18 }
 0x456   : > { %2313 = vperm.xlu0 %8757, %v2303_v55  }
 0x457   : > { %2308 = vperm.xlu1 %8758, %v2302_v56  }
 0x45a   : > { %2345 = vperm.xlu0 %8757, %v2335_v57  }
 0x45b   : > { %2340 = vperm.xlu1 %8758, %v2334_v58  }
 0x45e   : > { %2323 = vperm.xlu0 %8757, %v2305_v59  }
 0x45f   : > { %2318 = vperm.xlu1 %8758, %v2304_v60  }
 0x462   : > { %2355 = vperm.xlu0 %8757, %v2337_v61  }
 0x463   : > { %2350 = vperm.xlu1 %8758, %v2336_v62  }
 0x4a4   : > { %v1612_v0 = vpop.permute.xlu0 %1611 }
 0x4a5   : > { %v1610_v63 = vpop.permute.xlu1 %1609 }
 0x4a6   : > { %7999 = vmatprep.subr.bf16.mxu1 %v1610_v63 }
 0x4a7   : > { %8000 = vmatpush3.bf16.msra.mxu1 %v1610_v63 }
 0x4a8   : > { %8001 = vmatprep.subr.bf16.mxu1 %v1612_v0  ;;  %v1684_v4 = vpop.permute.xlu0 %1683 }
 0x4a9   : > { %v1682_v2 = vpop.permute.xlu1 %1681 }
 0x4ab   : > { %8002 = vmatpush3.bf16.msra.mxu1 %v1612_v0 }
 0x4ac   : > { %8007 = vmatprep.subr.bf16.mxu1 %v1682_v2  ;;  %v1760_v9 = vpop.permute.xlu0 %1759 }
 0x4ad   : > { %v1758_v5 = vpop.permute.xlu1 %1757 }
 0x4ae   : > { %8004 = vmatmul.mubr.msk.bf16.vlgmr.msra.gmra.mrb[4].mxu1 %vm1615_vm5, %v8788_v1 }
 0x4af   : > { %8008 = vmatpush3.bf16.msra.mxu1 %v1682_v2  ;;  %8011 = vmatprep.mubr.msk.bf16.mxu1 %vm1615_vm5, %v8789_v3  ;;  %v8805_v3 = vld [vmem:[%s10123_s9 + $0xa0] sm:$0xff]  }
 0x4b0   : > { %8009 = vmatprep.subr.bf16.mxu1 %v1684_v4  ;;  %v1840_v13 = vpop.permute.xlu0 %1839  ;;  %8075 = vmatprep.mubr.msk.bf16.mxu0 %vm1615_vm5, %v8805_v3 }
 0x4b1   : > { %v1838_v10 = vpop.permute.xlu1 %1837 }
 0x4b3   : > { %8010 = vmatpush3.bf16.msra.mxu1 %v1684_v4 }
 0x4b4   : > { %8015 = vmatprep.subr.bf16.mxu1 %v1758_v5  ;;  %v1920_v17 = vpop.permute.xlu0 %1919 }
 0x4b5   : > { %v1918_v14 = vpop.permute.xlu1 %1917 }
 0x4b8   : > { %v2000_v21 = vpop.permute.xlu0 %1999 }
 0x4b9   : > { %v1998_v18 = vpop.permute.xlu1 %1997 }
 0x4ba   : > { %8012 = vmatmul.mubr.msk.bf16.vlgmr.msra.gmra.mrb[4].mxu1 %vm1615_vm5, %v8790_v6  ;;  %v7223_v6 = vld [vmem:[%s10124_s10 + $0x28] sm:$0xff] }
 0x4bb   : > { %8016 = vmatpush3.bf16.msra.mxu1 %v1758_v5  ;;  %8019 = vmatprep.mubr.msk.bf16.mxu1 %vm1615_vm5, %v8791_v8  ;;  %v7222_v8 = vld [vmem:[%s10124_s10 + $0x20] sm:$0xff] }
 0x4bc   : > { %8017 = vmatprep.subr.bf16.mxu1 %v1760_v9  ;;  %v2080_v25 = vpop.permute.xlu0 %2079 }
 0x4bd   : > { %v2078_v22 = vpop.permute.xlu1 %2077 }
 0x4bf   : > { %8018 = vmatpush3.bf16.msra.mxu1 %v1760_v9  ;;  %v7227_v9 = vld [vmem:[%s10125_s11 + $0x28] sm:$0xff] }
 0x4c0   : > { %8023 = vmatprep.subr.bf16.mxu1 %v1838_v10  ;;  %v2160_v29 = vpop.permute.xlu0 %2159 }
 0x4c1   : > { %v2158_v26 = vpop.permute.xlu1 %2157 }
 0x4c4   : > { %v2240_v33 = vpop.permute.xlu0 %2239 }
 0x4c5   : > { %v2238_v30 = vpop.permute.xlu1 %2237 }
 0x4c6   : > { %8020 = vmatmul.mubr.msk.bf16.vlgmr.msra.gmra.mrb[4].mxu1 %vm1615_vm5, %v8792_v11  ;;  %v7225_v11 = vld [vmem:[%s10124_s10 + $0x38] sm:$0xff] }
 0x4c7   : > { %8024 = vmatpush3.bf16.msra.mxu1 %v1838_v10  ;;  %8027 = vmatprep.mubr.msk.bf16.mxu1 %vm1615_vm5, %v8793_v12  ;;  %v7226_v10 = vld [vmem:[%s10125_s11 + $0x20] sm:$0xff]  ;;  %v7224_v12 = vld [vmem:[%s10124_s10 + $0x30] sm:$0xff] }
 0x4c8   : > { %8025 = vmatprep.subr.bf16.mxu1 %v1840_v13 }
 0x4cb   : > { %8026 = vmatpush3.bf16.msra.mxu1 %v1840_v13  ;;  %v7229_v13 = vld [vmem:[%s10125_s11 + $0x38] sm:$0xff] }
 0x4cc   : > { %8031 = vmatprep.subr.bf16.mxu1 %v1918_v14 }
 0x4d2   : > { %8028 = vmatmul.mubr.msk.bf16.vlgmr.msra.gmra.mrb[4].mxu1 %vm1615_vm5, %v8794_v15 }
 0x4d3   : > { %8032 = vmatpush3.bf16.msra.mxu1 %v1918_v14  ;;  %8035 = vmatprep.mubr.msk.bf16.mxu1 %vm1615_vm5, %v8795_v16  ;;  %v7228_v14 = vld [vmem:[%s10125_s11 + $0x30] sm:$0xff] }
 0x4d4   : > { %8033 = vmatprep.subr.bf16.mxu1 %v1920_v17 }
 0x4d5   : > { %v2314_v36 = vpop.permute.xlu0 %2313 }
 0x4d6   : > { %v2309_v35 = vpop.permute.xlu1 %2308 }
 0x4d7   : > { %8034 = vmatpush3.bf16.msra.mxu1 %v1920_v17  ;;  %v8806_v17 = vld [vmem:[%s10123_s9 + $0xa8] sm:$0xff]  }
 0x4d8   : > { %8039 = vmatprep.subr.bf16.mxu1 %v1998_v18 }
 0x4d9   : > { %v2346_v37 = vpop.permute.xlu0 %2345 }
 0x4da   : > { %v2341_v7 = vpop.permute.xlu1 %2340 }
 0x4dd   : > { %v2324_v40 = vpop.permute.xlu0 %2323 }
 0x4de   : > { %8036 = vmatmul.mubr.msk.bf16.vlgmr.msra.gmra.mrb[4].mxu1 %vm1615_vm5, %v8796_v19  ;;  %v2319_v38 = vpop.permute.xlu1 %2318  ;;  %v8807_v19 = vld [vmem:[%s10123_s9 + $0x90] sm:$0xff]  }
 0x4df   : > { %8040 = vmatpush3.bf16.msra.mxu1 %v1998_v18  ;;  %8043 = vmatprep.mubr.msk.bf16.mxu1 %vm1615_vm5, %v8797_v20 }
 0x4e0   : > { %8041 = vmatprep.subr.bf16.mxu1 %v2000_v21 }
 0x4e1   : > { %v2356_v50 = vpop.permute.xlu0 %2355 }
 0x4e2   : > { %v2351_v44 = vpop.permute.xlu1 %2350 }
 0x4e3   : > { %8042 = vmatpush3.bf16.msra.mxu1 %v2000_v21 }
 0x4e4   : > { %8047 = vmatprep.subr.bf16.mxu1 %v2078_v22 }
 0x4ea   : > { %8044 = vmatmul.mubr.msk.bf16.vlgmr.msra.gmra.mrb[4].mxu1 %vm1615_vm5, %v8798_v23  ;;  %v8809_v23 = vld [vmem:[%s10123_s9 + $0xb0] sm:$0xff]  }
 0x4eb   : > { %8048 = vmatpush3.bf16.msra.mxu1 %v2078_v22  ;;  %8051 = vmatprep.mubr.msk.bf16.mxu1 %vm1615_vm5, %v8799_v24  ;;  %v8808_v22 = vld [vmem:[%s10123_s9 + $0x98] sm:$0xff]  }
 0x4ec   : > { %8049 = vmatprep.subr.bf16.mxu1 %v2080_v25 }
 0x4ef   : > { %8050 = vmatpush3.bf16.msra.mxu1 %v2080_v25 }
 0x4f0   : > { %8055 = vmatprep.subr.bf16.mxu1 %v2158_v26 }
 0x4f6   : > { %8052 = vmatmul.mubr.msk.bf16.vlgmr.msra.gmra.mrb[4].mxu1 %vm1615_vm5, %v8800_v27  ;;  %v8811_v27 = vld [vmem:[%s10123_s9 + $0xc0] sm:$0xff]  }
 0x4f7   : > { %8056 = vmatpush3.bf16.msra.mxu1 %v2158_v26  ;;  %8059 = vmatprep.mubr.msk.bf16.mxu1 %vm1615_vm5, %v8801_v28  ;;  %v8810_v26 = vld [vmem:[%s10123_s9 + $0xb8] sm:$0xff]  }
 0x4f8   : > { %8057 = vmatprep.subr.bf16.mxu1 %v2160_v29 }
 0x4fb   : > { %8058 = vmatpush3.bf16.msra.mxu1 %v2160_v29 }
 0x4fc   : > { %8063 = vmatprep.subr.bf16.mxu1 %v2238_v30 }
 0x502   : > { %8060 = vmatmul.mubr.msk.bf16.vlgmr.msra.gmra.mrb[4].mxu1 %vm1615_vm5, %v8802_v31  ;;  %v8813_v31 = vld [vmem:[%s10123_s9 + $0xd0] sm:$0xff]  }
 0x503   : > { %8064 = vmatpush3.bf16.msra.mxu1 %v2238_v30  ;;  %8067 = vmatprep.mubr.msk.bf16.mxu1 %vm1615_vm5, %v8803_v32  ;;  %v8812_v30 = vld [vmem:[%s10123_s9 + $0xc8] sm:$0xff]  }
 0x504   : > { %8065 = vmatprep.subr.bf16.mxu1 %v2240_v33 }
 0x507   : > { %8066 = vmatpush3.bf16.msra.mxu1 %v2240_v33 }
 0x50e   : > { %8068 = vmatmul.mubr.msk.bf16.vlgmr.msra.gmra.mrb[4].mxu1 %vm1615_vm5, %v8804_v34  ;;  %v8814_v34 = vld [vmem:[%s10123_s9 + $0xd8] sm:$0xff]  }
 0x5e1   : > { %v8069_v41 = vpop.f32.mrb[4].mxu1 }
 0x5e2   : > { %v2328_v42 = vadd.f32 %v8069_v41, %v2319_v38  ;;  %v2283_v43 = vpop.f32.mrb[5].mxu1  ;;  %v8817_v38 = vld [vmem:[%s10123_s9 + $0xf0] sm:$0xff]  }
 0x5e3   : > { %v2326_v45 = vadd.f32 %v2309_v35, %v2283_v43  ;;  %v8070_v46 = vpop.f32.mrb[6].mxu1  ;;  %v8815_v35 = vld [vmem:[%s10123_s9 + $0xe0] sm:$0xff]  }
 0x5e4   : > { %vm2332_vm6 = vcmp.ge.f32.partialorder %v2328_v42, 0.0  ;;  %v2360_v47 = vmul.f32 %v2351_v44, %v2328_v42  ;;  %v2329_v48 = vadd.f32 %v8070_v46, %v2324_v40  ;;  %v2286_v49 = vpop.f32.mrb[7].mxu1  ;;  %v8819_v43 = vld [vmem:[%s10123_s9 + $0x100] sm:$0xff]   ;;  %v8820_v46 = vld [vmem:[%s10123_s9 + $0x108] sm:$0xff]  }
 0x5e5   : > { %vm2330_vm7 = vcmp.ge.f32.partialorder %v2326_v45, 0.0  ;;  %v2358_v51 = vmul.f32 %v2341_v7, %v2326_v45  ;;  %v2327_v52 = vadd.f32 %v2314_v36, %v2286_v49  ;;  %v8822_v49 = vld [vmem:[%s10123_s9 + $0x118] sm:$0xff]  }
 0x5e6   : > { %v2364_v53 = vsel %vm2332_vm6, %v2328_v42, %v2360_v47  ;;  %vm2333_vm8 = vcmp.ge.f32.partialorder %v2329_v48, 0.0  ;;  %v2361_v54 = vmul.f32 %v2356_v50, %v2329_v48  ;;  %v8818_v42 = vld [vmem:[%s10123_s9 + $0xf8] sm:$0xff]   ;;  %v8821_v47 = vld [vmem:[%s10123_s9 + $0x110] sm:$0xff]  }
 0x5e7   : > { %v2362_v55 = vsel %vm2330_vm7, %v2326_v45, %v2358_v51  ;;  %vm2331_vm9 = vcmp.ge.f32.partialorder %v2327_v52, 0.0  ;;  %v2359_v56 = vmul.f32 %v2346_v37, %v2327_v52  ;;  %v2368_v59 = vmul.f32 %v9264_v39, %v2364_v53  ;;  %v8816_v37 = vld [vmem:[%s10123_s9 + $0xe8] sm:$0xff]  }
 0x5e8   : > { %v2365_v57 = vsel %vm2333_vm8, %v2329_v48, %v2361_v54  ;;  %v2366_v61 = vmul.f32 %v9264_v39, %v2362_v55 }
 0x5e9   : > { %v2363_v58 = vsel %vm2331_vm9, %v2327_v52, %v2359_v56  ;;  %v2369_v60 = vmul.f32 %v9264_v39, %v2365_v57 }
 0x5ea   : > { %v2367_v62 = vmul.f32 %v9264_v39, %v2363_v58 }
 0x5eb   : > { %v2371_v63 = vpack.c.bf16 %v2369_v60, %v2368_v59 }
 0x5ec   : > { %v2370_v0 = vpack.c.bf16 %v2367_v62, %v2366_v61 }
 0x5ed   : > { %2376 = vrot.lane.b32.xlu0 %v2371_v63, %s10147_s24 }
 0x5ee   : > { %2374 = vrot.lane.b32.xlu1 %v2370_v0, %s10147_s24 }
 0x65f   : > { %v2377_v1 = vpop.permute.xlu0 %2376 }
 0x660   : > { %2381 = vst.msk [vmem:[#allocation4 + $0x8] sm:$0xff] %vm1583_vm4, %v2377_v1  ;;  %v2375_v2 = vpop.permute.xlu1 %2374 }
 0x661   : > { %2380 = vst.msk [vmem:[#allocation4] sm:$0xff] %vm1583_vm4, %v2375_v2 }
 0x667   : > { %v2388_v4 = vld [vmem:[#allocation4 + $0x8] sm:$0xff] }
 0x668   : > { %2408 = vrot.lane.b32.xlu0 %v2388_v4, %s10145_s22  ;;  %v2387_v5 = vld [vmem:[#allocation4] sm:$0xff] }
 0x669   : > { %2406 = vrot.lane.b32.xlu1 %v2387_v5, %s10145_s22 }
 0x66c   : > { %2479 = vrot.lane.b32.xlu0 %v2388_v4, %s10143_s27 }
 0x66d   : > { %2477 = vrot.lane.b32.xlu1 %v2387_v5, %s10143_s27  ;;  %s10170_s27 = smov 121  }
 0x670   : > { %2555 = vrot.lane.b32.xlu0 %v2388_v4, %s10141_s23 }
 0x671   : > { %2553 = vrot.lane.b32.xlu1 %v2387_v5, %s10141_s23  ;;  %s10169_s23 = smov 123  }
 0x674   : > { %2635 = vrot.lane.b32.xlu0 %v2388_v4, %s10161_s25 }
 0x675   : > { %2633 = vrot.lane.b32.xlu1 %v2387_v5, %s10161_s25 }
 0x678   : > { %2715 = vrot.lane.b32.xlu0 %v2388_v4, %s10162_s26 }
 0x679   : > { %2713 = vrot.lane.b32.xlu1 %v2387_v5, %s10162_s26 }
 0x67c   : > { %2795 = vrot.lane.b32.xlu0 %v2388_v4, %s10163_s19 }
 0x67d   : > { %2793 = vrot.lane.b32.xlu1 %v2387_v5, %s10163_s19 }
 0x680   : > { %2875 = vrot.lane.b32.xlu0 %v2388_v4, %s10164_s16 }
 0x681   : > { %2873 = vrot.lane.b32.xlu1 %v2387_v5, %s10164_s16 }
 0x684   : > { %2955 = vrot.lane.b32.xlu0 %v2388_v4, %s10165_s28 }
 0x685   : > { %2953 = vrot.lane.b32.xlu1 %v2387_v5, %s10165_s28 }
 0x688   : > { %3035 = vrot.lane.b32.xlu0 %v2388_v4, %s10166_s15 }
 0x689   : > { %3033 = vrot.lane.b32.xlu1 %v2387_v5, %s10166_s15 }
 0x68c   : > { %3110 = vperm.xlu0 %8757, %v7223_v6  }
 0x68d   : > { %3105 = vperm.xlu1 %8758, %v7222_v8  }
 0x690   : > { %3143 = vperm.xlu0 %8757, %v7227_v9  }
 0x691   : > { %3138 = vperm.xlu1 %8758, %v7226_v10  }
 0x694   : > { %3120 = vperm.xlu0 %8757, %v7225_v11  }
 0x695   : > { %3115 = vperm.xlu1 %8758, %v7224_v12  }
 0x698   : > { %3153 = vperm.xlu0 %8757, %v7229_v13  }
 0x699   : > { %3148 = vperm.xlu1 %8758, %v7228_v14  }
 0x6da   : > { %v2409_v16 = vpop.permute.xlu0 %2408 }
 0x6db   : > { %v2407_v15 = vpop.permute.xlu1 %2406 }
 0x6dc   : > { %8071 = vmatprep.subr.bf16.mxu0 %v2407_v15 }
 0x6dd   : > { %8072 = vmatpush3.bf16.msra.mxu0 %v2407_v15 }
 0x6de   : > { %8073 = vmatprep.subr.bf16.mxu0 %v2409_v16  ;;  %v2480_v20 = vpop.permute.xlu0 %2479 }
 0x6df   : > { %v2478_v18 = vpop.permute.xlu1 %2477 }
 0x6e1   : > { %8074 = vmatpush3.bf16.msra.mxu0 %v2409_v16 }
 0x6e2   : > { %8079 = vmatprep.subr.bf16.mxu0 %v2478_v18  ;;  %v2556_v24 = vpop.permute.xlu0 %2555 }
 0x6e3   : > { %v2554_v21 = vpop.permute.xlu1 %2553 }
 0x6e4   : > { %8076 = vmatmul.mubr.msk.bf16.vlgmr.msra.gmra.mrb[8].mxu0 %vm1615_vm5, %v8806_v17 }
 0x6e5   : > { %8080 = vmatpush3.bf16.msra.mxu0 %v2478_v18  ;;  %8083 = vmatprep.mubr.msk.bf16.mxu0 %vm1615_vm5, %v8807_v19  ;;  %v8823_v19 = vld [vmem:[%s10123_s9 + $0x130] sm:$0xff]  }
 0x6e6   : > { %8081 = vmatprep.subr.bf16.mxu0 %v2480_v20  ;;  %v2636_v28 = vpop.permute.xlu0 %2635  ;;  %8147 = vmatprep.mubr.msk.bf16.mxu1 %vm1615_vm5, %v8823_v19 }
 0x6e7   : > { %v2634_v25 = vpop.permute.xlu1 %2633 }
 0x6e9   : > { %8082 = vmatpush3.bf16.msra.mxu0 %v2480_v20 }
 0x6ea   : > { %8087 = vmatprep.subr.bf16.mxu0 %v2554_v21  ;;  %v2716_v32 = vpop.permute.xlu0 %2715 }
 0x6eb   : > { %v2714_v29 = vpop.permute.xlu1 %2713 }
 0x6ee   : > { %v2796_v36 = vpop.permute.xlu0 %2795 }
 0x6ef   : > { %v2794_v33 = vpop.permute.xlu1 %2793 }
 0x6f0   : > { %8084 = vmatmul.mubr.msk.bf16.vlgmr.msra.gmra.mrb[8].mxu0 %vm1615_vm5, %v8808_v22  ;;  %v7302_v22 = vld [vmem:[%s10124_s10 + $0x40] sm:$0xff] }
 0x6f1   : > { %8088 = vmatpush3.bf16.msra.mxu0 %v2554_v21  ;;  %8091 = vmatprep.mubr.msk.bf16.mxu0 %vm1615_vm5, %v8809_v23  ;;  %v7303_v21 = vld [vmem:[%s10124_s10 + $0x48] sm:$0xff] }
 0x6f2   : > { %8089 = vmatprep.subr.bf16.mxu0 %v2556_v24  ;;  %v2876_v40 = vpop.permute.xlu0 %2875  ;;  %v7307_v23 = vld [vmem:[%s10125_s11 + $0x48] sm:$0xff] }
 0x6f3   : > { %v2874_v7 = vpop.permute.xlu1 %2873 }
 0x6f5   : > { %8090 = vmatpush3.bf16.msra.mxu0 %v2556_v24  ;;  %v7306_v24 = vld [vmem:[%s10125_s11 + $0x40] sm:$0xff] }
 0x6f6   : > { %8095 = vmatprep.subr.bf16.mxu0 %v2634_v25  ;;  %v2956_v44 = vpop.permute.xlu0 %2955 }
 0x6f7   : > { %v2954_v41 = vpop.permute.xlu1 %2953 }
 0x6fa   : > { %v3036_v48 = vpop.permute.xlu0 %3035 }
 0x6fb   : > { %v3034_v45 = vpop.permute.xlu1 %3033 }
 0x6fc   : > { %8092 = vmatmul.mubr.msk.bf16.vlgmr.msra.gmra.mrb[8].mxu0 %vm1615_vm5, %v8810_v26  ;;  %v7304_v26 = vld [vmem:[%s10124_s10 + $0x50] sm:$0xff] }
 0x6fd   : > { %8096 = vmatpush3.bf16.msra.mxu0 %v2634_v25  ;;  %8099 = vmatprep.mubr.msk.bf16.mxu0 %vm1615_vm5, %v8811_v27  ;;  %v7305_v25 = vld [vmem:[%s10124_s10 + $0x58] sm:$0xff] }
 0x6fe   : > { %8097 = vmatprep.subr.bf16.mxu0 %v2636_v28  ;;  %v7309_v27 = vld [vmem:[%s10125_s11 + $0x58] sm:$0xff] }
 0x701   : > { %8098 = vmatpush3.bf16.msra.mxu0 %v2636_v28  ;;  %v7308_v28 = vld [vmem:[%s10125_s11 + $0x50] sm:$0xff] }
 0x702   : > { %8103 = vmatprep.subr.bf16.mxu0 %v2714_v29 }
 0x708   : > { %8100 = vmatmul.mubr.msk.bf16.vlgmr.msra.gmra.mrb[8].mxu0 %vm1615_vm5, %v8812_v30 }
 0x709   : > { %8104 = vmatpush3.bf16.msra.mxu0 %v2714_v29  ;;  %8107 = vmatprep.mubr.msk.bf16.mxu0 %vm1615_vm5, %v8813_v31  ;;  %v8824_v31 = vld [vmem:[%s10123_s9 + $0x138] sm:$0xff]  }
 0x70a   : > { %8105 = vmatprep.subr.bf16.mxu0 %v2716_v32 }
 0x70b   : > { %v3111_v51 = vpop.permute.xlu0 %3110 }
 0x70c   : > { %v3106_v50 = vpop.permute.xlu1 %3105 }
 0x70d   : > { %8106 = vmatpush3.bf16.msra.mxu0 %v2716_v32 }
 0x70e   : > { %8111 = vmatprep.subr.bf16.mxu0 %v2794_v33 }
 0x70f   : > { %v3144_v53 = vpop.permute.xlu0 %3143 }
 0x710   : > { %v3139_v52 = vpop.permute.xlu1 %3138 }
 0x713   : > { %v3121_v55 = vpop.permute.xlu0 %3120 }
 0x714   : > { %8108 = vmatmul.mubr.msk.bf16.vlgmr.msra.gmra.mrb[8].mxu0 %vm1615_vm5, %v8814_v34  ;;  %v3116_v54 = vpop.permute.xlu1 %3115 }
 0x715   : > { %8112 = vmatpush3.bf16.msra.mxu0 %v2794_v33  ;;  %8115 = vmatprep.mubr.msk.bf16.mxu0 %vm1615_vm5, %v8815_v35  ;;  %v8825_v33 = vld [vmem:[%s10123_s9 + $0x120] sm:$0xff]  }
 0x716   : > { %8113 = vmatprep.subr.bf16.mxu0 %v2796_v36 }
 0x717   : > { %v3154_v1 = vpop.permute.xlu0 %3153 }
 0x718   : > { %v3149_v59 = vpop.permute.xlu1 %3148 }
 0x719   : > { %8114 = vmatpush3.bf16.msra.mxu0 %v2796_v36  ;;  %v8826_v36 = vld [vmem:[%s10123_s9 + $0x128] sm:$0xff]  }
 0x71a   : > { %8119 = vmatprep.subr.bf16.mxu0 %v2874_v7 }
 0x720   : > { %8116 = vmatmul.mubr.msk.bf16.vlgmr.msra.gmra.mrb[8].mxu0 %vm1615_vm5, %v8816_v37 }
 0x721   : > { %8120 = vmatpush3.bf16.msra.mxu0 %v2874_v7  ;;  %8123 = vmatprep.mubr.msk.bf16.mxu0 %vm1615_vm5, %v8817_v38  ;;  %v8827_v7 = vld [vmem:[%s10123_s9 + $0x140] sm:$0xff]  }
 0x722   : > { %8121 = vmatprep.subr.bf16.mxu0 %v2876_v40 }
 0x725   : > { %8122 = vmatpush3.bf16.msra.mxu0 %v2876_v40  ;;  %v8828_v40 = vld [vmem:[%s10123_s9 + $0x148] sm:$0xff]  }
 0x726   : > { %8127 = vmatprep.subr.bf16.mxu0 %v2954_v41 }
 0x72c   : > { %8124 = vmatmul.mubr.msk.bf16.vlgmr.msra.gmra.mrb[8].mxu0 %vm1615_vm5, %v8818_v42 }
 0x72d   : > { %8128 = vmatpush3.bf16.msra.mxu0 %v2954_v41  ;;  %8131 = vmatprep.mubr.msk.bf16.mxu0 %vm1615_vm5, %v8819_v43  ;;  %v8829_v41 = vld [vmem:[%s10123_s9 + $0x150] sm:$0xff]  }
 0x72e   : > { %8129 = vmatprep.subr.bf16.mxu0 %v2956_v44 }
 0x731   : > { %8130 = vmatpush3.bf16.msra.mxu0 %v2956_v44  ;;  %v8830_v44 = vld [vmem:[%s10123_s9 + $0x158] sm:$0xff]  }
 0x732   : > { %8135 = vmatprep.subr.bf16.mxu0 %v3034_v45 }
 0x738   : > { %8132 = vmatmul.mubr.msk.bf16.vlgmr.msra.gmra.mrb[8].mxu0 %vm1615_vm5, %v8820_v46 }
 0x739   : > { %8136 = vmatpush3.bf16.msra.mxu0 %v3034_v45  ;;  %8139 = vmatprep.mubr.msk.bf16.mxu0 %vm1615_vm5, %v8821_v47  ;;  %v8831_v45 = vld [vmem:[%s10123_s9 + $0x160] sm:$0xff]  }
 0x73a   : > { %8137 = vmatprep.subr.bf16.mxu0 %v3036_v48 }
 0x73d   : > { %8138 = vmatpush3.bf16.msra.mxu0 %v3036_v48  ;;  %v8832_v48 = vld [vmem:[%s10123_s9 + $0x168] sm:$0xff]  }
 0x744   : > { %8140 = vmatmul.mubr.msk.bf16.vlgmr.msra.gmra.mrb[8].mxu0 %vm1615_vm5, %v8822_v49  ;;  %v8833_v49 = vld [vmem:[%s10123_s9 + $0x170] sm:$0xff]  }
 0x817   : > { %v8141_v56 = vpop.f32.mrb[8].mxu0 }
 0x818   : > { %v3125_v57 = vadd.f32 %v8141_v56, %v3116_v54  ;;  %v3079_v58 = vpop.f32.mrb[9].mxu0  ;;  %v8836_v56 = vld [vmem:[%s10123_s9 + $0x188] sm:$0xff]  }
 0x819   : > { %v3123_v60 = vadd.f32 %v3106_v50, %v3079_v58  ;;  %v8142_v61 = vpop.f32.mrb[10].mxu0 }
 0x81a   : > { %vm3129_vm10 = vcmp.ge.f32.partialorder %v3125_v57, 0.0  ;;  %v3158_v62 = vmul.f32 %v3149_v59, %v3125_v57  ;;  %v3126_v63 = vadd.f32 %v8142_v61, %v3121_v55  ;;  %v3082_v0 = vpop.f32.mrb[11].mxu0  ;;  %v8839_v61 = vld [vmem:[%s10123_s9 + $0x1a0] sm:$0xff]  }
 0x81b   : > { %vm3127_vm11 = vcmp.ge.f32.partialorder %v3123_v60, 0.0  ;;  %v3156_v2 = vmul.f32 %v3139_v52, %v3123_v60  ;;  %v3124_v3 = vadd.f32 %v3111_v51, %v3082_v0  ;;  %v8834_v52 = vld [vmem:[%s10123_s9 + $0x178] sm:$0xff]  }
 0x81c   : > { %v3162_v4 = vsel %vm3129_vm10, %v3125_v57, %v3158_v62  ;;  %vm3130_vm12 = vcmp.ge.f32.partialorder %v3126_v63, 0.0  ;;  %v3159_v5 = vmul.f32 %v3154_v1, %v3126_v63  ;;  %v8837_v57 = vld [vmem:[%s10123_s9 + $0x190] sm:$0xff]  }
 0x81d   : > { %v3160_v6 = vsel %vm3127_vm11, %v3123_v60, %v3156_v2  ;;  %vm3128_vm13 = vcmp.ge.f32.partialorder %v3124_v3, 0.0  ;;  %v3157_v8 = vmul.f32 %v3144_v53, %v3124_v3  ;;  %v3166_v10 = vmul.f32 %v9264_v39, %v3162_v4  ;;  %v8835_v53 = vld [vmem:[%s10123_s9 + $0x180] sm:$0xff]   ;;  %v8838_v60 = vld [vmem:[%s10123_s9 + $0x198] sm:$0xff]  }
 0x81e   : > { %v3163_v9 = vsel %vm3130_vm12, %v3126_v63, %v3159_v5  ;;  %v3164_v13 = vmul.f32 %v9264_v39, %v3160_v6  ;;  %v8840_v63 = vld [vmem:[%s10123_s9 + $0x1a8] sm:$0xff]  }
 0x81f   : > { %v3167_v11 = vmul.f32 %v9264_v39, %v3163_v9  ;;  %v3161_v12 = vsel %vm3128_vm13, %v3124_v3, %v3157_v8 }
 0x820   : > { %v3165_v14 = vmul.f32 %v9264_v39, %v3161_v12 }
 0x821   : > { %v3169_v15 = vpack.c.bf16 %v3167_v11, %v3166_v10 }
 0x822   : > { %v3168_v16 = vpack.c.bf16 %v3165_v14, %v3164_v13 }
 0x823   : > { %3174 = vrot.lane.b32.xlu0 %v3169_v15, %s10167_s17 }
 0x824   : > { %3172 = vrot.lane.b32.xlu1 %v3168_v16, %s10167_s17 }
 0x895   : > { %v3175_v17 = vpop.permute.xlu0 %3174 }
 0x896   : > { %3179 = vst.msk [vmem:[#allocation3 + $0x8] sm:$0xff] %vm1583_vm4, %v3175_v17  ;;  %v3173_v18 = vpop.permute.xlu1 %3172 }
 0x897   : > { %3178 = vst.msk [vmem:[#allocation3] sm:$0xff] %vm1583_vm4, %v3173_v18 }
 0x89d   : > { %v3186_v20 = vld [vmem:[#allocation3 + $0x8] sm:$0xff] }
 0x89e   : > { %3206 = vrot.lane.b32.xlu0 %v3186_v20, %s10168_s21  ;;  %v3185_v39 = vld [vmem:[#allocation3] sm:$0xff] }
 0x89f   : > { %3204 = vrot.lane.b32.xlu1 %v3185_v39, %s10168_s21 }
 0x8a2   : > { %3277 = vrot.lane.b32.xlu0 %v3186_v20, %s10169_s23 }
 0x8a3   : > { %3275 = vrot.lane.b32.xlu1 %v3185_v39, %s10169_s23 }
 0x8a6   : > { %3353 = vrot.lane.b32.xlu0 %v3186_v20, %s10170_s27 }
 0x8a7   : > { %3351 = vrot.lane.b32.xlu1 %v3185_v39, %s10170_s27 }
 0x8aa   : > { %3433 = vrot.lane.b32.xlu0 %v3186_v20, %s10161_s25 }
 0x8ab   : > { %3431 = vrot.lane.b32.xlu1 %v3185_v39, %s10161_s25 }
 0x8ae   : > { %3513 = vrot.lane.b32.xlu0 %v3186_v20, %s10162_s26 }
 0x8af   : > { %3511 = vrot.lane.b32.xlu1 %v3185_v39, %s10162_s26 }
 0x8b2   : > { %3593 = vrot.lane.b32.xlu0 %v3186_v20, %s10163_s19 }
 0x8b3   : > { %3591 = vrot.lane.b32.xlu1 %v3185_v39, %s10163_s19 }
 0x8b6   : > { %3673 = vrot.lane.b32.xlu0 %v3186_v20, %s10164_s16 }
 0x8b7   : > { %3671 = vrot.lane.b32.xlu1 %v3185_v39, %s10164_s16 }
 0x8ba   : > { %3753 = vrot.lane.b32.xlu0 %v3186_v20, %s10165_s28 }
 0x8bb   : > { %3751 = vrot.lane.b32.xlu1 %v3185_v39, %s10165_s28 }
 0x8be   : > { %3833 = vrot.lane.b32.xlu0 %v3186_v20, %s10166_s15 }
 0x8bf   : > { %3831 = vrot.lane.b32.xlu1 %v3185_v39, %s10166_s15 }
 0x8c2   : > { %3908 = vperm.xlu0 %8757, %v7303_v21  }
 0x8c3   : > { %3903 = vperm.xlu1 %8758, %v7302_v22  }
 0x8c6   : > { %3941 = vperm.xlu0 %8757, %v7307_v23   ;;  %v9635_v23 = vld [vmem:[%s10116_s2] ss:$0 sm:$0xff] }
 0x8c7   : > { %3936 = vperm.xlu1 %8758, %v7306_v24  }
 0x8ca   : > { %3918 = vperm.xlu0 %8757, %v7305_v25  }
 0x8cb   : > { %3913 = vperm.xlu1 %8758, %v7304_v26  }
 0x8ce   : > { %3951 = vperm.xlu0 %8757, %v7309_v27  }
 0x8cf   : > { %3946 = vperm.xlu1 %8758, %v7308_v28  }
 0x910   : > { %v3207_v30 = vpop.permute.xlu0 %3206 }
 0x911   : > { %v3205_v29 = vpop.permute.xlu1 %3204 }
 0x912   : > { %8143 = vmatprep.subr.bf16.mxu1 %v3205_v29 }
 0x913   : > { %8144 = vmatpush3.bf16.msra.mxu1 %v3205_v29 }
 0x914   : > { %8145 = vmatprep.subr.bf16.mxu1 %v3207_v30  ;;  %v3278_v34 = vpop.permute.xlu0 %3277 }
 0x915   : > { %v3276_v32 = vpop.permute.xlu1 %3275 }
 0x917   : > { %8146 = vmatpush3.bf16.msra.mxu1 %v3207_v30 }
 0x918   : > { %8151 = vmatprep.subr.bf16.mxu1 %v3276_v32  ;;  %v3354_v37 = vpop.permute.xlu0 %3353 }
 0x919   : > { %v3352_v35 = vpop.permute.xlu1 %3351 }
 0x91a   : > { %8148 = vmatmul.mubr.msk.bf16.vlgmr.msra.gmra.mrb[8].mxu1 %vm1615_vm5, %v8824_v31 }
 0x91b   : > { %8152 = vmatpush3.bf16.msra.mxu1 %v3276_v32  ;;  %8155 = vmatprep.mubr.msk.bf16.mxu1 %vm1615_vm5, %v8825_v33  ;;  %v8841_v33 = vld [vmem:[%s10123_s9 + $0x1c0] sm:$0xff]  }
 0x91c   : > { %8153 = vmatprep.subr.bf16.mxu1 %v3278_v34  ;;  %v3434_v42 = vpop.permute.xlu0 %3433  ;;  %8219 = vmatprep.mubr.msk.bf16.mxu0 %vm1615_vm5, %v8841_v33 }
 0x91d   : > { %v3432_v38 = vpop.permute.xlu1 %3431 }
 0x91f   : > { %8154 = vmatpush3.bf16.msra.mxu1 %v3278_v34 }
 0x920   : > { %8159 = vmatprep.subr.bf16.mxu1 %v3352_v35  ;;  %v3514_v46 = vpop.permute.xlu0 %3513 }
 0x921   : > { %v3512_v43 = vpop.permute.xlu1 %3511 }
 0x924   : > { %v3594_v50 = vpop.permute.xlu0 %3593 }
 0x925   : > { %v3592_v47 = vpop.permute.xlu1 %3591 }
 0x926   : > { %8156 = vmatmul.mubr.msk.bf16.vlgmr.msra.gmra.mrb[8].mxu1 %vm1615_vm5, %v8826_v36  ;;  %v7383_v36 = vld [vmem:[%s10124_s10 + $0x68] sm:$0xff] }
 0x927   : > { %8160 = vmatpush3.bf16.msra.mxu1 %v3352_v35  ;;  %8163 = vmatprep.mubr.msk.bf16.mxu1 %vm1615_vm5, %v8827_v7  ;;  %v7382_v7 = vld [vmem:[%s10124_s10 + $0x60] sm:$0xff] }
 0x928   : > { %8161 = vmatprep.subr.bf16.mxu1 %v3354_v37  ;;  %v3674_v54 = vpop.permute.xlu0 %3673 }
 0x929   : > { %v3672_v51 = vpop.permute.xlu1 %3671 }
 0x92b   : > { %8162 = vmatpush3.bf16.msra.mxu1 %v3354_v37  ;;  %v7387_v37 = vld [vmem:[%s10125_s11 + $0x68] sm:$0xff] }
 0x92c   : > { %8167 = vmatprep.subr.bf16.mxu1 %v3432_v38  ;;  %v3754_v58 = vpop.permute.xlu0 %3753 }
 0x92d   : > { %v3752_v55 = vpop.permute.xlu1 %3751 }
 0x930   : > { %v3834_v62 = vpop.permute.xlu0 %3833 }
 0x931   : > { %v3832_v59 = vpop.permute.xlu1 %3831 }
 0x932   : > { %8164 = vmatmul.mubr.msk.bf16.vlgmr.msra.gmra.mrb[8].mxu1 %vm1615_vm5, %v8828_v40  ;;  %v7385_v40 = vld [vmem:[%s10124_s10 + $0x78] sm:$0xff] }
 0x933   : > { %8168 = vmatpush3.bf16.msra.mxu1 %v3432_v38  ;;  %8171 = vmatprep.mubr.msk.bf16.mxu1 %vm1615_vm5, %v8829_v41  ;;  %v7386_v38 = vld [vmem:[%s10125_s11 + $0x60] sm:$0xff]  ;;  %v7384_v41 = vld [vmem:[%s10124_s10 + $0x70] sm:$0xff] }
 0x934   : > { %8169 = vmatprep.subr.bf16.mxu1 %v3434_v42 }
 0x937   : > { %8170 = vmatpush3.bf16.msra.mxu1 %v3434_v42  ;;  %v7389_v42 = vld [vmem:[%s10125_s11 + $0x78] sm:$0xff] }
 0x938   : > { %8175 = vmatprep.subr.bf16.mxu1 %v3512_v43 }
 0x93e   : > { %8172 = vmatmul.mubr.msk.bf16.vlgmr.msra.gmra.mrb[8].mxu1 %vm1615_vm5, %v8830_v44 }
 0x93f   : > { %8176 = vmatpush3.bf16.msra.mxu1 %v3512_v43  ;;  %8179 = vmatprep.mubr.msk.bf16.mxu1 %vm1615_vm5, %v8831_v45  ;;  %v7388_v43 = vld [vmem:[%s10125_s11 + $0x70] sm:$0xff] }
 0x940   : > { %8177 = vmatprep.subr.bf16.mxu1 %v3514_v46 }
 0x941   : > { %v3909_v1 = vpop.permute.xlu0 %3908 }
 0x942   : > { %v3904_v0 = vpop.permute.xlu1 %3903 }
 0x943   : > { %8178 = vmatpush3.bf16.msra.mxu1 %v3514_v46  ;;  %v8842_v46 = vld [vmem:[%s10123_s9 + $0x1c8] sm:$0xff]  }
 0x944   : > { %8183 = vmatprep.subr.bf16.mxu1 %v3592_v47 }
 0x945   : > { %v3942_v3 = vpop.permute.xlu0 %3941 }
 0x946   : > { %v3937_v2 = vpop.permute.xlu1 %3936 }
 0x949   : > { %v3919_v5 = vpop.permute.xlu0 %3918 }
 0x94a   : > { %8180 = vmatmul.mubr.msk.bf16.vlgmr.msra.gmra.mrb[8].mxu1 %vm1615_vm5, %v8832_v48  ;;  %v3914_v4 = vpop.permute.xlu1 %3913  ;;  %v8843_v48 = vld [vmem:[%s10123_s9 + $0x1b0] sm:$0xff]  }
 0x94b   : > { %8184 = vmatpush3.bf16.msra.mxu1 %v3592_v47  ;;  %8187 = vmatprep.mubr.msk.bf16.mxu1 %vm1615_vm5, %v8833_v49 }
 0x94c   : > { %8185 = vmatprep.subr.bf16.mxu1 %v3594_v50 }
 0x94d   : > { %v3952_v16 = vpop.permute.xlu0 %3951 }
 0x94e   : > { %v3947_v10 = vpop.permute.xlu1 %3946 }
 0x94f   : > { %8186 = vmatpush3.bf16.msra.mxu1 %v3594_v50 }
 0x950   : > { %8191 = vmatprep.subr.bf16.mxu1 %v3672_v51 }
 0x956   : > { %8188 = vmatmul.mubr.msk.bf16.vlgmr.msra.gmra.mrb[8].mxu1 %vm1615_vm5, %v8834_v52  ;;  %v8845_v52 = vld [vmem:[%s10123_s9 + $0x1d0] sm:$0xff]  }
 0x957   : > { %8192 = vmatpush3.bf16.msra.mxu1 %v3672_v51  ;;  %8195 = vmatprep.mubr.msk.bf16.mxu1 %vm1615_vm5, %v8835_v53  ;;  %v8844_v51 = vld [vmem:[%s10123_s9 + $0x1b8] sm:$0xff]  }
 0x958   : > { %8193 = vmatprep.subr.bf16.mxu1 %v3674_v54 }
 0x95b   : > { %8194 = vmatpush3.bf16.msra.mxu1 %v3674_v54 }
 0x95c   : > { %8199 = vmatprep.subr.bf16.mxu1 %v3752_v55 }
 0x962   : > { %8196 = vmatmul.mubr.msk.bf16.vlgmr.msra.gmra.mrb[8].mxu1 %vm1615_vm5, %v8836_v56  ;;  %v8847_v56 = vld [vmem:[%s10123_s9 + $0x1e0] sm:$0xff]  }
 0x963   : > { %8200 = vmatpush3.bf16.msra.mxu1 %v3752_v55  ;;  %8203 = vmatprep.mubr.msk.bf16.mxu1 %vm1615_vm5, %v8837_v57  ;;  %v8846_v55 = vld [vmem:[%s10123_s9 + $0x1d8] sm:$0xff]  }
 0x964   : > { %8201 = vmatprep.subr.bf16.mxu1 %v3754_v58 }
 0x967   : > { %8202 = vmatpush3.bf16.msra.mxu1 %v3754_v58 }
 0x968   : > { %8207 = vmatprep.subr.bf16.mxu1 %v3832_v59 }
 0x96e   : > { %8204 = vmatmul.mubr.msk.bf16.vlgmr.msra.gmra.mrb[8].mxu1 %vm1615_vm5, %v8838_v60  ;;  %v8849_v60 = vld [vmem:[%s10123_s9 + $0x1f0] sm:$0xff]  }
 0x96f   : > { %8208 = vmatpush3.bf16.msra.mxu1 %v3832_v59  ;;  %8211 = vmatprep.mubr.msk.bf16.mxu1 %vm1615_vm5, %v8839_v61  ;;  %v8848_v59 = vld [vmem:[%s10123_s9 + $0x1e8] sm:$0xff]  }
 0x970   : > { %8209 = vmatprep.subr.bf16.mxu1 %v3834_v62 }
 0x973   : > { %8210 = vmatpush3.bf16.msra.mxu1 %v3834_v62 }
 0x97a   : > { %8212 = vmatmul.mubr.msk.bf16.vlgmr.msra.gmra.mrb[8].mxu1 %vm1615_vm5, %v8840_v63  ;;  %v8850_v63 = vld [vmem:[%s10123_s9 + $0x1f8] sm:$0xff]  }
 0xa4d   : > { %v8213_v6 = vpop.f32.mrb[8].mxu1 }
 0xa4e   : > { %v3923_v8 = vadd.f32 %v8213_v6, %v3914_v4  ;;  %v3877_v9 = vpop.f32.mrb[9].mxu1  ;;  %v8853_v4 = vld [vmem:[%s10123_s9 + $0x210] sm:$0xff]  }
 0xa4f   : > { %v3921_v11 = vadd.f32 %v3904_v0, %v3877_v9  ;;  %v8214_v12 = vpop.f32.mrb[10].mxu1  ;;  %v8851_v0 = vld [vmem:[%s10123_s9 + $0x200] sm:$0xff]  }
 0xa50   : > { %vm3927_vm14 = vcmp.ge.f32.partialorder %v3923_v8, 0.0  ;;  %v3956_v13 = vmul.f32 %v3947_v10, %v3923_v8  ;;  %v3924_v14 = vadd.f32 %v8214_v12, %v3919_v5  ;;  %v3880_v15 = vpop.f32.mrb[11].mxu1  ;;  %v8855_v9 = vld [vmem:[%s10123_s9 + $0x220] sm:$0xff]   ;;  %v8856_v12 = vld [vmem:[%s10123_s9 + $0x228] sm:$0xff]  }
 0xa51   : > { %vm3925_vm15 = vcmp.ge.f32.partialorder %v3921_v11, 0.0  ;;  %v3954_v17 = vmul.f32 %v3937_v2, %v3921_v11  ;;  %v3922_v18 = vadd.f32 %v3909_v1, %v3880_v15  ;;  %v8858_v15 = vld [vmem:[%s10123_s9 + $0x238] sm:$0xff]  }
 0xa52   : > { %v3960_v19 = vsel %vm3927_vm14, %v3923_v8, %v3956_v13  ;;  %vm3928_vm0 = vcmp.ge.f32.partialorder %v3924_v14, 0.0  ;;  %v3957_v20 = vmul.f32 %v3952_v16, %v3924_v14  ;;  %v8854_v8 = vld [vmem:[%s10123_s9 + $0x218] sm:$0xff]   ;;  %v8857_v13 = vld [vmem:[%s10123_s9 + $0x230] sm:$0xff]  }
 0xa53   : > { %v3958_v39 = vsel %vm3925_vm15, %v3921_v11, %v3954_v17  ;;  %vm3926_vm1 = vcmp.ge.f32.partialorder %v3922_v18, 0.0  ;;  %v3955_v21 = vmul.f32 %v3942_v3, %v3922_v18  ;;  %v3964_v24 = vmul.f32 %v9635_v23, %v3960_v19  ;;  %v8852_v3 = vld [vmem:[%s10123_s9 + $0x208] sm:$0xff]  }
 0xa54   : > { %v3961_v22 = vsel %vm3928_vm0, %v3924_v14, %v3957_v20  ;;  %v3962_v27 = vmul.f32 %v9635_v23, %v3958_v39  ;;  %vm8930_vm0 = vmmov 0  }
 0xa55   : > { %v3965_v25 = vmul.f32 %v9635_v23, %v3961_v22  ;;  %v3959_v26 = vsel %vm3926_vm1, %v3922_v18, %v3955_v21 }
 0xa56   : > { %v3963_v28 = vmul.f32 %v9635_v23, %v3959_v26 }
 0xa57   : > { %v3967_v29 = vpack.c.bf16 %v3965_v25, %v3964_v24 }
 0xa58   : > { %v3966_v30 = vpack.c.bf16 %v3963_v28, %v3962_v27 }
 0xa59   : > { %3972 = vrot.lane.b32.xlu0 %v3967_v29, %s10167_s17 }
 0xa5a   : > { %3970 = vrot.lane.b32.xlu1 %v3966_v30, %s10167_s17 }
 0xacb   : > { %v3973_v31 = vpop.permute.xlu0 %3972 }
 0xacc   : > { %3977 = vst.msk [vmem:[#allocation4 + $0x8] sm:$0xff] %vm1583_vm4, %v3973_v31  ;;  %v3971_v32 = vpop.permute.xlu1 %3970 }
 0xacd   : > { %3976 = vst.msk [vmem:[#allocation4] sm:$0xff] %vm1583_vm4, %v3971_v32 }
 0xad3   : > { %v3984_v34 = vld [vmem:[#allocation4 + $0x8] sm:$0xff] }
 0xad4   : > { %4004 = vrot.lane.b32.xlu0 %v3984_v34, %s10168_s21  ;;  %v3983_v35 = vld [vmem:[#allocation4] sm:$0xff] }
 0xad5   : > { %4002 = vrot.lane.b32.xlu1 %v3983_v35, %s10168_s21 }
 0xad8   : > { %4075 = vrot.lane.b32.xlu0 %v3984_v34, %s10169_s23 }
 0xad9   : > { %4073 = vrot.lane.b32.xlu1 %v3983_v35, %s10169_s23 }
 0xadc   : > { %4151 = vrot.lane.b32.xlu0 %v3984_v34, %s10170_s27 }
 0xadd   : > { %4149 = vrot.lane.b32.xlu1 %v3983_v35, %s10170_s27 }
 0xae0   : > { %4231 = vrot.lane.b32.xlu0 %v3984_v34, %s10161_s25 }
 0xae1   : > { %4229 = vrot.lane.b32.xlu1 %v3983_v35, %s10161_s25 }
 0xae4   : > { %4311 = vrot.lane.b32.xlu0 %v3984_v34, %s10162_s26 }
 0xae5   : > { %4309 = vrot.lane.b32.xlu1 %v3983_v35, %s10162_s26 }
 0xae8   : > { %4391 = vrot.lane.b32.xlu0 %v3984_v34, %s10163_s19 }
 0xae9   : > { %4389 = vrot.lane.b32.xlu1 %v3983_v35, %s10163_s19 }
 0xaec   : > { %4471 = vrot.lane.b32.xlu0 %v3984_v34, %s10164_s16 }
 0xaed   : > { %4469 = vrot.lane.b32.xlu1 %v3983_v35, %s10164_s16 }
 0xaf0   : > { %4551 = vrot.lane.b32.xlu0 %v3984_v34, %s10165_s28 }
 0xaf1   : > { %4549 = vrot.lane.b32.xlu1 %v3983_v35, %s10165_s28 }
 0xaf4   : > { %4631 = vrot.lane.b32.xlu0 %v3984_v34, %s10166_s15 }
 0xaf5   : > { %4629 = vrot.lane.b32.xlu1 %v3983_v35, %s10166_s15 }
 0xaf8   : > { %4706 = vperm.xlu0 %8757, %v7383_v36  }
 0xaf9   : > { %4701 = vperm.xlu1 %8758, %v7382_v7  }
 0xafc   : > { %4739 = vperm.xlu0 %8757, %v7387_v37  }
 0xafd   : > { %4734 = vperm.xlu1 %8758, %v7386_v38  }
 0xb00   : > { %4716 = vperm.xlu0 %8757, %v7385_v40  }
 0xb01   : > { %4711 = vperm.xlu1 %8758, %v7384_v41  }
 0xb04   : > { %4749 = vperm.xlu0 %8757, %v7389_v42  }
 0xb05   : > { %4744 = vperm.xlu1 %8758, %v7388_v43  }
 0xb46   : > { %v4005_v45 = vpop.permute.xlu0 %4004 }
 0xb47   : > { %v4003_v44 = vpop.permute.xlu1 %4002 }
 0xb48   : > { %8215 = vmatprep.subr.bf16.mxu0 %v4003_v44 }
 0xb49   : > { %8216 = vmatpush3.bf16.msra.mxu0 %v4003_v44 }
 0xb4a   : > { %8217 = vmatprep.subr.bf16.mxu0 %v4005_v45  ;;  %v4076_v49 = vpop.permute.xlu0 %4075 }
 0xb4b   : > { %v4074_v47 = vpop.permute.xlu1 %4073 }
 0xb4d   : > { %8218 = vmatpush3.bf16.msra.mxu0 %v4005_v45 }
 0xb4e   : > { %8223 = vmatprep.subr.bf16.mxu0 %v4074_v47  ;;  %v4152_v53 = vpop.permute.xlu0 %4151 }
 0xb4f   : > { %v4150_v50 = vpop.permute.xlu1 %4149 }
 0xb50   : > { %8220 = vmatmul.mubr.msk.bf16.vlgmr.msra.gmra.mrb[12].mxu0 %vm1615_vm5, %v8842_v46 }
 0xb51   : > { %8224 = vmatpush3.bf16.msra.mxu0 %v4074_v47  ;;  %8227 = vmatprep.mubr.msk.bf16.mxu0 %vm1615_vm5, %v8843_v48  ;;  %v8859_v48 = vld [vmem:[%s10123_s9 + $0x250] sm:$0xff]  }
 0xb52   : > { %8225 = vmatprep.subr.bf16.mxu0 %v4076_v49  ;;  %v4232_v57 = vpop.permute.xlu0 %4231  ;;  %8291 = vmatprep.mubr.msk.bf16.mxu1 %vm1615_vm5, %v8859_v48 }
 0xb53   : > { %v4230_v54 = vpop.permute.xlu1 %4229 }
 0xb55   : > { %8226 = vmatpush3.bf16.msra.mxu0 %v4076_v49 }
 0xb56   : > { %8231 = vmatprep.subr.bf16.mxu0 %v4150_v50  ;;  %v4312_v61 = vpop.permute.xlu0 %4311 }
 0xb57   : > { %v4310_v58 = vpop.permute.xlu1 %4309 }
 0xb5a   : > { %v4392_v1 = vpop.permute.xlu0 %4391 }
 0xb5b   : > { %v4390_v62 = vpop.permute.xlu1 %4389 }
 0xb5c   : > { %8228 = vmatmul.mubr.msk.bf16.vlgmr.msra.gmra.mrb[12].mxu0 %vm1615_vm5, %v8844_v51  ;;  %v7463_v51 = vld [vmem:[%s10124_s10 + $0x88] sm:$0xff] }
 0xb5d   : > { %8232 = vmatpush3.bf16.msra.mxu0 %v4150_v50  ;;  %8235 = vmatprep.mubr.msk.bf16.mxu0 %vm1615_vm5, %v8845_v52  ;;  %v7462_v52 = vld [vmem:[%s10124_s10 + $0x80] sm:$0xff] }
 0xb5e   : > { %8233 = vmatprep.subr.bf16.mxu0 %v4152_v53  ;;  %v4472_v5 = vpop.permute.xlu0 %4471 }
 0xb5f   : > { %v4470_v2 = vpop.permute.xlu1 %4469 }
 0xb61   : > { %8234 = vmatpush3.bf16.msra.mxu0 %v4152_v53  ;;  %v7467_v53 = vld [vmem:[%s10125_s11 + $0x88] sm:$0xff] }
 0xb62   : > { %8239 = vmatprep.subr.bf16.mxu0 %v4230_v54  ;;  %v4552_v10 = vpop.permute.xlu0 %4551 }
 0xb63   : > { %v4550_v6 = vpop.permute.xlu1 %4549 }
 0xb66   : > { %v4632_v14 = vpop.permute.xlu0 %4631 }
 0xb67   : > { %v4630_v11 = vpop.permute.xlu1 %4629 }
 0xb68   : > { %8236 = vmatmul.mubr.msk.bf16.vlgmr.msra.gmra.mrb[12].mxu0 %vm1615_vm5, %v8846_v55  ;;  %v7465_v55 = vld [vmem:[%s10124_s10 + $0x98] sm:$0xff] }
 0xb69   : > { %8240 = vmatpush3.bf16.msra.mxu0 %v4230_v54  ;;  %8243 = vmatprep.mubr.msk.bf16.mxu0 %vm1615_vm5, %v8847_v56  ;;  %v7466_v54 = vld [vmem:[%s10125_s11 + $0x80] sm:$0xff]  ;;  %v7464_v56 = vld [vmem:[%s10124_s10 + $0x90] sm:$0xff] }
 0xb6a   : > { %8241 = vmatprep.subr.bf16.mxu0 %v4232_v57 }
 0xb6d   : > { %8242 = vmatpush3.bf16.msra.mxu0 %v4232_v57  ;;  %v7469_v57 = vld [vmem:[%s10125_s11 + $0x98] sm:$0xff] }
 0xb6e   : > { %8247 = vmatprep.subr.bf16.mxu0 %v4310_v58 }
 0xb74   : > { %8244 = vmatmul.mubr.msk.bf16.vlgmr.msra.gmra.mrb[12].mxu0 %vm1615_vm5, %v8848_v59 }
 0xb75   : > { %8248 = vmatpush3.bf16.msra.mxu0 %v4310_v58  ;;  %8251 = vmatprep.mubr.msk.bf16.mxu0 %vm1615_vm5, %v8849_v60  ;;  %v7468_v58 = vld [vmem:[%s10125_s11 + $0x90] sm:$0xff] }
 0xb76   : > { %8249 = vmatprep.subr.bf16.mxu0 %v4312_v61 }
 0xb77   : > { %v4707_v17 = vpop.permute.xlu0 %4706 }
 0xb78   : > { %v4702_v16 = vpop.permute.xlu1 %4701 }
 0xb79   : > { %8250 = vmatpush3.bf16.msra.mxu0 %v4312_v61  ;;  %v8860_v61 = vld [vmem:[%s10123_s9 + $0x258] sm:$0xff]  }
 0xb7a   : > { %8255 = vmatprep.subr.bf16.mxu0 %v4390_v62 }
 0xb7b   : > { %v4740_v19 = vpop.permute.xlu0 %4739 }
 0xb7c   : > { %v4735_v18 = vpop.permute.xlu1 %4734 }
 0xb7f   : > { %v4717_v39 = vpop.permute.xlu0 %4716 }
 0xb80   : > { %8252 = vmatmul.mubr.msk.bf16.vlgmr.msra.gmra.mrb[12].mxu0 %vm1615_vm5, %v8850_v63  ;;  %v4712_v20 = vpop.permute.xlu1 %4711  ;;  %v8861_v63 = vld [vmem:[%s10123_s9 + $0x240] sm:$0xff]  }
 0xb81   : > { %8256 = vmatpush3.bf16.msra.mxu0 %v4390_v62  ;;  %8259 = vmatprep.mubr.msk.bf16.mxu0 %vm1615_vm5, %v8851_v0 }
 0xb82   : > { %8257 = vmatprep.subr.bf16.mxu0 %v4392_v1 }
 0xb83   : > { %v4750_v31 = vpop.permute.xlu0 %4749 }
 0xb84   : > { %v4745_v25 = vpop.permute.xlu1 %4744 }
 0xb85   : > { %8258 = vmatpush3.bf16.msra.mxu0 %v4392_v1 }
 0xb86   : > { %8263 = vmatprep.subr.bf16.mxu0 %v4470_v2 }
 0xb8c   : > { %8260 = vmatmul.mubr.msk.bf16.vlgmr.msra.gmra.mrb[12].mxu0 %vm1615_vm5, %v8852_v3  ;;  %v8863_v3 = vld [vmem:[%s10123_s9 + $0x260] sm:$0xff]  }
 0xb8d   : > { %8264 = vmatpush3.bf16.msra.mxu0 %v4470_v2  ;;  %8267 = vmatprep.mubr.msk.bf16.mxu0 %vm1615_vm5, %v8853_v4  ;;  %v8862_v2 = vld [vmem:[%s10123_s9 + $0x248] sm:$0xff]  }
 0xb8e   : > { %8265 = vmatprep.subr.bf16.mxu0 %v4472_v5 }
 0xb91   : > { %8266 = vmatpush3.bf16.msra.mxu0 %v4472_v5 }
 0xb92   : > { %8271 = vmatprep.subr.bf16.mxu0 %v4550_v6 }
 0xb98   : > { %8268 = vmatmul.mubr.msk.bf16.vlgmr.msra.gmra.mrb[12].mxu0 %vm1615_vm5, %v8854_v8  ;;  %v8865_v8 = vld [vmem:[%s10123_s9 + $0x270] sm:$0xff]  }
 0xb99   : > { %8272 = vmatpush3.bf16.msra.mxu0 %v4550_v6  ;;  %8275 = vmatprep.mubr.msk.bf16.mxu0 %vm1615_vm5, %v8855_v9  ;;  %v8864_v6 = vld [vmem:[%s10123_s9 + $0x268] sm:$0xff]  }
 0xb9a   : > { %8273 = vmatprep.subr.bf16.mxu0 %v4552_v10 }
 0xb9d   : > { %8274 = vmatpush3.bf16.msra.mxu0 %v4552_v10 }
 0xb9e   : > { %8279 = vmatprep.subr.bf16.mxu0 %v4630_v11 }
 0xba4   : > { %8276 = vmatmul.mubr.msk.bf16.vlgmr.msra.gmra.mrb[12].mxu0 %vm1615_vm5, %v8856_v12  ;;  %v8867_v12 = vld [vmem:[%s10123_s9 + $0x280] sm:$0xff]  }
 0xba5   : > { %8280 = vmatpush3.bf16.msra.mxu0 %v4630_v11  ;;  %8283 = vmatprep.mubr.msk.bf16.mxu0 %vm1615_vm5, %v8857_v13  ;;  %v8866_v11 = vld [vmem:[%s10123_s9 + $0x278] sm:$0xff]  }
 0xba6   : > { %8281 = vmatprep.subr.bf16.mxu0 %v4632_v14 }
 0xba9   : > { %8282 = vmatpush3.bf16.msra.mxu0 %v4632_v14 }
 0xbb0   : > { %8284 = vmatmul.mubr.msk.bf16.vlgmr.msra.gmra.mrb[12].mxu0 %vm1615_vm5, %v8858_v15  ;;  %v8868_v15 = vld [vmem:[%s10123_s9 + $0x288] sm:$0xff]  }
 0xc83   : > { %v8285_v21 = vpop.f32.mrb[12].mxu0 }
 0xc84   : > { %v4721_v22 = vadd.f32 %v8285_v21, %v4712_v20  ;;  %v4675_v24 = vpop.f32.mrb[13].mxu0  ;;  %v8871_v20 = vld [vmem:[%s10123_s9 + $0x2a0] sm:$0xff]  }
 0xc85   : > { %v4719_v26 = vadd.f32 %v4702_v16, %v4675_v24  ;;  %v8286_v27 = vpop.f32.mrb[14].mxu0  ;;  %v8869_v16 = vld [vmem:[%s10123_s9 + $0x290] sm:$0xff]  }
 0xc86   : > { %vm4725_vm2 = vcmp.ge.f32.partialorder %v4721_v22, 0.0  ;;  %v4754_v28 = vmul.f32 %v4745_v25, %v4721_v22  ;;  %v4722_v29 = vadd.f32 %v8286_v27, %v4717_v39  ;;  %v4678_v30 = vpop.f32.mrb[15].mxu0  ;;  %v8873_v24 = vld [vmem:[%s10123_s9 + $0x2b0] sm:$0xff]   ;;  %v8874_v27 = vld [vmem:[%s10123_s9 + $0x2b8] sm:$0xff]  }
 0xc87   : > { %vm4723_vm3 = vcmp.ge.f32.partialorder %v4719_v26, 0.0  ;;  %v4752_v32 = vmul.f32 %v4735_v18, %v4719_v26  ;;  %v4720_v33 = vadd.f32 %v4707_v17, %v4678_v30  ;;  %v8876_v30 = vld [vmem:[%s10123_s9 + $0x2c8] sm:$0xff]  }
 0xc88   : > { %v4758_v34 = vsel %vm4725_vm2, %v4721_v22, %v4754_v28  ;;  %vm4726_vm6 = vcmp.ge.f32.partialorder %v4722_v29, 0.0  ;;  %v4755_v35 = vmul.f32 %v4750_v31, %v4722_v29  ;;  %v8872_v22 = vld [vmem:[%s10123_s9 + $0x2a8] sm:$0xff]   ;;  %v8875_v28 = vld [vmem:[%s10123_s9 + $0x2c0] sm:$0xff]  }
 0xc89   : > { %v4756_v36 = vsel %vm4723_vm3, %v4719_v26, %v4752_v32  ;;  %vm4724_vm7 = vcmp.ge.f32.partialorder %v4720_v33, 0.0  ;;  %v4753_v7 = vmul.f32 %v4740_v19, %v4720_v33  ;;  %v4762_v38 = vmul.f32 %v9635_v23, %v4758_v34  ;;  %v8870_v19 = vld [vmem:[%s10123_s9 + $0x298] sm:$0xff]  }
 0xc8a   : > { %v4759_v37 = vsel %vm4726_vm6, %v4722_v29, %v4755_v35  ;;  %v4760_v42 = vmul.f32 %v9635_v23, %v4756_v36 }
 0xc8b   : > { %v4763_v40 = vmul.f32 %v9635_v23, %v4759_v37  ;;  %v4757_v41 = vsel %vm4724_vm7, %v4720_v33, %v4753_v7 }
 0xc8c   : > { %v4761_v43 = vmul.f32 %v9635_v23, %v4757_v41 }
 0xc8d   : > { %v4765_v44 = vpack.c.bf16 %v4763_v40, %v4762_v38 }
 0xc8e   : > { %v4764_v45 = vpack.c.bf16 %v4761_v43, %v4760_v42 }
 0xc8f   : > { %4770 = vrot.lane.b32.xlu0 %v4765_v44, %s10167_s17 }
 0xc90   : > { %4768 = vrot.lane.b32.xlu1 %v4764_v45, %s10167_s17 }
 0xd01   : > { %v4771_v46 = vpop.permute.xlu0 %4770 }
 0xd02   : > { %4775 = vst.msk [vmem:[#allocation3 + $0x8] sm:$0xff] %vm1583_vm4, %v4771_v46  ;;  %v4769_v47 = vpop.permute.xlu1 %4768 }
 0xd03   : > { %4774 = vst.msk [vmem:[#allocation3] sm:$0xff] %vm1583_vm4, %v4769_v47 }
 0xd09   : > { %v4782_v49 = vld [vmem:[#allocation3 + $0x8] sm:$0xff] }
 0xd0a   : > { %4802 = vrot.lane.b32.xlu0 %v4782_v49, %s10168_s21  ;;  %v4781_v50 = vld [vmem:[#allocation3] sm:$0xff] }
 0xd0b   : > { %4800 = vrot.lane.b32.xlu1 %v4781_v50, %s10168_s21 }
 0xd0e   : > { %4873 = vrot.lane.b32.xlu0 %v4782_v49, %s10169_s23 }
 0xd0f   : > { %4871 = vrot.lane.b32.xlu1 %v4781_v50, %s10169_s23 }
 0xd12   : > { %4949 = vrot.lane.b32.xlu0 %v4782_v49, %s10170_s27 }
 0xd13   : > { %4947 = vrot.lane.b32.xlu1 %v4781_v50, %s10170_s27 }
 0xd16   : > { %5029 = vrot.lane.b32.xlu0 %v4782_v49, %s10161_s25 }
 0xd17   : > { %5027 = vrot.lane.b32.xlu1 %v4781_v50, %s10161_s25 }
 0xd1a   : > { %5109 = vrot.lane.b32.xlu0 %v4782_v49, %s10162_s26 }
 0xd1b   : > { %5107 = vrot.lane.b32.xlu1 %v4781_v50, %s10162_s26 }
 0xd1e   : > { %5189 = vrot.lane.b32.xlu0 %v4782_v49, %s10163_s19 }
 0xd1f   : > { %5187 = vrot.lane.b32.xlu1 %v4781_v50, %s10163_s19 }
 0xd22   : > { %5269 = vrot.lane.b32.xlu0 %v4782_v49, %s10164_s16 }
 0xd23   : > { %5267 = vrot.lane.b32.xlu1 %v4781_v50, %s10164_s16 }
 0xd26   : > { %5349 = vrot.lane.b32.xlu0 %v4782_v49, %s10165_s28 }
 0xd27   : > { %5347 = vrot.lane.b32.xlu1 %v4781_v50, %s10165_s28 }
 0xd2a   : > { %5429 = vrot.lane.b32.xlu0 %v4782_v49, %s10166_s15 }
 0xd2b   : > { %5427 = vrot.lane.b32.xlu1 %v4781_v50, %s10166_s15 }
 0xd2e   : > { %5504 = vperm.xlu0 %8757, %v7463_v51  }
 0xd2f   : > { %5499 = vperm.xlu1 %8758, %v7462_v52  }
 0xd32   : > { %5537 = vperm.xlu0 %8757, %v7467_v53  }
 0xd33   : > { %5532 = vperm.xlu1 %8758, %v7466_v54  }
 0xd36   : > { %5514 = vperm.xlu0 %8757, %v7465_v55  }
 0xd37   : > { %5509 = vperm.xlu1 %8758, %v7464_v56  }
 0xd3a   : > { %5547 = vperm.xlu0 %8757, %v7469_v57  }
 0xd3b   : > { %5542 = vperm.xlu1 %8758, %v7468_v58  }
 0xd7c   : > { %v4803_v60 = vpop.permute.xlu0 %4802 }
 0xd7d   : > { %v4801_v59 = vpop.permute.xlu1 %4800 }
 0xd7e   : > { %8287 = vmatprep.subr.bf16.mxu1 %v4801_v59 }
 0xd7f   : > { %8288 = vmatpush3.bf16.msra.mxu1 %v4801_v59 }
 0xd80   : > { %8289 = vmatprep.subr.bf16.mxu1 %v4803_v60  ;;  %v4874_v0 = vpop.permute.xlu0 %4873 }
 0xd81   : > { %v4872_v62 = vpop.permute.xlu1 %4871 }
 0xd83   : > { %8290 = vmatpush3.bf16.msra.mxu1 %v4803_v60 }
 0xd84   : > { %8295 = vmatprep.subr.bf16.mxu1 %v4872_v62  ;;  %v4950_v4 = vpop.permute.xlu0 %4949 }
 0xd85   : > { %v4948_v1 = vpop.permute.xlu1 %4947 }
 0xd86   : > { %8292 = vmatmul.mubr.msk.bf16.vlgmr.msra.gmra.mrb[12].mxu1 %vm1615_vm5, %v8860_v61 }
 0xd87   : > { %8296 = vmatpush3.bf16.msra.mxu1 %v4872_v62  ;;  %8299 = vmatprep.mubr.msk.bf16.mxu1 %vm1615_vm5, %v8861_v63  ;;  %v8877_v63 = vld [vmem:[%s10123_s9 + $0x2e0] sm:$0xff]  }
 0xd88   : > { %8297 = vmatprep.subr.bf16.mxu1 %v4874_v0  ;;  %v5030_v9 = vpop.permute.xlu0 %5029  ;;  %8363 = vmatprep.mubr.msk.bf16.mxu0 %vm1615_vm5, %v8877_v63 }
 0xd89   : > { %v5028_v5 = vpop.permute.xlu1 %5027 }
 0xd8b   : > { %8298 = vmatpush3.bf16.msra.mxu1 %v4874_v0 }
 0xd8c   : > { %8303 = vmatprep.subr.bf16.mxu1 %v4948_v1  ;;  %v5110_v13 = vpop.permute.xlu0 %5109 }
 0xd8d   : > { %v5108_v10 = vpop.permute.xlu1 %5107 }
 0xd90   : > { %v5190_v17 = vpop.permute.xlu0 %5189 }
 0xd91   : > { %v5188_v14 = vpop.permute.xlu1 %5187 }
 0xd92   : > { %8300 = vmatmul.mubr.msk.bf16.vlgmr.msra.gmra.mrb[12].mxu1 %vm1615_vm5, %v8862_v2  ;;  %v7543_v2 = vld [vmem:[%s10124_s10 + $0xa8] sm:$0xff] }
 0xd93   : > { %8304 = vmatpush3.bf16.msra.mxu1 %v4948_v1  ;;  %8307 = vmatprep.mubr.msk.bf16.mxu1 %vm1615_vm5, %v8863_v3  ;;  %v7542_v3 = vld [vmem:[%s10124_s10 + $0xa0] sm:$0xff] }
 0xd94   : > { %8305 = vmatprep.subr.bf16.mxu1 %v4950_v4  ;;  %v5270_v39 = vpop.permute.xlu0 %5269 }
 0xd95   : > { %v5268_v18 = vpop.permute.xlu1 %5267 }
 0xd97   : > { %8306 = vmatpush3.bf16.msra.mxu1 %v4950_v4  ;;  %v7547_v4 = vld [vmem:[%s10125_s11 + $0xa8] sm:$0xff] }
 0xd98   : > { %8311 = vmatprep.subr.bf16.mxu1 %v5028_v5  ;;  %v5350_v25 = vpop.permute.xlu0 %5349 }
 0xd99   : > { %v5348_v21 = vpop.permute.xlu1 %5347 }
 0xd9c   : > { %v5430_v29 = vpop.permute.xlu0 %5429 }
 0xd9d   : > { %v5428_v26 = vpop.permute.xlu1 %5427 }
 0xd9e   : > { %8308 = vmatmul.mubr.msk.bf16.vlgmr.msra.gmra.mrb[12].mxu1 %vm1615_vm5, %v8864_v6  ;;  %v7545_v6 = vld [vmem:[%s10124_s10 + $0xb8] sm:$0xff] }
 0xd9f   : > { %8312 = vmatpush3.bf16.msra.mxu1 %v5028_v5  ;;  %8315 = vmatprep.mubr.msk.bf16.mxu1 %vm1615_vm5, %v8865_v8  ;;  %v7546_v5 = vld [vmem:[%s10125_s11 + $0xa0] sm:$0xff]  ;;  %v7544_v8 = vld [vmem:[%s10124_s10 + $0xb0] sm:$0xff] }
 0xda0   : > { %8313 = vmatprep.subr.bf16.mxu1 %v5030_v9 }
 0xda3   : > { %8314 = vmatpush3.bf16.msra.mxu1 %v5030_v9  ;;  %v7549_v9 = vld [vmem:[%s10125_s11 + $0xb8] sm:$0xff] }
 0xda4   : > { %8319 = vmatprep.subr.bf16.mxu1 %v5108_v10 }
 0xdaa   : > { %8316 = vmatmul.mubr.msk.bf16.vlgmr.msra.gmra.mrb[12].mxu1 %vm1615_vm5, %v8866_v11 }
 0xdab   : > { %8320 = vmatpush3.bf16.msra.mxu1 %v5108_v10  ;;  %8323 = vmatprep.mubr.msk.bf16.mxu1 %vm1615_vm5, %v8867_v12  ;;  %v7548_v10 = vld [vmem:[%s10125_s11 + $0xb0] sm:$0xff] }
 0xdac   : > { %8321 = vmatprep.subr.bf16.mxu1 %v5110_v13 }
 0xdad   : > { %v5505_v32 = vpop.permute.xlu0 %5504 }
 0xdae   : > { %v5500_v31 = vpop.permute.xlu1 %5499 }
 0xdaf   : > { %8322 = vmatpush3.bf16.msra.mxu1 %v5110_v13  ;;  %v8878_v13 = vld [vmem:[%s10123_s9 + $0x2e8] sm:$0xff]  }
 0xdb0   : > { %8327 = vmatprep.subr.bf16.mxu1 %v5188_v14 }
 0xdb1   : > { %v5538_v34 = vpop.permute.xlu0 %5537 }
 0xdb2   : > { %v5533_v33 = vpop.permute.xlu1 %5532 }
 0xdb5   : > { %v5515_v36 = vpop.permute.xlu0 %5514 }
 0xdb6   : > { %8324 = vmatmul.mubr.msk.bf16.vlgmr.msra.gmra.mrb[12].mxu1 %vm1615_vm5, %v8868_v15  ;;  %v5510_v35 = vpop.permute.xlu1 %5509  ;;  %v8879_v15 = vld [vmem:[%s10123_s9 + $0x2d0] sm:$0xff]  }
 0xdb7   : > { %8328 = vmatpush3.bf16.msra.mxu1 %v5188_v14  ;;  %8331 = vmatprep.mubr.msk.bf16.mxu1 %vm1615_vm5, %v8869_v16 }
 0xdb8   : > { %8329 = vmatprep.subr.bf16.mxu1 %v5190_v17 }
 0xdb9   : > { %v5548_v46 = vpop.permute.xlu0 %5547 }
 0xdba   : > { %v5543_v40 = vpop.permute.xlu1 %5542 }
 0xdbb   : > { %8330 = vmatpush3.bf16.msra.mxu1 %v5190_v17 }
 0xdbc   : > { %8335 = vmatprep.subr.bf16.mxu1 %v5268_v18 }
 0xdc2   : > { %8332 = vmatmul.mubr.msk.bf16.vlgmr.msra.gmra.mrb[12].mxu1 %vm1615_vm5, %v8870_v19  ;;  %v8881_v19 = vld [vmem:[%s10123_s9 + $0x2f0] sm:$0xff]  }
 0xdc3   : > { %8336 = vmatpush3.bf16.msra.mxu1 %v5268_v18  ;;  %8339 = vmatprep.mubr.msk.bf16.mxu1 %vm1615_vm5, %v8871_v20  ;;  %v8880_v18 = vld [vmem:[%s10123_s9 + $0x2d8] sm:$0xff]  }
 0xdc4   : > { %8337 = vmatprep.subr.bf16.mxu1 %v5270_v39 }
 0xdc7   : > { %8338 = vmatpush3.bf16.msra.mxu1 %v5270_v39 }
 0xdc8   : > { %8343 = vmatprep.subr.bf16.mxu1 %v5348_v21 }
 0xdce   : > { %8340 = vmatmul.mubr.msk.bf16.vlgmr.msra.gmra.mrb[12].mxu1 %vm1615_vm5, %v8872_v22  ;;  %v8883_v22 = vld [vmem:[%s10123_s9 + $0x300] sm:$0xff]  }
 0xdcf   : > { %8344 = vmatpush3.bf16.msra.mxu1 %v5348_v21  ;;  %8347 = vmatprep.mubr.msk.bf16.mxu1 %vm1615_vm5, %v8873_v24  ;;  %v8882_v21 = vld [vmem:[%s10123_s9 + $0x2f8] sm:$0xff]  }
 0xdd0   : > { %8345 = vmatprep.subr.bf16.mxu1 %v5350_v25 }
 0xdd3   : > { %8346 = vmatpush3.bf16.msra.mxu1 %v5350_v25 }
 0xdd4   : > { %8351 = vmatprep.subr.bf16.mxu1 %v5428_v26 }
 0xdda   : > { %8348 = vmatmul.mubr.msk.bf16.vlgmr.msra.gmra.mrb[12].mxu1 %vm1615_vm5, %v8874_v27  ;;  %v8885_v27 = vld [vmem:[%s10123_s9 + $0x310] sm:$0xff]  }
 0xddb   : > { %8352 = vmatpush3.bf16.msra.mxu1 %v5428_v26  ;;  %8355 = vmatprep.mubr.msk.bf16.mxu1 %vm1615_vm5, %v8875_v28  ;;  %v8884_v26 = vld [vmem:[%s10123_s9 + $0x308] sm:$0xff]  }
 0xddc   : > { %8353 = vmatprep.subr.bf16.mxu1 %v5430_v29 }
 0xddf   : > { %8354 = vmatpush3.bf16.msra.mxu1 %v5430_v29 }
 0xde6   : > { %8356 = vmatmul.mubr.msk.bf16.vlgmr.msra.gmra.mrb[12].mxu1 %vm1615_vm5, %v8876_v30  ;;  %v8886_v30 = vld [vmem:[%s10123_s9 + $0x318] sm:$0xff]  }
 0xeb9   : > { %v8357_v7 = vpop.f32.mrb[12].mxu1 }
 0xeba   : > { %v5519_v37 = vadd.f32 %v8357_v7, %v5510_v35  ;;  %v5473_v38 = vpop.f32.mrb[13].mxu1  ;;  %v8889_v35 = vld [vmem:[%s10123_s9 + $0x330] sm:$0xff]  }
 0xebb   : > { %v5517_v41 = vadd.f32 %v5500_v31, %v5473_v38  ;;  %v8358_v42 = vpop.f32.mrb[14].mxu1  ;;  %v8887_v31 = vld [vmem:[%s10123_s9 + $0x320] sm:$0xff]  }
 0xebc   : > { %vm5523_vm8 = vcmp.ge.f32.partialorder %v5519_v37, 0.0  ;;  %v5552_v43 = vmul.f32 %v5543_v40, %v5519_v37  ;;  %v5520_v44 = vadd.f32 %v8358_v42, %v5515_v36  ;;  %v5476_v45 = vpop.f32.mrb[15].mxu1  ;;  %v8891_v38 = vld [vmem:[%s10123_s9 + $0x340] sm:$0xff]   ;;  %v8892_v42 = vld [vmem:[%s10123_s9 + $0x348] sm:$0xff]  }
 0xebd   : > { %vm5521_vm9 = vcmp.ge.f32.partialorder %v5517_v41, 0.0  ;;  %v5550_v47 = vmul.f32 %v5533_v33, %v5517_v41  ;;  %v5518_v48 = vadd.f32 %v5505_v32, %v5476_v45  ;;  %v8894_v45 = vld [vmem:[%s10123_s9 + $0x358] sm:$0xff]  }
 0xebe   : > { %v5556_v49 = vsel %vm5523_vm8, %v5519_v37, %v5552_v43  ;;  %vm5524_vm10 = vcmp.ge.f32.partialorder %v5520_v44, 0.0  ;;  %v5553_v50 = vmul.f32 %v5548_v46, %v5520_v44  ;;  %v8890_v37 = vld [vmem:[%s10123_s9 + $0x338] sm:$0xff]   ;;  %v8893_v43 = vld [vmem:[%s10123_s9 + $0x350] sm:$0xff]  }
 0xebf   : > { %v5554_v51 = vsel %vm5521_vm9, %v5517_v41, %v5550_v47  ;;  %vm5522_vm11 = vcmp.ge.f32.partialorder %v5518_v48, 0.0  ;;  %v5551_v52 = vmul.f32 %v5538_v34, %v5518_v48  ;;  %v5560_v54 = vmul.f32 %v9635_v23, %v5556_v49  ;;  %v8888_v34 = vld [vmem:[%s10123_s9 + $0x328] sm:$0xff]  }
 0xec0   : > { %v5557_v53 = vsel %vm5524_vm10, %v5520_v44, %v5553_v50  ;;  %v5558_v57 = vmul.f32 %v9635_v23, %v5554_v51 }
 0xec1   : > { %v5561_v55 = vmul.f32 %v9635_v23, %v5557_v53  ;;  %v5555_v56 = vsel %vm5522_vm11, %v5518_v48, %v5551_v52 }
 0xec2   : > { %v5559_v58 = vmul.f32 %v9635_v23, %v5555_v56 }
 0xec3   : > { %v5563_v59 = vpack.c.bf16 %v5561_v55, %v5560_v54 }
 0xec4   : > { %v5562_v60 = vpack.c.bf16 %v5559_v58, %v5558_v57 }
 0xec5   : > { %5568 = vrot.lane.b32.xlu0 %v5563_v59, %s10167_s17 }
 0xec6   : > { %5566 = vrot.lane.b32.xlu1 %v5562_v60, %s10167_s17 }
 0xf37   : > { %v5569_v61 = vpop.permute.xlu0 %5568 }
 0xf38   : > { %5573 = vst.msk [vmem:[#allocation4 + $0x8] sm:$0xff] %vm1583_vm4, %v5569_v61  ;;  %v5567_v62 = vpop.permute.xlu1 %5566 }
 0xf39   : > { %5572 = vst.msk [vmem:[#allocation4] sm:$0xff] %vm1583_vm4, %v5567_v62 }
 0xf3f   : > { %v5580_v0 = vld [vmem:[#allocation4 + $0x8] sm:$0xff] }
 0xf40   : > { %5600 = vrot.lane.b32.xlu0 %v5580_v0, %s10168_s21  ;;  %v5579_v1 = vld [vmem:[#allocation4] sm:$0xff] }
 0xf41   : > { %5598 = vrot.lane.b32.xlu1 %v5579_v1, %s10168_s21 }
 0xf44   : > { %5671 = vrot.lane.b32.xlu0 %v5580_v0, %s10169_s23 }
 0xf45   : > { %5669 = vrot.lane.b32.xlu1 %v5579_v1, %s10169_s23 }
 0xf48   : > { %5747 = vrot.lane.b32.xlu0 %v5580_v0, %s10170_s27 }
 0xf49   : > { %5745 = vrot.lane.b32.xlu1 %v5579_v1, %s10170_s27 }
 0xf4c   : > { %5827 = vrot.lane.b32.xlu0 %v5580_v0, %s10161_s25 }
 0xf4d   : > { %5825 = vrot.lane.b32.xlu1 %v5579_v1, %s10161_s25 }
 0xf50   : > { %5907 = vrot.lane.b32.xlu0 %v5580_v0, %s10162_s26 }
 0xf51   : > { %5905 = vrot.lane.b32.xlu1 %v5579_v1, %s10162_s26 }
 0xf54   : > { %5987 = vrot.lane.b32.xlu0 %v5580_v0, %s10163_s19 }
 0xf55   : > { %5985 = vrot.lane.b32.xlu1 %v5579_v1, %s10163_s19 }
 0xf58   : > { %6067 = vrot.lane.b32.xlu0 %v5580_v0, %s10164_s16 }
 0xf59   : > { %6065 = vrot.lane.b32.xlu1 %v5579_v1, %s10164_s16 }
 0xf5c   : > { %6147 = vrot.lane.b32.xlu0 %v5580_v0, %s10165_s28 }
 0xf5d   : > { %6145 = vrot.lane.b32.xlu1 %v5579_v1, %s10165_s28 }
 0xf60   : > { %6227 = vrot.lane.b32.xlu0 %v5580_v0, %s10166_s15 }
 0xf61   : > { %6225 = vrot.lane.b32.xlu1 %v5579_v1, %s10166_s15 }
 0xf64   : > { %6302 = vperm.xlu0 %8757, %v7543_v2  }
 0xf65   : > { %6297 = vperm.xlu1 %8758, %v7542_v3  }
 0xf68   : > { %6335 = vperm.xlu0 %8757, %v7547_v4  }
 0xf69   : > { %6330 = vperm.xlu1 %8758, %v7546_v5  }
 0xf6c   : > { %6312 = vperm.xlu0 %8757, %v7545_v6  }
 0xf6d   : > { %6307 = vperm.xlu1 %8758, %v7544_v8  }
 0xf70   : > { %6345 = vperm.xlu0 %8757, %v7549_v9  }
 0xf71   : > { %6340 = vperm.xlu1 %8758, %v7548_v10  }
 0xfb2   : > { %v5601_v12 = vpop.permute.xlu0 %5600 }
 0xfb3   : > { %v5599_v11 = vpop.permute.xlu1 %5598 }
 0xfb4   : > { %8359 = vmatprep.subr.bf16.mxu0 %v5599_v11 }
 0xfb5   : > { %8360 = vmatpush3.bf16.msra.mxu0 %v5599_v11 }
 0xfb6   : > { %8361 = vmatprep.subr.bf16.mxu0 %v5601_v12  ;;  %v5672_v16 = vpop.permute.xlu0 %5671 }
 0xfb7   : > { %v5670_v14 = vpop.permute.xlu1 %5669 }
 0xfb9   : > { %8362 = vmatpush3.bf16.msra.mxu0 %v5601_v12 }
 0xfba   : > { %8367 = vmatprep.subr.bf16.mxu0 %v5670_v14  ;;  %v5748_v20 = vpop.permute.xlu0 %5747 }
 0xfbb   : > { %v5746_v17 = vpop.permute.xlu1 %5745 }
 0xfbc   : > { %8364 = vmatmul.mubr.msk.bf16.vlgmr.msra.gmra.mrb[16].mxu0 %vm1615_vm5, %v8878_v13  ;;  %v8929_v13 = vmov 0.0  }
 0xfbd   : > { %8368 = vmatpush3.bf16.msra.mxu0 %v5670_v14  ;;  %8371 = vmatprep.mubr.msk.bf16.mxu0 %vm1615_vm5, %v8879_v15 }
 0xfbe   : > { %8369 = vmatprep.subr.bf16.mxu0 %v5672_v16  ;;  %v5828_v24 = vpop.permute.xlu0 %5827  ;;  %8431 = vmatprep.subr.bf16.mxu1 %v8929_v13 }
 0xfbf   : > { %v5826_v39 = vpop.permute.xlu1 %5825  ;;  %8435 = vmatprep.mubr.msk.bf16.mxu1 %vm8930_vm0, %v8929_v13 }
 0xfc1   : > { %8370 = vmatpush3.bf16.msra.mxu0 %v5672_v16 }
 0xfc2   : > { %8375 = vmatprep.subr.bf16.mxu0 %v5746_v17  ;;  %v5908_v28 = vpop.permute.xlu0 %5907 }
 0xfc3   : > { %v5906_v25 = vpop.permute.xlu1 %5905 }
 0xfc6   : > { %v5988_v32 = vpop.permute.xlu0 %5987 }
 0xfc7   : > { %v5986_v29 = vpop.permute.xlu1 %5985 }
 0xfc8   : > { %8372 = vmatmul.mubr.msk.bf16.vlgmr.msra.gmra.mrb[16].mxu0 %vm1615_vm5, %v8880_v18  ;;  %v6911_v18 = vld [vmem:[%s10127_s13] sm:$0xff] }
 0xfc9   : > { %8376 = vmatpush3.bf16.msra.mxu0 %v5746_v17  ;;  %8379 = vmatprep.mubr.msk.bf16.mxu0 %vm1615_vm5, %v8881_v19  ;;  %v6912_v17 = vld [vmem:[%s10127_s13 + $0x8] sm:$0xff] }
 0xfca   : > { %8377 = vmatprep.subr.bf16.mxu0 %v5748_v20  ;;  %v6068_v36 = vpop.permute.xlu0 %6067 }
 0xfcb   : > { %v6066_v33 = vpop.permute.xlu1 %6065 }
 0xfcd   : > { %8378 = vmatpush3.bf16.msra.mxu0 %v5748_v20 }
 0xfce   : > { %8383 = vmatprep.subr.bf16.mxu0 %v5826_v39  ;;  %v6148_v40 = vpop.permute.xlu0 %6147 }
 0xfcf   : > { %v6146_v7 = vpop.permute.xlu1 %6145 }
 0xfd2   : > { %v6228_v44 = vpop.permute.xlu0 %6227 }
 0xfd3   : > { %v6226_v41 = vpop.permute.xlu1 %6225 }
 0xfd4   : > { %8380 = vmatmul.mubr.msk.bf16.vlgmr.msra.gmra.mrb[16].mxu0 %vm1615_vm5, %v8882_v21 }
 0xfd5   : > { %8384 = vmatpush3.bf16.msra.mxu0 %v5826_v39  ;;  %8387 = vmatprep.mubr.msk.bf16.mxu0 %vm1615_vm5, %v8883_v22  ;;  %v8895_v22 = vld [vmem:[%s10126_s12 + $0x8] sm:$0xff]  }
 0xfd6   : > { %8385 = vmatprep.subr.bf16.mxu0 %v5828_v24 }
 0xfd9   : > { %8386 = vmatpush3.bf16.msra.mxu0 %v5828_v24 }
 0xfda   : > { %8391 = vmatprep.subr.bf16.mxu0 %v5906_v25 }
 0xfe0   : > { %8388 = vmatmul.mubr.msk.bf16.vlgmr.msra.gmra.mrb[16].mxu0 %vm1615_vm5, %v8884_v26  ;;  %v8896_v26 = vld [vmem:[%s10126_s12] sm:$0xff]  }
 0xfe1   : > { %8392 = vmatpush3.bf16.msra.mxu0 %v5906_v25  ;;  %8395 = vmatprep.mubr.msk.bf16.mxu0 %vm1615_vm5, %v8885_v27 }
 0xfe2   : > { %8393 = vmatprep.subr.bf16.mxu0 %v5908_v28 }
 0xfe3   : > { %v6303_v47 = vpop.permute.xlu0 %6302 }
 0xfe4   : > { %v6298_v46 = vpop.permute.xlu1 %6297 }
 0xfe5   : > { %8394 = vmatpush3.bf16.msra.mxu0 %v5908_v28 }
 0xfe6   : > { %8399 = vmatprep.subr.bf16.mxu0 %v5986_v29 }
 0xfe7   : > { %v6336_v49 = vpop.permute.xlu0 %6335 }
 0xfe8   : > { %v6331_v48 = vpop.permute.xlu1 %6330 }
 0xfeb   : > { %v6313_v51 = vpop.permute.xlu0 %6312 }
 0xfec   : > { %8396 = vmatmul.mubr.msk.bf16.vlgmr.msra.gmra.mrb[16].mxu0 %vm1615_vm5, %v8886_v30  ;;  %v6308_v50 = vpop.permute.xlu1 %6307 }
 0xfed   : > { %8400 = vmatpush3.bf16.msra.mxu0 %v5986_v29  ;;  %8403 = vmatprep.mubr.msk.bf16.mxu0 %vm1615_vm5, %v8887_v31  ;;  %v8897_v29 = vld [vmem:[%s10126_s12 + $0x10] sm:$0xff]  }
 0xfee   : > { %8401 = vmatprep.subr.bf16.mxu0 %v5988_v32 }
 0xfef   : > { %v6346_v61 = vpop.permute.xlu0 %6345 }
 0xff0   : > { %v6341_v55 = vpop.permute.xlu1 %6340 }
 0xff1   : > { %8402 = vmatpush3.bf16.msra.mxu0 %v5988_v32  ;;  %v8898_v32 = vld [vmem:[%s10126_s12 + $0x18] sm:$0xff]  }
 0xff2   : > { %8407 = vmatprep.subr.bf16.mxu0 %v6066_v33 }
 0xff8   : > { %8404 = vmatmul.mubr.msk.bf16.vlgmr.msra.gmra.mrb[16].mxu0 %vm1615_vm5, %v8888_v34 }
 0xff9   : > { %8408 = vmatpush3.bf16.msra.mxu0 %v6066_v33  ;;  %8411 = vmatprep.mubr.msk.bf16.mxu0 %vm1615_vm5, %v8889_v35  ;;  %v8899_v35 = vld [vmem:[%s10126_s12 + $0x20] sm:$0xff]  }
 0xffa   : > { %8409 = vmatprep.subr.bf16.mxu0 %v6068_v36 }
 0xffd   : > { %8410 = vmatpush3.bf16.msra.mxu0 %v6068_v36 }
 0xffe   : > { %8415 = vmatprep.subr.bf16.mxu0 %v6146_v7 }
0x1004   : > { %8412 = vmatmul.mubr.msk.bf16.vlgmr.msra.gmra.mrb[16].mxu0 %vm1615_vm5, %v8890_v37  ;;  %v8900_v37 = vld [vmem:[%s10126_s12 + $0x28] sm:$0xff]  }
0x1005   : > { %8416 = vmatpush3.bf16.msra.mxu0 %v6146_v7  ;;  %8419 = vmatprep.mubr.msk.bf16.mxu0 %vm1615_vm5, %v8891_v38 }
0x1006   : > { %8417 = vmatprep.subr.bf16.mxu0 %v6148_v40 }
0x1009   : > { %8418 = vmatpush3.bf16.msra.mxu0 %v6148_v40  ;;  %v8901_v40 = vld [vmem:[%s10126_s12 + $0x30] sm:$0xff]  }
0x100a   : > { %8423 = vmatprep.subr.bf16.mxu0 %v6226_v41 }
0x1010   : > { %8420 = vmatmul.mubr.msk.bf16.vlgmr.msra.gmra.mrb[16].mxu0 %vm1615_vm5, %v8892_v42 }
0x1011   : > { %8424 = vmatpush3.bf16.msra.mxu0 %v6226_v41  ;;  %8427 = vmatprep.mubr.msk.bf16.mxu0 %vm1615_vm5, %v8893_v43  ;;  %v8902_v43 = vld [vmem:[%s10126_s12 + $0x38] sm:$0xff]  }
0x1012   : > { %8425 = vmatprep.subr.bf16.mxu0 %v6228_v44 }
0x1015   : > { %8426 = vmatpush3.bf16.msra.mxu0 %v6228_v44 }
0x1016   : > { %8439 = vmatprep.subr.bf16.mxu0 %v8929_v13 }
0x101c   : > { %8428 = vmatmul.mubr.msk.bf16.vlgmr.msra.gmra.mrb[16].mxu0 %vm1615_vm5, %v8894_v45  ;;  %v8903_v45 = vld [vmem:[%s10126_s12 + $0x40] sm:$0xff]  }
0x101d   : > { %8443 = vmatprep.mubr.msk.bf16.mxu0 %vm8930_vm0, %v8929_v13 }
0x10ef   : > { %v8429_v52 = vpop.f32.mrb[16].mxu0 }
0x10f0   : > { %v6317_v53 = vadd.f32 %v8429_v52, %v6308_v50  ;;  %v6271_v54 = vpop.f32.mrb[17].mxu0 }
0x10f1   : > { %v6315_v56 = vadd.f32 %v6298_v46, %v6271_v54  ;;  %v8430_v57 = vpop.f32.mrb[18].mxu0 }
0x10f2   : > { %vm6321_vm12 = vcmp.ge.f32.partialorder %v6317_v53, 0.0  ;;  %v6350_v58 = vmul.f32 %v6341_v55, %v6317_v53  ;;  %v6318_v59 = vadd.f32 %v8430_v57, %v6313_v51  ;;  %v6274_v60 = vpop.f32.mrb[19].mxu0 }
0x10f3   : > { %vm6319_vm13 = vcmp.ge.f32.partialorder %v6315_v56, 0.0  ;;  %v6348_v62 = vmul.f32 %v6331_v48, %v6315_v56  ;;  %v6316_v63 = vadd.f32 %v6303_v47, %v6274_v60 }
0x10f4   : > { %v6354_v0 = vsel %vm6321_vm12, %v6317_v53, %v6350_v58  ;;  %vm6322_vm14 = vcmp.ge.f32.partialorder %v6318_v59, 0.0  ;;  %v6351_v1 = vmul.f32 %v6346_v61, %v6318_v59 }
0x10f5   : > { %v6352_v2 = vsel %vm6319_vm13, %v6315_v56, %v6348_v62  ;;  %vm6320_vm15 = vcmp.ge.f32.partialorder %v6316_v63, 0.0  ;;  %v6349_v3 = vmul.f32 %v6336_v49, %v6316_v63  ;;  %v6358_v5 = vmul.f32 %v9635_v23, %v6354_v0 }
0x10f6   : > { %v6355_v4 = vsel %vm6322_vm14, %v6318_v59, %v6351_v1  ;;  %v6356_v9 = vmul.f32 %v9635_v23, %v6352_v2 }
0x10f7   : > { %v6359_v6 = vmul.f32 %v9635_v23, %v6355_v4  ;;  %v6353_v8 = vsel %vm6320_vm15, %v6316_v63, %v6349_v3 }
0x10f8   : > { %v6357_v10 = vmul.f32 %v9635_v23, %v6353_v8 }
0x10f9   : > { %v6361_v11 = vpack.c.bf16 %v6359_v6, %v6358_v5 }
0x10fa   : > { %v6360_v12 = vpack.c.bf16 %v6357_v10, %v6356_v9 }
0x10fb   : > { %6366 = vrot.lane.b32.xlu0 %v6361_v11, %s10167_s17 }
0x10fc   : > { %6364 = vrot.lane.b32.xlu1 %v6360_v12, %s10167_s17 }
0x116d   : > { %v6367_v14 = vpop.permute.xlu0 %6366 }
0x116e   : > { %6371 = vst.msk [vmem:[#allocation3 + $0x8] sm:$0xff] %vm1583_vm4, %v6367_v14  ;;  %v6365_v15 = vpop.permute.xlu1 %6364 }
0x116f   : > { %6370 = vst.msk [vmem:[#allocation3] sm:$0xff] %vm1583_vm4, %v6365_v15  ;;  %vm6925_vm4 = vcmask 195584  }
0x1175   : > { %v6375_v23 = vld [vmem:[#allocation3 + $0x8] sm:$0xff] }
0x1176   : > { %6388 = vrot.lane.b32.xlu0 %v6375_v23, %s10168_s21  ;;  %v6374_v16 = vld [vmem:[#allocation3] sm:$0xff] }
0x1177   : > { %6386 = vrot.lane.b32.xlu1 %v6374_v16, %s10168_s21 }
0x117a   : > { %6499 = vrot.lane.b32.xlu0 %v6374_v16, %s10170_s27 }
0x117b   : > { %6441 = vrot.lane.b32.xlu1 %v6374_v16, %s10169_s23 }
0x117e   : > { %6501 = vrot.lane.b32.xlu0 %v6375_v23, %s10170_s27 }
0x117f   : > { %6443 = vrot.lane.b32.xlu1 %v6375_v23, %s10169_s23 }
0x1182   : > { %6619 = vrot.lane.b32.xlu0 %v6374_v16, %s10162_s26 }
0x1183   : > { %6559 = vrot.lane.b32.xlu1 %v6374_v16, %s10161_s25 }
0x1186   : > { %6621 = vrot.lane.b32.xlu0 %v6375_v23, %s10162_s26 }
0x1187   : > { %6561 = vrot.lane.b32.xlu1 %v6375_v23, %s10161_s25  ;;  %s7587_s25 = sshll.u32 %s10172_s30, 4 }
0x118a   : > { %6739 = vrot.lane.b32.xlu0 %v6374_v16, %s10164_s16 }
0x118b   : > { %6679 = vrot.lane.b32.xlu1 %v6374_v16, %s10163_s19 }
0x118e   : > { %6741 = vrot.lane.b32.xlu0 %v6375_v23, %s10164_s16  ;;  %s467_s16 = scalar_lea.vmem %s10128_s14, %s7587_s25 }
0x118f   : > { %6681 = vrot.lane.b32.xlu1 %v6375_v23, %s10163_s19 }
0x1192   : > { %6859 = vrot.lane.b32.xlu0 %v6374_v16, %s10166_s15 }
0x1193   : > { %6799 = vrot.lane.b32.xlu1 %v6374_v16, %s10165_s28 }
0x1196   : > { %6861 = vrot.lane.b32.xlu0 %v6375_v23, %s10166_s15 }
0x1197   : > { %6801 = vrot.lane.b32.xlu1 %v6375_v23, %s10165_s28 }
0x119a   : > { %6920 = vperm.xlu0 %8757, %v6912_v17  }
0x119b   : > { %6915 = vperm.xlu1 %8758, %v6911_v18  }
0x11e8   : > { %v6389_v19 = vpop.permute.xlu0 %6388 }
0x11e9   : > { %v6387_v20 = vpop.permute.xlu1 %6386 }
0x11ea   : > { %8432 = vmatpush3.bf16.msra.mxu1 %v6387_v20 }
0x11eb   : > { %8433 = vmatprep.subr.bf16.mxu1 %v8929_v13 }
0x11ec   : > { %v6500_v39 = vpop.permute.xlu0 %6499 }
0x11ed   : > { %v6442_v21 = vpop.permute.xlu1 %6441 }
0x11ee   : > { %8434 = vmatpush3.bf16.msra.mxu1 %v6389_v19  ;;  %8440 = vmatpush3.bf16.msra.mxu0 %v6442_v21 }
0x11ef   : > { %8441 = vmatprep.subr.bf16.mxu0 %v8929_v13  ;;  %8447 = vmatprep.subr.bf16.mxu1 %v8929_v13 }
0x11f0   : > { %v6502_v24 = vpop.permute.xlu0 %6501 }
0x11f1   : > { %v6444_v25 = vpop.permute.xlu1 %6443  ;;  %8436 = vmatmul.mubr.msk.bf16.vlgmr.msra.gmra.mrb[16].mxu1 %vm1615_vm5, %v8895_v22 }
0x11f2   : > { %8442 = vmatpush3.bf16.msra.mxu0 %v6444_v25  ;;  %8448 = vmatpush3.bf16.msra.mxu1 %v6500_v39 }
0x11f3   : > { %8455 = vmatprep.subr.bf16.mxu0 %v8929_v13  ;;  %8449 = vmatprep.subr.bf16.mxu1 %v8929_v13 }
0x11f4   : > { %v6620_v27 = vpop.permute.xlu0 %6619  ;;  %8451 = vmatprep.mubr.msk.bf16.mxu1 %vm8930_vm0, %v8929_v13 }
0x11f5   : > { %8444 = vmatmul.mubr.msk.bf16.vlgmr.msra.gmra.mrb[20].mxu0 %vm1615_vm5, %v8896_v26  ;;  %v6560_v28 = vpop.permute.xlu1 %6559 }
0x11f6   : > { %8450 = vmatpush3.bf16.msra.mxu1 %v6502_v24  ;;  %8456 = vmatpush3.bf16.msra.mxu0 %v6560_v28 }
0x11f7   : > { %8457 = vmatprep.subr.bf16.mxu0 %v8929_v13  ;;  %8463 = vmatprep.subr.bf16.mxu1 %v8929_v13 }
0x11f8   : > { %v6622_v30 = vpop.permute.xlu0 %6621  ;;  %8459 = vmatprep.mubr.msk.bf16.mxu0 %vm8930_vm0, %v8929_v13 }
0x11f9   : > { %v6562_v31 = vpop.permute.xlu1 %6561  ;;  %8452 = vmatmul.mubr.msk.bf16.vlgmr.msra.gmra.mrb[20].mxu1 %vm1615_vm5, %v8897_v29 }
0x11fa   : > { %8458 = vmatpush3.bf16.msra.mxu0 %v6562_v31  ;;  %8464 = vmatpush3.bf16.msra.mxu1 %v6620_v27 }
0x11fb   : > { %8471 = vmatprep.subr.bf16.mxu0 %v8929_v13  ;;  %8465 = vmatprep.subr.bf16.mxu1 %v8929_v13 }
0x11fc   : > { %v6740_v33 = vpop.permute.xlu0 %6739  ;;  %8467 = vmatprep.mubr.msk.bf16.mxu1 %vm8930_vm0, %v8929_v13 }
0x11fd   : > { %8460 = vmatmul.mubr.msk.bf16.vlgmr.msra.gmra.mrb[24].mxu0 %vm1615_vm5, %v8898_v32  ;;  %v6680_v34 = vpop.permute.xlu1 %6679 }
0x11fe   : > { %8466 = vmatpush3.bf16.msra.mxu1 %v6622_v30  ;;  %8472 = vmatpush3.bf16.msra.mxu0 %v6680_v34 }
0x11ff   : > { %8473 = vmatprep.subr.bf16.mxu0 %v8929_v13  ;;  %8479 = vmatprep.subr.bf16.mxu1 %v8929_v13 }
0x1200   : > { %8475 = vmatprep.mubr.msk.bf16.mxu0 %vm8930_vm0, %v8929_v13  ;;  %v6742_v36 = vpop.permute.xlu0 %6741 }
0x1201   : > { %v6682_v7 = vpop.permute.xlu1 %6681  ;;  %8468 = vmatmul.mubr.msk.bf16.vlgmr.msra.gmra.mrb[24].mxu1 %vm1615_vm5, %v8899_v35 }
0x1202   : > { %8474 = vmatpush3.bf16.msra.mxu0 %v6682_v7  ;;  %8480 = vmatpush3.bf16.msra.mxu1 %v6740_v33 }
0x1203   : > { %8487 = vmatprep.subr.bf16.mxu0 %v8929_v13  ;;  %8481 = vmatprep.subr.bf16.mxu1 %v8929_v13 }
0x1204   : > { %8483 = vmatprep.mubr.msk.bf16.mxu1 %vm8930_vm0, %v8929_v13  ;;  %v6860_v41 = vpop.permute.xlu0 %6859 }
0x1205   : > { %8476 = vmatmul.mubr.msk.bf16.vlgmr.msra.gmra.mrb[28].mxu0 %vm1615_vm5, %v8900_v37  ;;  %v6800_v38 = vpop.permute.xlu1 %6799 }
0x1206   : > { %8482 = vmatpush3.bf16.msra.mxu1 %v6742_v36  ;;  %8488 = vmatpush3.bf16.msra.mxu0 %v6800_v38 }
0x1207   : > { %8489 = vmatprep.subr.bf16.mxu0 %v8929_v13  ;;  %8495 = vmatprep.subr.bf16.mxu1 %v8929_v13 }
0x1208   : > { %8491 = vmatprep.mubr.msk.bf16.mxu0 %vm8930_vm0, %v8929_v13  ;;  %v6862_v44 = vpop.permute.xlu0 %6861 }
0x1209   : > { %v6802_v42 = vpop.permute.xlu1 %6801  ;;  %8484 = vmatmul.mubr.msk.bf16.vlgmr.msra.gmra.mrb[28].mxu1 %vm1615_vm5, %v8901_v40 }
0x120a   : > { %8490 = vmatpush3.bf16.msra.mxu0 %v6802_v42  ;;  %8496 = vmatpush3.bf16.msra.mxu1 %v6860_v41 }
0x120b   : > { %8497 = vmatprep.subr.bf16.mxu1 %v8929_v13  ;;  %8499 = vmatprep.mubr.msk.bf16.mxu1 %vm8930_vm0, %v8929_v13 }
0x120d   : > { %8492 = vmatmul.mubr.msk.bf16.vlgmr.msra.gmra.mrb[32].mxu0 %vm1615_vm5, %v8902_v43 }
0x120e   : > { %8498 = vmatpush3.bf16.msra.mxu1 %v6862_v44 }
0x1211   : > { %8500 = vmatmul.mubr.msk.bf16.vlgmr.msra.gmra.mrb[32].mxu1 %vm1615_vm5, %v8903_v45 }
0x1219   : > { %v6921_v36 = vpop.permute.xlu0 %6920 }
0x121a   : > { %v6916_v31 = vpop.permute.xlu1 %6915 }
0x12c4   : > { %v6429_v46 = vpop.f32.mrb[16].mxu1 }
0x12c5   : > { %v8437_v47 = vpop.f32.mrb[17].mxu1 }
0x12c6   : > { %v6432_v48 = vpop.f32.mrb[18].mxu1 }
0x12c7   : > { %v8438_v49 = vpop.f32.mrb[19].mxu1 }
0x12c8   : > { %v6484_v50 = vpop.f32.mrb[20].mxu0 }
0x12c9   : > { %v6485_v51 = vadd.f32 %v6484_v50, %v6429_v46  ;;  %v8445_v52 = vpop.f32.mrb[21].mxu0 }
0x12ca   : > { %v6487_v53 = vpop.f32.mrb[22].mxu0 }
0x12cb   : > { %v6488_v54 = vadd.f32 %v6487_v53, %v6432_v48  ;;  %v8446_v55 = vpop.f32.mrb[23].mxu0 }
0x12cc   : > { %v6542_v56 = vpop.f32.mrb[20].mxu1 }
0x12cd   : > { %v6549_v57 = vadd.f32 %v6542_v56, %v6485_v51  ;;  %v8453_v58 = vpop.f32.mrb[21].mxu1 }
0x12ce   : > { %v6545_v59 = vpop.f32.mrb[22].mxu1 }
0x12cf   : > { %v6550_v60 = vadd.f32 %v6545_v59, %v6488_v54  ;;  %v8454_v61 = vpop.f32.mrb[23].mxu1 }
0x12d0   : > { %v6602_v62 = vpop.f32.mrb[24].mxu0 }
0x12d1   : > { %v6609_v63 = vadd.f32 %v6602_v62, %v6549_v57  ;;  %v8461_v0 = vpop.f32.mrb[25].mxu0 }
0x12d2   : > { %v6605_v1 = vpop.f32.mrb[26].mxu0 }
0x12d3   : > { %v6610_v2 = vadd.f32 %v6605_v1, %v6550_v60  ;;  %v8462_v3 = vpop.f32.mrb[27].mxu0 }
0x12d4   : > { %v6662_v4 = vpop.f32.mrb[24].mxu1 }
0x12d5   : > { %v6669_v5 = vadd.f32 %v6662_v4, %v6609_v63  ;;  %v8469_v6 = vpop.f32.mrb[25].mxu1 }
0x12d6   : > { %v6665_v8 = vpop.f32.mrb[26].mxu1 }
0x12d7   : > { %v6670_v9 = vadd.f32 %v6665_v8, %v6610_v2  ;;  %v8470_v10 = vpop.f32.mrb[27].mxu1 }
0x12d8   : > { %v6722_v11 = vpop.f32.mrb[28].mxu0 }
0x12d9   : > { %v6729_v12 = vadd.f32 %v6722_v11, %v6669_v5  ;;  %v8477_v13 = vpop.f32.mrb[29].mxu0 }
0x12da   : > { %v6725_v14 = vpop.f32.mrb[30].mxu0 }
0x12db   : > { %v6730_v15 = vadd.f32 %v6725_v14, %v6670_v9  ;;  %v8478_v23 = vpop.f32.mrb[31].mxu0 }
0x12dc   : > { %v6782_v16 = vpop.f32.mrb[28].mxu1 }
0x12dd   : > { %v6789_v17 = vadd.f32 %v6782_v16, %v6729_v12  ;;  %v8485_v18 = vpop.f32.mrb[29].mxu1 }
0x12de   : > { %v6785_v19 = vpop.f32.mrb[30].mxu1 }
0x12df   : > { %v6790_v20 = vadd.f32 %v6785_v19, %v6730_v15  ;;  %v8486_v39 = vpop.f32.mrb[31].mxu1 }
0x12e0   : > { %v6842_v21 = vpop.f32.mrb[32].mxu0 }
0x12e1   : > { %v6849_v22 = vadd.f32 %v6842_v21, %v6789_v17  ;;  %v8493_v24 = vpop.f32.mrb[33].mxu0 }
0x12e2   : > { %v6845_v25 = vpop.f32.mrb[34].mxu0 }
0x12e3   : > { %v6850_v26 = vadd.f32 %v6845_v25, %v6790_v20  ;;  %v8494_v27 = vpop.f32.mrb[35].mxu0 }
0x12e4   : > { %v6902_v28 = vpop.f32.mrb[32].mxu1 }
0x12e5   : > { %v6909_v29 = vadd.f32 %v6902_v28, %v6849_v22  ;;  %v8501_v30 = vpop.f32.mrb[33].mxu1 }
0x12e6   : > { %v6905_v32 = vpop.f32.mrb[34].mxu1 }
0x12e7   : > { %v6923_v33 = vadd.f32 %v6916_v31, %v6909_v29  ;;  %v6910_v34 = vadd.f32 %v6905_v32, %v6850_v26  ;;  %v8502_v35 = vpop.f32.mrb[35].mxu1 }
0x12e9   : > { %6926 = vst.msk [vmem:[%s467_s16] sm:$0xff] %vm6925_vm4, %v6923_v33  ;;  %v6924_v7 = vadd.f32 %v6921_v36, %v6910_v34 }
0x12eb   : > { %6927 = vst.msk [vmem:[%s467_s16 + $0x8] sm:$0xff] %vm6925_vm4, %v6924_v7 }
0x12ec PF: > { %s24_s29 = sadd.s32 1, %s8911_s29  }
0x12ed   : > { %p21_p4 = scmp.ge.s32.totalorder %s24_s29, 4  }
0x12ef   :  { %23 = sbr.rel (!%p21_p4) target bundleno = 7 (0x7), region = 183 }

</bundles_post_ra>
